<compile_context>
chip_gen: v5e
topology: v5e:2x2
jax: 0.10.0
libtpu: 0.0.40
codegen_flags: <defaults>
</compile_context>

<pallas_src>
import functools

import jax
import jax.numpy as jnp
from jax.experimental import pallas as pl
from jax.experimental.pallas import tpu as pltpu


def _batch_block(n):
    """Images folded into the matmul M dim per grid step; keep >= 2 grid steps when possible
    so the 'parallel' batch axis can shard across v7x's two TensorCores."""
    if n >= 2 and n % 2 == 0:
        return n // 2
    return 1


# ------------- fused conv3x3 + folded-BN + ReLU (+ optional 2x2/stride-2 max-pool) -------------
def _conv_bn_relu_kernel(xpad_ref, w_ref, scale_ref, bias_ref, o_ref,
                         *, H, W, Cin, Cout, Nb, pool):
    # xpad_ref: (Nb, H+2, W+2, Cin) bf16    w_ref: (9*Cin, Cout) bf16
    # scale/bias: (1, Cout) f32             o_ref: (Nb, Ho, Wo, Cout) bf16
    pats = []
    for n in range(Nb):
        xp = xpad_ref[n].astype(jnp.float32)               # (H+2, W+2, Cin)
        cols = [xp[ky:ky + H, kx:kx + W, :]                 # 9 shifted windows, (H, W, Cin) each
                for ky in range(3) for kx in range(3)]
        win = jnp.concatenate(cols, axis=-1)                # im2col: (H, W, 9*Cin)
        pats.append(win.reshape(H * W, 9 * Cin))
    patch = pats[0] if Nb == 1 else jnp.concatenate(pats, axis=0)     # (Nb*H*W, 9*Cin)
    # single large-K MXU matmul: bf16 inputs, f32 accumulation
    acc = jnp.dot(patch.astype(jnp.bfloat16), w_ref[...],
                  preferred_element_type=jnp.float32)       # (Nb*H*W, Cout)
    y = acc * scale_ref[0] + bias_ref[0]                    # folded BatchNorm (inference)
    y = jnp.maximum(y, 0.0)                                 # ReLU
    if pool:                                                # fused 2x2 / stride-2 max-pool
        Ho, Wo = H // 2, W // 2
        y = y.reshape(Nb * Ho, 2, W, Cout)
        y = jnp.maximum(y[:, 0], y[:, 1])                   # pool over row pairs
        y = y.reshape(Nb * Ho, Wo, 2, Cout)
        y = jnp.maximum(y[:, :, 0, :], y[:, :, 1, :])       # pool over column pairs
        o_ref[...] = y.reshape(Nb, Ho, Wo, Cout).astype(o_ref.dtype)
    else:
        o_ref[...] = y.reshape(Nb, H, W, Cout).astype(o_ref.dtype)


def conv3x3_bn_relu(x, w_t, scale, bias, *, pool):
    # x: (N, H, W, Cin) bf16 NHWC ; w_t: (9*Cin, Cout) bf16 (pre-transposed at init)
    N, H, W, Cin = x.shape
    Cout = w_t.shape[1]
    Ho, Wo = (H // 2, W // 2) if pool else (H, W)
    Nb = _batch_block(N)
    xpad = jnp.pad(x, ((0, 0), (1, 1), (1, 1), (0, 0)))     # zero padding = SAME
    kernel = functools.partial(_conv_bn_relu_kernel,
                               H=H, W=W, Cin=Cin, Cout=Cout, Nb=Nb, pool=pool)
    return pl.pallas_call(
        kernel,
        out_shape=jax.ShapeDtypeStruct((N, Ho, Wo, Cout), jnp.bfloat16),
        grid=(N // Nb,),
        in_specs=[
            pl.BlockSpec((Nb, H + 2, W + 2, Cin), lambda n: (n, 0, 0, 0)),
            pl.BlockSpec((9 * Cin, Cout), lambda n: (0, 0)),
            pl.BlockSpec((1, Cout), lambda n: (0, 0)),
            pl.BlockSpec((1, Cout), lambda n: (0, 0)),
        ],
        out_specs=pl.BlockSpec((Nb, Ho, Wo, Cout), lambda n: (n, 0, 0, 0)),
        compiler_params=pltpu.CompilerParams(dimension_semantics=("parallel",)),
    )(xpad, w_t, scale, bias)


# ---------------- standalone 2x2 max-pool (only for an 'M' not preceded by a conv) -------------
def _maxpool_kernel(x_ref, o_ref, *, Nb, H, W, C):
    Ho, Wo = H // 2, W // 2
    y = x_ref[...].astype(jnp.float32).reshape(Nb * Ho, 2, W, C)
    y = jnp.maximum(y[:, 0], y[:, 1])
    y = y.reshape(Nb * Ho, Wo, 2, C)
    y = jnp.maximum(y[:, :, 0, :], y[:, :, 1, :])
    o_ref[...] = y.reshape(Nb, Ho, Wo, C).astype(o_ref.dtype)


def maxpool2x2(x):
    N, H, W, C = x.shape
    Nb = _batch_block(N)
    Ho, Wo = H // 2, W // 2
    kernel = functools.partial(_maxpool_kernel, Nb=Nb, H=H, W=W, C=C)
    return pl.pallas_call(
        kernel,
        out_shape=jax.ShapeDtypeStruct((N, Ho, Wo, C), x.dtype),
        grid=(N // Nb,),
        in_specs=[pl.BlockSpec((Nb, H, W, C), lambda n: (n, 0, 0, 0))],
        out_specs=pl.BlockSpec((Nb, Ho, Wo, C), lambda n: (n, 0, 0, 0)),
        compiler_params=pltpu.CompilerParams(dimension_semantics=("parallel",)),
    )(x)


# ------------------------------ top Linear (+ L2 normalize) -----------------------------------
def _linear_kernel(x_ref, w_ref, b_ref, o_ref, *, normalize):
    y = jnp.dot(x_ref[...], w_ref[...], preferred_element_type=jnp.float32) + b_ref[...]
    if normalize:
        ss = jnp.sum(y * y, axis=1, keepdims=True)
        y = y * jax.lax.rsqrt(jnp.maximum(ss, 1e-24))       # rsqrt on EUP; floor avoids NaN
    o_ref[...] = y


def top_linear(x, w_t, b, normalize):
    # x: (N, 1024) bf16 ; w_t: (1024, out_dim) bf16 (pre-permuted at init) ; b: (1, out_dim) f32
    N, D = x.shape
    out_dim = w_t.shape[1]
    kernel = functools.partial(_linear_kernel, normalize=normalize)
    return pl.pallas_call(
        kernel,
        out_shape=jax.ShapeDtypeStruct((N, out_dim), jnp.float32),
        grid=(1,),
        in_specs=[
            pl.BlockSpec((N, D), lambda i: (0, 0)),
            pl.BlockSpec((D, out_dim), lambda i: (0, 0)),
            pl.BlockSpec((1, out_dim), lambda i: (0, 0)),
        ],
        out_specs=pl.BlockSpec((N, out_dim), lambda i: (0, 0)),
    )(x, w_t, b)


# ------------------------------------ model assembly ------------------------------------------
def _parse_config(config):
    """-> list of ('conv', idx, fuse_pool) | ('pool',); each 'M' fuses into the conv before it."""
    ops, ci = [], 0
    for v in config:
        if v == 'M':
            if ops and ops[-1][0] == 'conv' and not ops[-1][2]:
                ops[-1] = ('conv', ops[-1][1], True)
            else:
                ops.append(('pool',))
        else:
            ops.append(('conv', ci, False))
            ci += 1
    return ops


def init_params(key, config, in_size, in_channels, out_dim, eps=1e-5):
    """PyTorch-equivalent init with ALL weight prep hoisted here (nothing per-forward)."""
    n_conv = sum(1 for v in config if v != 'M')
    keys = jax.random.split(key, n_conv + 1)
    convs, cin, size, ki = [], in_channels, in_size, 0
    for v in config:
        if v == 'M':
            size //= 2
            continue
        std = (2.0 / (cin * 9)) ** 0.5                      # kaiming_normal_(fan_in, relu)
        w = std * jax.random.normal(keys[ki], (v, cin, 3, 3), jnp.float32)
        gamma = jnp.ones((v,), jnp.float32)                 # BatchNorm2d init: weight=1, bias=0
        beta = jnp.zeros((v,), jnp.float32)
        mean = jnp.zeros((v,), jnp.float32)                 # running_mean=0, running_var=1
        var = jnp.ones((v,), jnp.float32)
        inv_std = 1.0 / jnp.sqrt(var + eps)
        convs.append(dict(
            w=jnp.transpose(w, (2, 3, 1, 0)).reshape(9 * cin, v).astype(jnp.bfloat16),
            scale=(gamma * inv_std).reshape(1, v),
            bias=(beta - mean * gamma * inv_std).reshape(1, v),
        ))
        cin, ki = v, ki + 1
    cf, hf, wf = cin, size, size
    assert cf * hf * wf == 1024, "config/in_size must flatten to 1024 (nn.Linear(1024, out_dim))"
    fc_w = 0.01 * jax.random.normal(keys[ki], (out_dim, 1024), jnp.float32)
    # permute fc input rows from NCHW-flatten to NHWC-flatten order so the forward needs no
    # activation transpose before the top Linear.
    fc_w_hwc = jnp.transpose(fc_w.reshape(out_dim, cf, hf, wf), (0, 2, 3, 1)).reshape(out_dim, 1024)
    return dict(convs=convs,
                fc_w=jnp.transpose(fc_w_hwc).astype(jnp.bfloat16),
                fc_b=jnp.zeros((1, out_dim), jnp.float32))


def vgg_forward(x_nchw, params, config, normalize):
    x = jnp.transpose(x_nchw, (0, 2, 3, 1)).astype(jnp.bfloat16)      # NCHW -> NHWC, bf16
    for op in _parse_config(config):
        if op[0] == 'conv':
            p = params['convs'][op[1]]
            x = conv3x3_bn_relu(x, p['w'], p['scale'], p['bias'], pool=op[2])
        else:
            x = maxpool2x2(x)
    x = x.reshape(x.shape[0], -1)                            # NHWC flatten (fc weight pre-permuted)
    return top_linear(x, params['fc_w'], params['fc_b'], normalize)


if __name__ == "__main__":
    # Small VGG config whose flattened feature map is exactly 1024 (Linear(1024, out_dim)):
    # 16x16 input -> 256 channels at 2x2 -> 256*2*2 = 1024.
    config = [16, 'M', 32, 'M', 256, 'M']
    in_size, in_channels, out_dim = 16, 3, 10
    normalize = True

    key = jax.random.PRNGKey(0)
    kx, kp = jax.random.split(key)
    x = jax.random.normal(kx, (2, in_channels, in_size, in_size), jnp.float32)   # NCHW input
    params = init_params(kp, config, in_size, in_channels, out_dim)

    fwd = jax.jit(functools.partial(vgg_forward, config=config, normalize=normalize))
    out = jax.block_until_ready(fwd(x, params))
    assert out.shape == (2, out_dim)
    assert bool(jnp.all(jnp.isfinite(out)))
    print("KERNEL_OK")
</pallas_src>

<mosaic_0001>
module attributes {stable_mosaic.version = 11 : i64} {
  func.func @_conv_bn_relu_kernel(%arg0: i32, %arg1: memref<1x10x10x16xbf16, #tpu.memory_space<vmem>>, %arg2: memref<144x32xbf16, #tpu.memory_space<vmem>>, %arg3: memref<1x32xf32, #tpu.memory_space<vmem>>, %arg4: memref<1x32xf32, #tpu.memory_space<vmem>>, %arg5: memref<1x4x4x32xbf16, #tpu.memory_space<vmem>>) attributes {dimension_semantics = [#tpu.dimension_semantics<parallel>], iteration_bounds = array<i64: 2>, scalar_prefetch = 0 : i64, scratch_operands = 0 : i64, tpu.core_type = #tpu.core_type<tc>, window_params = [{transform_indices = @transform_0, window_bounds = array<i64: 1, 10, 10, 16>}, {pipeline_mode = #tpu.pipeline_mode<synchronous>, transform_indices = @transform_1, window_bounds = array<i64: 144, 32>}, {pipeline_mode = #tpu.pipeline_mode<synchronous>, transform_indices = @transform_2, window_bounds = array<i64: 1, 32>}, {pipeline_mode = #tpu.pipeline_mode<synchronous>, transform_indices = @transform_3, window_bounds = array<i64: 1, 32>}, {transform_indices = @transform_4, window_bounds = array<i64: 1, 4, 4, 32>}]} {
    %c0 = arith.constant 0 : index
    %c0_0 = arith.constant 0 : index
    %c0_1 = arith.constant 0 : index
    %c0_2 = arith.constant 0 : index
    %0 = vector.load %arg1[%c0, %c0_0, %c0_1, %c0_2] : memref<1x10x10x16xbf16, #tpu.memory_space<vmem>>, vector<1x10x10x16xbf16>
    %1 = vector.shape_cast %0 : vector<1x10x10x16xbf16> to vector<10x10x16xbf16>
    %2 = arith.extf %1 : vector<10x10x16xbf16> to vector<10x10x16xf32>
    %3 = vector.extract_strided_slice %2 {offsets = [0, 0, 0], sizes = [8, 8, 16], strides = [1, 1, 1]} : vector<10x10x16xf32> to vector<8x8x16xf32>
    %4 = vector.extract_strided_slice %2 {offsets = [0, 1, 0], sizes = [8, 8, 16], strides = [1, 1, 1]} : vector<10x10x16xf32> to vector<8x8x16xf32>
    %5 = vector.extract_strided_slice %2 {offsets = [0, 2, 0], sizes = [8, 8, 16], strides = [1, 1, 1]} : vector<10x10x16xf32> to vector<8x8x16xf32>
    %6 = vector.extract_strided_slice %2 {offsets = [1, 0, 0], sizes = [8, 8, 16], strides = [1, 1, 1]} : vector<10x10x16xf32> to vector<8x8x16xf32>
    %7 = vector.extract_strided_slice %2 {offsets = [1, 1, 0], sizes = [8, 8, 16], strides = [1, 1, 1]} : vector<10x10x16xf32> to vector<8x8x16xf32>
    %8 = vector.extract_strided_slice %2 {offsets = [1, 2, 0], sizes = [8, 8, 16], strides = [1, 1, 1]} : vector<10x10x16xf32> to vector<8x8x16xf32>
    %9 = vector.extract_strided_slice %2 {offsets = [2, 0, 0], sizes = [8, 8, 16], strides = [1, 1, 1]} : vector<10x10x16xf32> to vector<8x8x16xf32>
    %10 = vector.extract_strided_slice %2 {offsets = [2, 1, 0], sizes = [8, 8, 16], strides = [1, 1, 1]} : vector<10x10x16xf32> to vector<8x8x16xf32>
    %11 = vector.extract_strided_slice %2 {offsets = [2, 2, 0], sizes = [8, 8, 16], strides = [1, 1, 1]} : vector<10x10x16xf32> to vector<8x8x16xf32>
    %12 = tpu.concatenate %3, %4, %5, %6, %7, %8, %9, %10, %11 in 2 : vector<8x8x16xf32>, vector<8x8x16xf32>, vector<8x8x16xf32>, vector<8x8x16xf32>, vector<8x8x16xf32>, vector<8x8x16xf32>, vector<8x8x16xf32>, vector<8x8x16xf32>, vector<8x8x16xf32> -> vector<8x8x144xf32>
    %13 = vector.shape_cast %12 : vector<8x8x144xf32> to vector<64x144xf32>
    %14 = arith.truncf %13 : vector<64x144xf32> to vector<64x144xbf16>
    %c0_3 = arith.constant 0 : index
    %c0_4 = arith.constant 0 : index
    %15 = vector.load %arg2[%c0_3, %c0_4] : memref<144x32xbf16, #tpu.memory_space<vmem>>, vector<144x32xbf16>
    %cst = arith.constant dense<0.000000e+00> : vector<64x32xf32>
    %16 = tpu.matmul %14, %15, %cst {dimension_numbers = #tpu.dot_dimension_numbers<[1], [0], [0], [1], [0, 0, 1, 1], [], []>} : vector<64x144xbf16>, vector<144x32xbf16>, vector<64x32xf32> -> vector<64x32xf32>
    %c0_5 = arith.constant 0 : index
    %c0_6 = arith.constant 0 : index
    %17 = vector.load %arg3[%c0_5, %c0_6] : memref<1x32xf32, #tpu.memory_space<vmem>>, vector<1x32xf32>
    %18 = vector.shape_cast %17 : vector<1x32xf32> to vector<32xf32>
    %19 = vector.shape_cast %18 : vector<32xf32> to vector<1x32xf32>
    %20 = vector.broadcast %19 : vector<1x32xf32> to vector<64x32xf32>
    %21 = arith.mulf %16, %20 : vector<64x32xf32>
    %c0_7 = arith.constant 0 : index
    %c0_8 = arith.constant 0 : index
    %22 = vector.load %arg4[%c0_7, %c0_8] : memref<1x32xf32, #tpu.memory_space<vmem>>, vector<1x32xf32>
    %23 = vector.shape_cast %22 : vector<1x32xf32> to vector<32xf32>
    %24 = vector.shape_cast %23 : vector<32xf32> to vector<1x32xf32>
    %25 = vector.broadcast %24 : vector<1x32xf32> to vector<64x32xf32>
    %26 = arith.addf %21, %25 : vector<64x32xf32>
    %cst_9 = arith.constant 0.000000e+00 : f32
    %27 = vector.broadcast %cst_9 : f32 to vector<64x32xf32>
    %28 = arith.maximumf %26, %27 : vector<64x32xf32>
    %29 = vector.shape_cast %28 : vector<64x32xf32> to vector<4x2x8x32xf32>
    %30 = vector.extract_strided_slice %29 {offsets = [0, 0, 0, 0], sizes = [4, 1, 8, 32], strides = [1, 1, 1, 1]} : vector<4x2x8x32xf32> to vector<4x1x8x32xf32>
    %31 = vector.shape_cast %30 : vector<4x1x8x32xf32> to vector<4x8x32xf32>
    %32 = vector.extract_strided_slice %29 {offsets = [0, 1, 0, 0], sizes = [4, 1, 8, 32], strides = [1, 1, 1, 1]} : vector<4x2x8x32xf32> to vector<4x1x8x32xf32>
    %33 = vector.shape_cast %32 : vector<4x1x8x32xf32> to vector<4x8x32xf32>
    %34 = arith.maximumf %31, %33 : vector<4x8x32xf32>
    %35 = vector.shape_cast %34 : vector<4x8x32xf32> to vector<4x4x2x32xf32>
    %36 = vector.extract_strided_slice %35 {offsets = [0, 0, 0, 0], sizes = [4, 4, 1, 32], strides = [1, 1, 1, 1]} : vector<4x4x2x32xf32> to vector<4x4x1x32xf32>
    %37 = vector.shape_cast %36 : vector<4x4x1x32xf32> to vector<4x4x32xf32>
    %38 = vector.extract_strided_slice %35 {offsets = [0, 0, 1, 0], sizes = [4, 4, 1, 32], strides = [1, 1, 1, 1]} : vector<4x4x2x32xf32> to vector<4x4x1x32xf32>
    %39 = vector.shape_cast %38 : vector<4x4x1x32xf32> to vector<4x4x32xf32>
    %40 = arith.maximumf %37, %39 : vector<4x4x32xf32>
    %41 = vector.shape_cast %40 : vector<4x4x32xf32> to vector<1x4x4x32xf32>
    %42 = arith.truncf %41 : vector<1x4x4x32xf32> to vector<1x4x4x32xbf16>
    %c0_10 = arith.constant 0 : index
    %c0_11 = arith.constant 0 : index
    %c0_12 = arith.constant 0 : index
    %c0_13 = arith.constant 0 : index
    %43 = vector.load %arg5[%c0_10, %c0_11, %c0_12, %c0_13] : memref<1x4x4x32xbf16, #tpu.memory_space<vmem>>, vector<1x4x4x32xbf16>
    tpu.vector_store %arg5[%c0_10, %c0_11, %c0_12, %c0_13], %42 {strides = array<i32>} : memref<1x4x4x32xbf16, #tpu.memory_space<vmem>>, vector<1x4x4x32xbf16>,
    return
  }
  func.func @transform_0(%arg0: i32) -> (i32, i32, i32, i32) {
    %c0_i32 = arith.constant 0 : i32
    %c0_i32_0 = arith.constant 0 : i32
    %c0_i32_1 = arith.constant 0 : i32
    %c0_i32_2 = arith.constant 0 : i32
    return %arg0, %c0_i32, %c0_i32_0, %c0_i32_1 : i32, i32, i32, i32
  }
  func.func @transform_1(%arg0: i32) -> (i32, i32) {
    %c0_i32 = arith.constant 0 : i32
    %c0_i32_0 = arith.constant 0 : i32
    %c0_i32_1 = arith.constant 0 : i32
    return %c0_i32, %c0_i32_0 : i32, i32
  }
  func.func @transform_2(%arg0: i32) -> (i32, i32) {
    %c0_i32 = arith.constant 0 : i32
    %c0_i32_0 = arith.constant 0 : i32
    %c0_i32_1 = arith.constant 0 : i32
    return %c0_i32, %c0_i32_0 : i32, i32
  }
  func.func @transform_3(%arg0: i32) -> (i32, i32) {
    %c0_i32 = arith.constant 0 : i32
    %c0_i32_0 = arith.constant 0 : i32
    %c0_i32_1 = arith.constant 0 : i32
    return %c0_i32, %c0_i32_0 : i32, i32
  }
  func.func @transform_4(%arg0: i32) -> (i32, i32, i32, i32) {
    %c0_i32 = arith.constant 0 : i32
    %c0_i32_0 = arith.constant 0 : i32
    %c0_i32_1 = arith.constant 0 : i32
    %c0_i32_2 = arith.constant 0 : i32
    return %arg0, %c0_i32, %c0_i32_0, %c0_i32_1 : i32, i32, i32, i32
  }
}

module attributes {stable_mosaic.version = 11 : i64} {
  func.func @_conv_bn_relu_kernel(%arg0: i32, %arg1: memref<1x18x18x3xbf16, #tpu.memory_space<vmem>>, %arg2: memref<27x16xbf16, #tpu.memory_space<vmem>>, %arg3: memref<1x16xf32, #tpu.memory_space<vmem>>, %arg4: memref<1x16xf32, #tpu.memory_space<vmem>>, %arg5: memref<1x8x8x16xbf16, #tpu.memory_space<vmem>>) attributes {dimension_semantics = [#tpu.dimension_semantics<parallel>], iteration_bounds = array<i64: 2>, scalar_prefetch = 0 : i64, scratch_operands = 0 : i64, tpu.core_type = #tpu.core_type<tc>, window_params = [{transform_indices = @transform_0, window_bounds = array<i64: 1, 18, 18, 3>}, {pipeline_mode = #tpu.pipeline_mode<synchronous>, transform_indices = @transform_1, window_bounds = array<i64: 27, 16>}, {pipeline_mode = #tpu.pipeline_mode<synchronous>, transform_indices = @transform_2, window_bounds = array<i64: 1, 16>}, {pipeline_mode = #tpu.pipeline_mode<synchronous>, transform_indices = @transform_3, window_bounds = array<i64: 1, 16>}, {transform_indices = @transform_4, window_bounds = array<i64: 1, 8, 8, 16>}]} {
    %c0 = arith.constant 0 : index
    %c0_0 = arith.constant 0 : index
    %c0_1 = arith.constant 0 : index
    %c0_2 = arith.constant 0 : index
    %0 = vector.load %arg1[%c0, %c0_0, %c0_1, %c0_2] : memref<1x18x18x3xbf16, #tpu.memory_space<vmem>>, vector<1x18x18x3xbf16>
    %1 = vector.shape_cast %0 : vector<1x18x18x3xbf16> to vector<18x18x3xbf16>
    %2 = arith.extf %1 : vector<18x18x3xbf16> to vector<18x18x3xf32>
    %3 = vector.extract_strided_slice %2 {offsets = [0, 0, 0], sizes = [16, 16, 3], strides = [1, 1, 1]} : vector<18x18x3xf32> to vector<16x16x3xf32>
    %4 = vector.extract_strided_slice %2 {offsets = [0, 1, 0], sizes = [16, 16, 3], strides = [1, 1, 1]} : vector<18x18x3xf32> to vector<16x16x3xf32>
    %5 = vector.extract_strided_slice %2 {offsets = [0, 2, 0], sizes = [16, 16, 3], strides = [1, 1, 1]} : vector<18x18x3xf32> to vector<16x16x3xf32>
    %6 = vector.extract_strided_slice %2 {offsets = [1, 0, 0], sizes = [16, 16, 3], strides = [1, 1, 1]} : vector<18x18x3xf32> to vector<16x16x3xf32>
    %7 = vector.extract_strided_slice %2 {offsets = [1, 1, 0], sizes = [16, 16, 3], strides = [1, 1, 1]} : vector<18x18x3xf32> to vector<16x16x3xf32>
    %8 = vector.extract_strided_slice %2 {offsets = [1, 2, 0], sizes = [16, 16, 3], strides = [1, 1, 1]} : vector<18x18x3xf32> to vector<16x16x3xf32>
    %9 = vector.extract_strided_slice %2 {offsets = [2, 0, 0], sizes = [16, 16, 3], strides = [1, 1, 1]} : vector<18x18x3xf32> to vector<16x16x3xf32>
    %10 = vector.extract_strided_slice %2 {offsets = [2, 1, 0], sizes = [16, 16, 3], strides = [1, 1, 1]} : vector<18x18x3xf32> to vector<16x16x3xf32>
    %11 = vector.extract_strided_slice %2 {offsets = [2, 2, 0], sizes = [16, 16, 3], strides = [1, 1, 1]} : vector<18x18x3xf32> to vector<16x16x3xf32>
    %12 = tpu.concatenate %3, %4, %5, %6, %7, %8, %9, %10, %11 in 2 : vector<16x16x3xf32>, vector<16x16x3xf32>, vector<16x16x3xf32>, vector<16x16x3xf32>, vector<16x16x3xf32>, vector<16x16x3xf32>, vector<16x16x3xf32>, vector<16x16x3xf32>, vector<16x16x3xf32> -> vector<16x16x27xf32>
    %13 = vector.shape_cast %12 : vector<16x16x27xf32> to vector<256x27xf32>
    %14 = arith.truncf %13 : vector<256x27xf32> to vector<256x27xbf16>
    %c0_3 = arith.constant 0 : index
    %c0_4 = arith.constant 0 : index
    %15 = vector.load %arg2[%c0_3, %c0_4] : memref<27x16xbf16, #tpu.memory_space<vmem>>, vector<27x16xbf16>
    %cst = arith.constant dense<0.000000e+00> : vector<256x16xf32>
    %16 = tpu.matmul %14, %15, %cst {dimension_numbers = #tpu.dot_dimension_numbers<[1], [0], [0], [1], [0, 0, 1, 1], [], []>} : vector<256x27xbf16>, vector<27x16xbf16>, vector<256x16xf32> -> vector<256x16xf32>
    %c0_5 = arith.constant 0 : index
    %c0_6 = arith.constant 0 : index
    %17 = vector.load %arg3[%c0_5, %c0_6] : memref<1x16xf32, #tpu.memory_space<vmem>>, vector<1x16xf32>
    %18 = vector.shape_cast %17 : vector<1x16xf32> to vector<16xf32>
    %19 = vector.shape_cast %18 : vector<16xf32> to vector<1x16xf32>
    %20 = vector.broadcast %19 : vector<1x16xf32> to vector<256x16xf32>
    %21 = arith.mulf %16, %20 : vector<256x16xf32>
    %c0_7 = arith.constant 0 : index
    %c0_8 = arith.constant 0 : index
    %22 = vector.load %arg4[%c0_7, %c0_8] : memref<1x16xf32, #tpu.memory_space<vmem>>, vector<1x16xf32>
    %23 = vector.shape_cast %22 : vector<1x16xf32> to vector<16xf32>
    %24 = vector.shape_cast %23 : vector<16xf32> to vector<1x16xf32>
    %25 = vector.broadcast %24 : vector<1x16xf32> to vector<256x16xf32>
    %26 = arith.addf %21, %25 : vector<256x16xf32>
    %cst_9 = arith.constant 0.000000e+00 : f32
    %27 = vector.broadcast %cst_9 : f32 to vector<256x16xf32>
    %28 = arith.maximumf %26, %27 : vector<256x16xf32>
    %29 = vector.shape_cast %28 : vector<256x16xf32> to vector<8x2x16x16xf32>
    %30 = vector.extract_strided_slice %29 {offsets = [0, 0, 0, 0], sizes = [8, 1, 16, 16], strides = [1, 1, 1, 1]} : vector<8x2x16x16xf32> to vector<8x1x16x16xf32>
    %31 = vector.shape_cast %30 : vector<8x1x16x16xf32> to vector<8x16x16xf32>
    %32 = vector.extract_strided_slice %29 {offsets = [0, 1, 0, 0], sizes = [8, 1, 16, 16], strides = [1, 1, 1, 1]} : vector<8x2x16x16xf32> to vector<8x1x16x16xf32>
    %33 = vector.shape_cast %32 : vector<8x1x16x16xf32> to vector<8x16x16xf32>
    %34 = arith.maximumf %31, %33 : vector<8x16x16xf32>
    %35 = vector.shape_cast %34 : vector<8x16x16xf32> to vector<8x8x2x16xf32>
    %36 = vector.extract_strided_slice %35 {offsets = [0, 0, 0, 0], sizes = [8, 8, 1, 16], strides = [1, 1, 1, 1]} : vector<8x8x2x16xf32> to vector<8x8x1x16xf32>
    %37 = vector.shape_cast %36 : vector<8x8x1x16xf32> to vector<8x8x16xf32>
    %38 = vector.extract_strided_slice %35 {offsets = [0, 0, 1, 0], sizes = [8, 8, 1, 16], strides = [1, 1, 1, 1]} : vector<8x8x2x16xf32> to vector<8x8x1x16xf32>
    %39 = vector.shape_cast %38 : vector<8x8x1x16xf32> to vector<8x8x16xf32>
    %40 = arith.maximumf %37, %39 : vector<8x8x16xf32>
    %41 = vector.shape_cast %40 : vector<8x8x16xf32> to vector<1x8x8x16xf32>
    %42 = arith.truncf %41 : vector<1x8x8x16xf32> to vector<1x8x8x16xbf16>
    %c0_10 = arith.constant 0 : index
    %c0_11 = arith.constant 0 : index
    %c0_12 = arith.constant 0 : index
    %c0_13 = arith.constant 0 : index
    %43 = vector.load %arg5[%c0_10, %c0_11, %c0_12, %c0_13] : memref<1x8x8x16xbf16, #tpu.memory_space<vmem>>, vector<1x8x8x16xbf16>
    tpu.vector_store %arg5[%c0_10, %c0_11, %c0_12, %c0_13], %42 {strides = array<i32>} : memref<1x8x8x16xbf16, #tpu.memory_space<vmem>>, vector<1x8x8x16xbf16>,
    return
  }
  func.func @transform_0(%arg0: i32) -> (i32, i32, i32, i32) {
    %c0_i32 = arith.constant 0 : i32
    %c0_i32_0 = arith.constant 0 : i32
    %c0_i32_1 = arith.constant 0 : i32
    %c0_i32_2 = arith.constant 0 : i32
    return %arg0, %c0_i32, %c0_i32_0, %c0_i32_1 : i32, i32, i32, i32
  }
  func.func @transform_1(%arg0: i32) -> (i32, i32) {
    %c0_i32 = arith.constant 0 : i32
    %c0_i32_0 = arith.constant 0 : i32
    %c0_i32_1 = arith.constant 0 : i32
    return %c0_i32, %c0_i32_0 : i32, i32
  }
  func.func @transform_2(%arg0: i32) -> (i32, i32) {
    %c0_i32 = arith.constant 0 : i32
    %c0_i32_0 = arith.constant 0 : i32
    %c0_i32_1 = arith.constant 0 : i32
    return %c0_i32, %c0_i32_0 : i32, i32
  }
  func.func @transform_3(%arg0: i32) -> (i32, i32) {
    %c0_i32 = arith.constant 0 : i32
    %c0_i32_0 = arith.constant 0 : i32
    %c0_i32_1 = arith.constant 0 : i32
    return %c0_i32, %c0_i32_0 : i32, i32
  }
  func.func @transform_4(%arg0: i32) -> (i32, i32, i32, i32) {
    %c0_i32 = arith.constant 0 : i32
    %c0_i32_0 = arith.constant 0 : i32
    %c0_i32_1 = arith.constant 0 : i32
    %c0_i32_2 = arith.constant 0 : i32
    return %arg0, %c0_i32, %c0_i32_0, %c0_i32_1 : i32, i32, i32, i32
  }
}

module attributes {stable_mosaic.version = 11 : i64} {
  func.func @_conv_bn_relu_kernel(%arg0: i32, %arg1: memref<1x6x6x32xbf16, #tpu.memory_space<vmem>>, %arg2: memref<288x256xbf16, #tpu.memory_space<vmem>>, %arg3: memref<1x256xf32, #tpu.memory_space<vmem>>, %arg4: memref<1x256xf32, #tpu.memory_space<vmem>>, %arg5: memref<1x2x2x256xbf16, #tpu.memory_space<vmem>>) attributes {dimension_semantics = [#tpu.dimension_semantics<parallel>], iteration_bounds = array<i64: 2>, scalar_prefetch = 0 : i64, scratch_operands = 0 : i64, tpu.core_type = #tpu.core_type<tc>, window_params = [{transform_indices = @transform_0, window_bounds = array<i64: 1, 6, 6, 32>}, {pipeline_mode = #tpu.pipeline_mode<synchronous>, transform_indices = @transform_1, window_bounds = array<i64: 288, 256>}, {pipeline_mode = #tpu.pipeline_mode<synchronous>, transform_indices = @transform_2, window_bounds = array<i64: 1, 256>}, {pipeline_mode = #tpu.pipeline_mode<synchronous>, transform_indices = @transform_3, window_bounds = array<i64: 1, 256>}, {transform_indices = @transform_4, window_bounds = array<i64: 1, 2, 2, 256>}]} {
    %c0 = arith.constant 0 : index
    %c0_0 = arith.constant 0 : index
    %c0_1 = arith.constant 0 : index
    %c0_2 = arith.constant 0 : index
    %0 = vector.load %arg1[%c0, %c0_0, %c0_1, %c0_2] : memref<1x6x6x32xbf16, #tpu.memory_space<vmem>>, vector<1x6x6x32xbf16>
    %1 = vector.shape_cast %0 : vector<1x6x6x32xbf16> to vector<6x6x32xbf16>
    %2 = arith.extf %1 : vector<6x6x32xbf16> to vector<6x6x32xf32>
    %3 = vector.extract_strided_slice %2 {offsets = [0, 0, 0], sizes = [4, 4, 32], strides = [1, 1, 1]} : vector<6x6x32xf32> to vector<4x4x32xf32>
    %4 = vector.extract_strided_slice %2 {offsets = [0, 1, 0], sizes = [4, 4, 32], strides = [1, 1, 1]} : vector<6x6x32xf32> to vector<4x4x32xf32>
    %5 = vector.extract_strided_slice %2 {offsets = [0, 2, 0], sizes = [4, 4, 32], strides = [1, 1, 1]} : vector<6x6x32xf32> to vector<4x4x32xf32>
    %6 = vector.extract_strided_slice %2 {offsets = [1, 0, 0], sizes = [4, 4, 32], strides = [1, 1, 1]} : vector<6x6x32xf32> to vector<4x4x32xf32>
    %7 = vector.extract_strided_slice %2 {offsets = [1, 1, 0], sizes = [4, 4, 32], strides = [1, 1, 1]} : vector<6x6x32xf32> to vector<4x4x32xf32>
    %8 = vector.extract_strided_slice %2 {offsets = [1, 2, 0], sizes = [4, 4, 32], strides = [1, 1, 1]} : vector<6x6x32xf32> to vector<4x4x32xf32>
    %9 = vector.extract_strided_slice %2 {offsets = [2, 0, 0], sizes = [4, 4, 32], strides = [1, 1, 1]} : vector<6x6x32xf32> to vector<4x4x32xf32>
    %10 = vector.extract_strided_slice %2 {offsets = [2, 1, 0], sizes = [4, 4, 32], strides = [1, 1, 1]} : vector<6x6x32xf32> to vector<4x4x32xf32>
    %11 = vector.extract_strided_slice %2 {offsets = [2, 2, 0], sizes = [4, 4, 32], strides = [1, 1, 1]} : vector<6x6x32xf32> to vector<4x4x32xf32>
    %12 = tpu.concatenate %3, %4, %5, %6, %7, %8, %9, %10, %11 in 2 : vector<4x4x32xf32>, vector<4x4x32xf32>, vector<4x4x32xf32>, vector<4x4x32xf32>, vector<4x4x32xf32>, vector<4x4x32xf32>, vector<4x4x32xf32>, vector<4x4x32xf32>, vector<4x4x32xf32> -> vector<4x4x288xf32>
    %13 = vector.shape_cast %12 : vector<4x4x288xf32> to vector<16x288xf32>
    %14 = arith.truncf %13 : vector<16x288xf32> to vector<16x288xbf16>
    %c0_3 = arith.constant 0 : index
    %c0_4 = arith.constant 0 : index
    %15 = vector.load %arg2[%c0_3, %c0_4] : memref<288x256xbf16, #tpu.memory_space<vmem>>, vector<288x256xbf16>
    %cst = arith.constant dense<0.000000e+00> : vector<16x256xf32>
    %16 = tpu.matmul %14, %15, %cst {dimension_numbers = #tpu.dot_dimension_numbers<[1], [0], [0], [1], [0, 0, 1, 1], [], []>} : vector<16x288xbf16>, vector<288x256xbf16>, vector<16x256xf32> -> vector<16x256xf32>
    %c0_5 = arith.constant 0 : index
    %c0_6 = arith.constant 0 : index
    %17 = vector.load %arg3[%c0_5, %c0_6] : memref<1x256xf32, #tpu.memory_space<vmem>>, vector<1x256xf32>
    %18 = vector.shape_cast %17 : vector<1x256xf32> to vector<256xf32>
    %19 = vector.shape_cast %18 : vector<256xf32> to vector<1x256xf32>
    %20 = vector.broadcast %19 : vector<1x256xf32> to vector<16x256xf32>
    %21 = arith.mulf %16, %20 : vector<16x256xf32>
    %c0_7 = arith.constant 0 : index
    %c0_8 = arith.constant 0 : index
    %22 = vector.load %arg4[%c0_7, %c0_8] : memref<1x256xf32, #tpu.memory_space<vmem>>, vector<1x256xf32>
    %23 = vector.shape_cast %22 : vector<1x256xf32> to vector<256xf32>
    %24 = vector.shape_cast %23 : vector<256xf32> to vector<1x256xf32>
    %25 = vector.broadcast %24 : vector<1x256xf32> to vector<16x256xf32>
    %26 = arith.addf %21, %25 : vector<16x256xf32>
    %cst_9 = arith.constant 0.000000e+00 : f32
    %27 = vector.broadcast %cst_9 : f32 to vector<16x256xf32>
    %28 = arith.maximumf %26, %27 : vector<16x256xf32>
    %29 = vector.shape_cast %28 : vector<16x256xf32> to vector<2x2x4x256xf32>
    %30 = vector.extract_strided_slice %29 {offsets = [0, 0, 0, 0], sizes = [2, 1, 4, 256], strides = [1, 1, 1, 1]} : vector<2x2x4x256xf32> to vector<2x1x4x256xf32>
    %31 = vector.shape_cast %30 : vector<2x1x4x256xf32> to vector<2x4x256xf32>
    %32 = vector.extract_strided_slice %29 {offsets = [0, 1, 0, 0], sizes = [2, 1, 4, 256], strides = [1, 1, 1, 1]} : vector<2x2x4x256xf32> to vector<2x1x4x256xf32>
    %33 = vector.shape_cast %32 : vector<2x1x4x256xf32> to vector<2x4x256xf32>
    %34 = arith.maximumf %31, %33 : vector<2x4x256xf32>
    %35 = vector.shape_cast %34 : vector<2x4x256xf32> to vector<2x2x2x256xf32>
    %36 = vector.extract_strided_slice %35 {offsets = [0, 0, 0, 0], sizes = [2, 2, 1, 256], strides = [1, 1, 1, 1]} : vector<2x2x2x256xf32> to vector<2x2x1x256xf32>
    %37 = vector.shape_cast %36 : vector<2x2x1x256xf32> to vector<2x2x256xf32>
    %38 = vector.extract_strided_slice %35 {offsets = [0, 0, 1, 0], sizes = [2, 2, 1, 256], strides = [1, 1, 1, 1]} : vector<2x2x2x256xf32> to vector<2x2x1x256xf32>
    %39 = vector.shape_cast %38 : vector<2x2x1x256xf32> to vector<2x2x256xf32>
    %40 = arith.maximumf %37, %39 : vector<2x2x256xf32>
    %41 = vector.shape_cast %40 : vector<2x2x256xf32> to vector<1x2x2x256xf32>
    %42 = arith.truncf %41 : vector<1x2x2x256xf32> to vector<1x2x2x256xbf16>
    %c0_10 = arith.constant 0 : index
    %c0_11 = arith.constant 0 : index
    %c0_12 = arith.constant 0 : index
    %c0_13 = arith.constant 0 : index
    %43 = vector.load %arg5[%c0_10, %c0_11, %c0_12, %c0_13] : memref<1x2x2x256xbf16, #tpu.memory_space<vmem>>, vector<1x2x2x256xbf16>
    tpu.vector_store %arg5[%c0_10, %c0_11, %c0_12, %c0_13], %42 {strides = array<i32>} : memref<1x2x2x256xbf16, #tpu.memory_space<vmem>>, vector<1x2x2x256xbf16>,
    return
  }
  func.func @transform_0(%arg0: i32) -> (i32, i32, i32, i32) {
    %c0_i32 = arith.constant 0 : i32
    %c0_i32_0 = arith.constant 0 : i32
    %c0_i32_1 = arith.constant 0 : i32
    %c0_i32_2 = arith.constant 0 : i32
    return %arg0, %c0_i32, %c0_i32_0, %c0_i32_1 : i32, i32, i32, i32
  }
  func.func @transform_1(%arg0: i32) -> (i32, i32) {
    %c0_i32 = arith.constant 0 : i32
    %c0_i32_0 = arith.constant 0 : i32
    %c0_i32_1 = arith.constant 0 : i32
    return %c0_i32, %c0_i32_0 : i32, i32
  }
  func.func @transform_2(%arg0: i32) -> (i32, i32) {
    %c0_i32 = arith.constant 0 : i32
    %c0_i32_0 = arith.constant 0 : i32
    %c0_i32_1 = arith.constant 0 : i32
    return %c0_i32, %c0_i32_0 : i32, i32
  }
  func.func @transform_3(%arg0: i32) -> (i32, i32) {
    %c0_i32 = arith.constant 0 : i32
    %c0_i32_0 = arith.constant 0 : i32
    %c0_i32_1 = arith.constant 0 : i32
    return %c0_i32, %c0_i32_0 : i32, i32
  }
  func.func @transform_4(%arg0: i32) -> (i32, i32, i32, i32) {
    %c0_i32 = arith.constant 0 : i32
    %c0_i32_0 = arith.constant 0 : i32
    %c0_i32_1 = arith.constant 0 : i32
    %c0_i32_2 = arith.constant 0 : i32
    return %arg0, %c0_i32, %c0_i32_0, %c0_i32_1 : i32, i32, i32, i32
  }
}

module attributes {stable_mosaic.version = 11 : i64} {
  func.func @_linear_kernel(%arg0: i32, %arg1: memref<2x1024xbf16, #tpu.memory_space<vmem>>, %arg2: memref<1024x10xbf16, #tpu.memory_space<vmem>>, %arg3: memref<1x10xf32, #tpu.memory_space<vmem>>, %arg4: memref<2x10xf32, #tpu.memory_space<vmem>>) attributes {dimension_semantics = [#tpu.dimension_semantics<arbitrary>], iteration_bounds = array<i64: 1>, scalar_prefetch = 0 : i64, scratch_operands = 0 : i64, tpu.core_type = #tpu.core_type<tc>, window_params = [{pipeline_mode = #tpu.pipeline_mode<synchronous>, transform_indices = @transform_0, window_bounds = array<i64: 2, 1024>}, {pipeline_mode = #tpu.pipeline_mode<synchronous>, transform_indices = @transform_1, window_bounds = array<i64: 1024, 10>}, {pipeline_mode = #tpu.pipeline_mode<synchronous>, transform_indices = @transform_2, window_bounds = array<i64: 1, 10>}, {pipeline_mode = #tpu.pipeline_mode<synchronous>, transform_indices = @transform_3, window_bounds = array<i64: 2, 10>}]} {
    %c0 = arith.constant 0 : index
    %c0_0 = arith.constant 0 : index
    %0 = vector.load %arg1[%c0, %c0_0] : memref<2x1024xbf16, #tpu.memory_space<vmem>>, vector<2x1024xbf16>
    %c0_1 = arith.constant 0 : index
    %c0_2 = arith.constant 0 : index
    %1 = vector.load %arg2[%c0_1, %c0_2] : memref<1024x10xbf16, #tpu.memory_space<vmem>>, vector<1024x10xbf16>
    %cst = arith.constant dense<0.000000e+00> : vector<2x10xf32>
    %2 = tpu.matmul %0, %1, %cst {dimension_numbers = #tpu.dot_dimension_numbers<[1], [0], [0], [1], [0, 0, 1, 1], [], []>} : vector<2x1024xbf16>, vector<1024x10xbf16>, vector<2x10xf32> -> vector<2x10xf32>
    %c0_3 = arith.constant 0 : index
    %c0_4 = arith.constant 0 : index
    %3 = vector.load %arg3[%c0_3, %c0_4] : memref<1x10xf32, #tpu.memory_space<vmem>>, vector<1x10xf32>
    %4 = vector.broadcast %3 : vector<1x10xf32> to vector<2x10xf32>
    %5 = arith.addf %2, %4 : vector<2x10xf32>
    %6 = arith.mulf %5, %5 : vector<2x10xf32>
    %cst_5 = arith.constant dense<0.000000e+00> : vector<2xf32>
    %7 = vector.multi_reduction <add>, %6, %cst_5 [1] : vector<2x10xf32> to vector<2xf32>
    %8 = vector.shape_cast %7 : vector<2xf32> to vector<2x1xf32>
    %cst_6 = arith.constant 1.000000e-24 : f32
    %9 = vector.broadcast %cst_6 : f32 to vector<2x1xf32>
    %10 = arith.maximumf %8, %9 : vector<2x1xf32>
    %11 = math.rsqrt %10 : vector<2x1xf32>
    %12 = vector.broadcast %11 : vector<2x1xf32> to vector<2x10xf32>
    %13 = arith.mulf %5, %12 : vector<2x10xf32>
    %c0_7 = arith.constant 0 : index
    %c0_8 = arith.constant 0 : index
    %14 = vector.load %arg4[%c0_7, %c0_8] : memref<2x10xf32, #tpu.memory_space<vmem>>, vector<2x10xf32>
    tpu.vector_store %arg4[%c0_7, %c0_8], %13 {strides = array<i32>} : memref<2x10xf32, #tpu.memory_space<vmem>>, vector<2x10xf32>,
    return
  }
  func.func @transform_0(%arg0: i32) -> (i32, i32) {
    %c0_i32 = arith.constant 0 : i32
    %c0_i32_0 = arith.constant 0 : i32
    %c0_i32_1 = arith.constant 0 : i32
    return %c0_i32, %c0_i32_0 : i32, i32
  }
  func.func @transform_1(%arg0: i32) -> (i32, i32) {
    %c0_i32 = arith.constant 0 : i32
    %c0_i32_0 = arith.constant 0 : i32
    %c0_i32_1 = arith.constant 0 : i32
    return %c0_i32, %c0_i32_0 : i32, i32
  }
  func.func @transform_2(%arg0: i32) -> (i32, i32) {
    %c0_i32 = arith.constant 0 : i32
    %c0_i32_0 = arith.constant 0 : i32
    %c0_i32_1 = arith.constant 0 : i32
    return %c0_i32, %c0_i32_0 : i32, i32
  }
  func.func @transform_3(%arg0: i32) -> (i32, i32) {
    %c0_i32 = arith.constant 0 : i32
    %c0_i32_0 = arith.constant 0 : i32
    %c0_i32_1 = arith.constant 0 : i32
    return %c0_i32, %c0_i32_0 : i32, i32
  }
}

</mosaic_0001>

<bundles_post_ra>
// kernel: vgg_forward.6
= control target key start
LH: loop header
LB: loop body
LE: loop exit
PB: predicated region body
PF: predicated region fallthrough
CT: control target
= control target key end

     0   :  { %s1199_s15 = smov 0   ;;  %s1557_s0 = inlined_call_operand.vmem [shape: bf16[2,6,6,32], index: 0, kind: input, shape index: {}]   ;;  %s1558_s1 = inlined_call_operand.vmem [shape: bf16[288,256], index: 1, kind: input, shape index: {}]   ;;  %s1559_s2 = inlined_call_operand.vmem [shape: f32[1,256], index: 2, kind: input, shape index: {}]   ;;  %s1560_s3 = inlined_call_operand.vmem [shape: f32[1,256], index: 3, kind: input, shape index: {}]   ;;  %s1561_s4 = inlined_call_operand.vmem [shape: bf16[2,2,2,256], index: 4, kind: output, shape index: {}]  }
   0x1 LB: > { %s896_s16 = sadd.s32 4294967295, %s1169_s15   ;;  %p900_p0 = scmp.ge.s32.totalorder %s1169_s15, 1  ;;  %s1169_s15 = sphi %s1199_s15, %s14_s15  }
   0x2   : > { %p162_p1 = scmp.lt.s32.totalorder %s1169_s15, 3 }
   0x4   : > { %p163_p2 = pnand %p900_p0, %p162_p1 }
   0x5   : > { %p187_p3 = scmp.lt.s32.totalorder (!%p163_p2), %s896_s16, 1  ;;  %s1171_s21 = smov (!%p163_p2), 64  }
   0x6   : > { %166 = sbr.rel (%p163_p2) target bundleno = 377 (0x179), region = 36  ;;  %s1172_s22 = smov (!%p163_p2), 32  }
   0x7   : > { %s1173_s23 = smov (!%p163_p2), 96  }
   0xb   : > { %s1563_s16 = smov (!%p187_p3, %s896_s16), 1  ;;  %v1041_v35 = vld [vmem:[%s1558_s1 + $0x110] sm:$0xf]  ;;  %v1090_v36 = vld [vmem:[%s1558_s1 + $0x114] sm:$0xf0]  ;;  %vm303_vm0 = vcmask 261120  }
   0xc   : > { %s1091_s17 = smul.u32 24, %s1563_s16  ;;  %v1042_v37 = vor.u32 %v1090_v36, %v1041_v35  ;;  %v1033_v38 = vld [vmem:[%s1558_s1 + $0x100] sm:$0xf]  ;;  %v1088_v39 = vld [vmem:[%s1558_s1 + $0x104] sm:$0xf0]  ;;  %vm308_vm1 = vcmask 523264  }
   0xd   : > { %v1034_v40 = vor.u32 %v1088_v39, %v1033_v38  ;;  %v961_v41 = vld [vmem:[%s1558_s1 + $0x70] sm:$0xf]  ;;  %v1070_v42 = vld [vmem:[%s1558_s1 + $0x74] sm:$0xf0]  ;;  %v1069_v46 = vld [vmem:[%s1558_s1 + $0x74] sm:$0xf] }
   0xe   : > { %s191_s20 = scalar_lea.vmem %s1557_s0, %s1091_s17  ;;  %630 = vmatpush.bf16.msra.mxu2 %v1042_v37  ;;  %v1025_v43 = vld [vmem:[%s1558_s1 + $0xf0] sm:$0xf]  ;;  %v962_v44 = vor.u32 %v1070_v42, %v961_v41  ;;  %v1086_v45 = vld [vmem:[%s1558_s1 + $0xf4] sm:$0xf0]  ;;  %v963_v47 = vld [vmem:[%s1558_s1 + $0x78] sm:$0xf0] }
   0xf   : > { %v199_v0 = vld [vmem:[%s191_s20 + $0x8] sm:$0x7]  ;;  %v200_v1 = vld [vmem:[%s191_s20 + $0xc] sm:$0x7]  ;;  %v198_v2 = vld [vmem:[%s191_s20 + $0x4] sm:$0x7]  ;;  %v1026_v48 = vor.u32 %v1086_v45, %v1025_v43  ;;  %v966_v49 = vor.u32 %v1069_v46, %v963_v47 }
  0x10   : > { %v1213_v3 = vunpack.c.l.bf16 %v199_v0  ;;  %v1215_v4 = vunpack.c.l.bf16 %v200_v1  ;;  %v1217_v5 = vunpack.c.l.bf16 %v198_v2  ;;  %v201_v6 = vld [vmem:[%s191_s20 + $0x10] sm:$0x7]  ;;  %v202_v7 = vld [vmem:[%s191_s20 + $0x14] sm:$0x7]  ;;  %v197_v8 = vld [vmem:[%s191_s20] sm:$0x7]  ;;  %596 = vmatpush.bf16.msra.mxu0 %v962_v44 }
  0x11   : > { %v1219_v9 = vunpack.c.l.bf16 %v201_v6  ;;  %v208_v10 = vunpack.c.l.bf16 %v202_v7  ;;  %v1221_v11 = vunpack.c.l.bf16 %v197_v8  ;;  %v1085_v50 = vld [vmem:[%s1558_s1 + $0xf4] sm:$0xf]  ;;  %v1027_v51 = vld [vmem:[%s1558_s1 + $0xf8] sm:$0xf0]  ;;  %610 = vmatpush.bf16.msra.mxu1 %v1026_v48  ;;  %638 = vmatpush.bf16.msra.mxu3 %v966_v49  ;;  %v953_v53 = vld [vmem:[%s1558_s1 + $0x60] sm:$0xf] }
  0x12   : > { %v1103_v12 = vpack.i.bf16 %v1215_v4, %v1213_v3  ;;  %v230_v13 = vrot.slane %v1217_v5, 2  ;;  %v231_v14 = vrot.slane %v1213_v3, 2  ;;  %v214_v19 = vrot.slane %v1217_v5, 1  ;;  %631 = vmatpush.bf16.msra.mxu2 %v1034_v40  ;;  %v1068_v54 = vld [vmem:[%s1558_s1 + $0x64] sm:$0xf0]  ;;  %s902_s28 = sshll.u32 %s1563_s16, 2 }
  0x13   : > { %v302_v15 = vrot.slane %v208_v10, 2  ;;  %v213_v16 = vrot.slane %v1221_v11, 1  ;;  %v263_v18 = vrot.slane %v1219_v9, 2  ;;  %v232_v20 = vrot.slane %v1215_v4, 2  ;;  %v1017_v55 = vld [vmem:[%s1558_s1 + $0xe0] sm:$0xf]  ;;  %s195_s5 = scalar_lea.vmem %s1561_s4, %s902_s28 }
  0x14   : > { %1104 = vrot.lane.b32.xlu1 %v1103_v12, %s1171_s21  ;;  %351 = vst [vmem:[#allocation1 + $0x10] ss:$2 sm:$0xff] %v231_v14  ;;  %v1113_v17 = vpack.i.bf16 %v231_v14, %v230_v13  ;;  %v1108_v22 = vpack.i.bf16 %v208_v10, %v1219_v9  ;;  %v215_v24 = vrot.slane %v1213_v3, 1  ;;  %v216_v25 = vrot.slane %v1215_v4, 1  ;;  %v1084_v57 = vld [vmem:[%s1558_s1 + $0xe4] sm:$0xf0] }
  0x15   : > { %361 = vst [vmem:[#allocation1 + $0x31] ss:$2 sm:$0xff] %v302_v15  ;;  %v1123_v21 = vpack.i.bf16 %v214_v19, %v213_v16  ;;  %v1118_v23 = vpack.i.bf16 %v263_v18, %v232_v20  ;;  %v258_v26 = vrot.slane %v1219_v9, 1  ;;  %v289_v27 = vrot.slane %v208_v10, 1  ;;  %v1067_v58 = vld [vmem:[%s1558_s1 + $0x64] sm:$0xf] }
  0x16   : > { %1114 = vrot.lane.b32.xlu0 %v1113_v17, %s1172_s22  ;;  %359 = vst [vmem:[#allocation1 + $0x30] ss:$2 sm:$0xff] %v263_v18  ;;  %v1128_v28 = vpack.i.bf16 %v216_v25, %v215_v24  ;;  %v229_v30 = vrot.slane %v1221_v11, 2  ;;  %v1153_v32 = vpack.i.bf16 %v1213_v3, %v1217_v5  ;;  %v1148_v33 = vpack.i.bf16 %v232_v20, %v231_v14  ;;  %v955_v59 = vld [vmem:[%s1558_s1 + $0x68] sm:$0xf0] }
  0x17   : > { %353 = vst [vmem:[#allocation1 + $0x11] ss:$2 sm:$0xff] %v232_v20  ;;  %1124 = vrot.lane.b32.xlu2 %v1123_v21, %s1172_s22  ;;  %v1138_v29 = vpack.i.bf16 %v289_v27, %v258_v26  ;;  %v1158_v34 = vpack.i.bf16 %v1219_v9, %v1215_v4  ;;  %v1030_v52 = vor.u32 %v1085_v50, %v1027_v51  ;;  %v1083_v62 = vld [vmem:[%s1558_s1 + $0xe4] sm:$0xf]  ;;  %v1019_v63 = vld [vmem:[%s1558_s1 + $0xe8] sm:$0xf0] }
  0x18   : > { %v1143_v31 = vpack.i.bf16 %v230_v13, %v229_v30  ;;  %v954_v56 = vor.u32 %v1068_v54, %v953_v53  ;;  %v1018_v60 = vor.u32 %v1084_v57, %v1017_v55  ;;  %v958_v61 = vor.u32 %v1067_v58, %v955_v59  ;;  %v945_v1 = vld [vmem:[%s1558_s1 + $0x50] sm:$0xf]  ;;  %v1066_v2 = vld [vmem:[%s1558_s1 + $0x54] sm:$0xf0]  ;;  %v1065_v10 = vld [vmem:[%s1558_s1 + $0x54] sm:$0xf] }
  0x19   : > { %652 = vmatpush.bf16.msrb.mxu2 %v1030_v52  ;;  %v1022_v0 = vor.u32 %v1083_v62, %v1019_v63  ;;  %v1009_v6 = vld [vmem:[%s1558_s1 + $0xd0] sm:$0xf]  ;;  %v946_v7 = vor.u32 %v1066_v2, %v945_v1  ;;  %v1082_v8 = vld [vmem:[%s1558_s1 + $0xd4] sm:$0xf0]  ;;  %v947_v12 = vld [vmem:[%s1558_s1 + $0x58] sm:$0xf0] }
  0x1a   : > { %597 = vmatpush.bf16.msra.mxu0 %v954_v56  ;;  %611 = vmatpush.bf16.msra.mxu1 %v1018_v60  ;;  %v1010_v13 = vor.u32 %v1082_v8, %v1009_v6  ;;  %v950_v14 = vor.u32 %v1065_v10, %v947_v12  ;;  %v1081_v15 = vld [vmem:[%s1558_s1 + $0xd4] sm:$0xf]  ;;  %v1011_v16 = vld [vmem:[%s1558_s1 + $0xd8] sm:$0xf0]  ;;  %v937_v18 = vld [vmem:[%s1558_s1 + $0x40] sm:$0xf] }
  0x1b   : > { %639 = vmatpush.bf16.msra.mxu3 %v958_v61  ;;  %v1014_v17 = vor.u32 %v1081_v15, %v1011_v16  ;;  %v1064_v20 = vld [vmem:[%s1558_s1 + $0x44] sm:$0xf0]  ;;  %v1001_v21 = vld [vmem:[%s1558_s1 + $0xc0] sm:$0xf]  ;;  %v1063_v27 = vld [vmem:[%s1558_s1 + $0x44] sm:$0xf] }
  0x1c   : > { %1109 = vrot.lane.b32.xlu1 %v1108_v22, %s1171_s21  ;;  %v938_v22 = vor.u32 %v1064_v20, %v937_v18  ;;  %v929_v38 = vld [vmem:[%s1558_s1 + $0x30] sm:$0xf]  ;;  %v1062_v39 = vld [vmem:[%s1558_s1 + $0x34] sm:$0xf0]  ;;  %v1061_v43 = vld [vmem:[%s1558_s1 + $0x34] sm:$0xf] }
  0x1d   : > { %653 = vmatpush.bf16.msrb.mxu2 %v1022_v0  ;;  %v367_v35 = vld.sshfl [vmem:[#allocation1 + $0x30] sm:$0xff pattern:$0x75316420]  ;;  %v930_v41 = vor.u32 %v1062_v39, %v929_v38  ;;  %v1078_v42 = vld [vmem:[%s1558_s1 + $0xb4] sm:$0xf0]  ;;  %vm313_vm2 = vcmask 785408  }
  0x1e   : > { %1119 = vrot.lane.b32.xlu0 %v1118_v23, %s1172_s22  ;;  %598 = vmatpush.bf16.msra.mxu0 %v946_v7  ;;  %v1080_v23 = vld [vmem:[%s1558_s1 + $0xc4] sm:$0xf0]  ;;  %v993_v40 = vld [vmem:[%s1558_s1 + $0xb0] sm:$0xf]  ;;  %v931_v44 = vld [vmem:[%s1558_s1 + $0x38] sm:$0xf0] }
  0x1f   : > { %1129 = vrot.lane.b32.xlu2 %v1128_v28, %s1172_s22  ;;  %612 = vmatpush.bf16.msra.mxu1 %v1010_v13  ;;  %v994_v45 = vor.u32 %v1078_v42, %v993_v40  ;;  %v934_v46 = vor.u32 %v1061_v43, %v931_v44  ;;  %v1077_v47 = vld [vmem:[%s1558_s1 + $0xb4] sm:$0xf]  ;;  %v995_v48 = vld [vmem:[%s1558_s1 + $0xb8] sm:$0xf0]  ;;  %v921_v50 = vld [vmem:[%s1558_s1 + $0x20] sm:$0xf] }
  0x20   : > { %640 = vmatpush.bf16.msra.mxu3 %v950_v14  ;;  %v998_v49 = vor.u32 %v1077_v47, %v995_v48  ;;  %v1060_v51 = vld [vmem:[%s1558_s1 + $0x24] sm:$0xf0]  ;;  %v985_v52 = vld [vmem:[%s1558_s1 + $0xa0] sm:$0xf]  ;;  %v1059_v55 = vld [vmem:[%s1558_s1 + $0x24] sm:$0xf] }
  0x21   : > { %654 = vmatpush.bf16.msrb.mxu2 %v1014_v17  ;;  %v922_v53 = vor.u32 %v1060_v51, %v921_v50  ;;  %v1076_v54 = vld [vmem:[%s1558_s1 + $0xa4] sm:$0xf0]  ;;  %v923_v56 = vld [vmem:[%s1558_s1 + $0x28] sm:$0xf0]  ;;  %v1075_v59 = vld [vmem:[%s1558_s1 + $0xa4] sm:$0xf] }
  0x22   : > { %599 = vmatpush.bf16.msra.mxu0 %v938_v22  ;;  %v986_v57 = vor.u32 %v1076_v54, %v985_v52  ;;  %v926_v58 = vor.u32 %v1059_v55, %v923_v56  ;;  %v987_v60 = vld [vmem:[%s1558_s1 + $0xa8] sm:$0xf0]  ;;  %v913_v63 = vld [vmem:[%s1558_s1 + $0x10] sm:$0xf]  ;;  %v1058_v0 = vld [vmem:[%s1558_s1 + $0x14] sm:$0xf0] }
  0x23   : > { %v990_v62 = vor.u32 %v1075_v59, %v987_v60  ;;  %v977_v1 = vld [vmem:[%s1558_s1 + $0x90] sm:$0xf]  ;;  %v914_v6 = vor.u32 %v1058_v0, %v913_v63  ;;  %v1074_v7 = vld [vmem:[%s1558_s1 + $0x94] sm:$0xf0]  ;;  %v1057_v8 = vld [vmem:[%s1558_s1 + $0x14] sm:$0xf] }
  0x24   : > { %1139 = vrot.lane.b32.xlu1 %v1138_v29, %s1173_s23  ;;  %v1002_v29 = vor.u32 %v1080_v23, %v1001_v21  ;;  %v915_v10 = vld [vmem:[%s1558_s1 + $0x18] sm:$0xf0]  ;;  %v978_v13 = vor.u32 %v1074_v7, %v977_v1  ;;  %v1073_v15 = vld [vmem:[%s1558_s1 + $0x94] sm:$0xf]  ;;  %v905_v17 = vld [vmem:[%s1558_s1] sm:$0xf] }
  0x25   : > { %v918_v14 = vor.u32 %v1057_v8, %v915_v10  ;;  %v979_v16 = vld [vmem:[%s1558_s1 + $0x98] sm:$0xf0]  ;;  %v1056_v20 = vld [vmem:[%s1558_s1 + $0x4] sm:$0xf0]  ;;  %v969_v21 = vld [vmem:[%s1558_s1 + $0x80] sm:$0xf] }
  0x26   : > { %1134 = vrot.lane.b32.xlu0 %v1128_v28, %s1173_s23  ;;  %v939_v28 = vld [vmem:[%s1558_s1 + $0x48] sm:$0xf0]  ;;  %613 = vmatpush.bf16.msra.mxu1 %v1002_v29  ;;  %v982_v18 = vor.u32 %v1073_v15, %v979_v16  ;;  %v1072_v22 = vld [vmem:[%s1558_s1 + $0x84] sm:$0xf0]  ;;  %v1055_v23 = vld [vmem:[%s1558_s1 + $0x4] sm:$0xf]  ;;  %v906_v29 = vor.u32 %v1056_v20, %v905_v17 }
  0x27   : > { %1144 = vrot.lane.b32.xlu2 %v1143_v31, %s1171_s21  ;;  %v942_v30 = vor.u32 %v1063_v27, %v939_v28  ;;  %v1079_v31 = vld [vmem:[%s1558_s1 + $0xc4] sm:$0xf]  ;;  %600 = vmatpush.bf16.msra.mxu0 %v930_v41  ;;  %v907_v27 = vld [vmem:[%s1558_s1 + $0x8] sm:$0xf0]  ;;  %v1089_v38 = vld [vmem:[%s1558_s1 + $0x114] sm:$0xf] }
  0x28   : > { %v1071_v28 = vld [vmem:[%s1558_s1 + $0x84] sm:$0xf]  ;;  %v1043_v39 = vld [vmem:[%s1558_s1 + $0x118] sm:$0xf0]  ;;  %v1035_v43 = vld [vmem:[%s1558_s1 + $0x108] sm:$0xf0] }
  0x29   : > { %641 = vmatpush.bf16.msra.mxu3 %v942_v30  ;;  %v970_v30 = vor.u32 %v1072_v22, %v969_v21  ;;  %v1087_v40 = vld [vmem:[%s1558_s1 + $0x104] sm:$0xf]  ;;  %v1046_v42 = vor.u32 %v1089_v38, %v1043_v39  ;;  %vm342_vm3 = vcmask 1043456   ;;  %vm726_vm4 = vcmask 1041408  }
  0x2a   : > { %614 = vmatpush.bf16.msra.mxu1 %v994_v45  ;;  %v1038_v47 = vor.u32 %v1087_v40, %v1035_v43  ;;  %vm728_vm5 = vcmask 1043458   ;;  %vm786_vm6 = vcmask 1040384   ;;  %vm821_vm7 = vcmask 1041409  }
  0x2b   : > { %601 = vmatpush.bf16.msra.mxu0 %v922_v53 }
  0x2c   : > { %1154 = vrot.lane.b32.xlu1 %v1153_v32, %s1173_s23  ;;  %v1003_v32 = vld [vmem:[%s1558_s1 + $0xc8] sm:$0xf0] }
  0x2d   : > { %642 = vmatpush.bf16.msra.mxu3 %v934_v46 }
  0x2e   : > { %1149 = vrot.lane.b32.xlu0 %v1148_v33, %s1171_s21  ;;  %v1006_v33 = vor.u32 %v1079_v31, %v1003_v32  ;;  %615 = vmatpush.bf16.msra.mxu1 %v986_v57  ;;  %v971_v31 = vld [vmem:[%s1558_s1 + $0x88] sm:$0xf0]  ;;  %v910_v32 = vor.u32 %v1055_v23, %v907_v27 }
  0x2f   : > { %1159 = vrot.lane.b32.xlu2 %v1158_v34, %s1173_s23  ;;  %v364_v34 = vld.sshfl [vmem:[#allocation1 + $0x10] sm:$0xff pattern:$0x75316420]  ;;  %602 = vmatpush.bf16.msra.mxu0 %v914_v6 }
  0x30   : > { %655 = vmatpush.bf16.msrb.mxu2 %v1006_v33  ;;  %v1362_v37 = vpack.c.bf16 %v367_v35, %v364_v34  ;;  %v974_v33 = vor.u32 %v1071_v28, %v971_v31 }
  0x31   : > { %643 = vmatpush.bf16.msra.mxu3 %v926_v58 }
  0x32   : > { %1047 = vmatmul.msk.bf16.vlgmr.msra.gmra.mxu2 %vm303_vm0, %v1362_v37  ;;  %616 = vmatpush.bf16.msra.mxu1 %v978_v13 }
  0x33   : > { %603 = vmatpush.bf16.msra.mxu0 %v906_v29 }
  0x34   : > { %656 = vmatpush.bf16.msrb.mxu2 %v998_v49 }
  0x35   : > { %644 = vmatpush.bf16.msra.mxu3 %v918_v14 }
  0x36   : > { %617 = vmatpush.bf16.msra.mxu1 %v970_v30 }
  0x37   : > { %672 = vmatpush.bf16.msrb.mxu0 %v1046_v42 }
  0x38   : > { %657 = vmatpush.bf16.msrb.mxu2 %v990_v62 }
  0x39   : > { %645 = vmatpush.bf16.msra.mxu3 %v910_v32 }
  0x3b   : > { %673 = vmatpush.bf16.msrb.mxu0 %v1038_v47 }
  0x3c   : > { %658 = vmatpush.bf16.msrb.mxu2 %v982_v18 }
  0x40   : > { %659 = vmatpush.bf16.msrb.mxu2 %v974_v33 }
  0x71   : > { %v1360_v36 = vpop.permute.xlu2 %1124 }
  0x72   : > { %v1127_v46 = vunpack.i.h.bf16 %v1360_v36  ;;  %v1126_v48 = vunpack.i.l.bf16 %v1360_v36 }
  0x74   : > { %v305_v36 = vsel %vm303_vm0, %v1217_v5, %v1127_v46  ;;  %v304_v59 = vsel %vm303_vm0, %v1221_v11, %v1126_v48 }
  0x79   : > { %v1434_v12 = vpop.permute.xlu2 %1129 }
  0x7a   : > { %v1132_v60 = vunpack.i.h.bf16 %v1434_v12  ;;  %v1131_v7 = vunpack.i.l.bf16 %v1434_v12 }
  0x7c   : > { %v307_v31 = vsel %vm303_vm0, %v1215_v4, %v1132_v60  ;;  %v306_v32 = vsel %vm303_vm0, %v1213_v3, %v1131_v7 }
  0x81   : > { %v1145_v41 = vpop.permute.xlu2 %1144 }
  0x86   : > { %v1414_v61 = vpop.permute.xlu1 %1104 }
  0x87   : > { %v1107_v50 = vunpack.i.h.bf16 %v1414_v61  ;;  %v1106_v51 = vunpack.i.l.bf16 %v1414_v61  ;;  %v1146_v61 = vunpack.i.l.bf16 %v1145_v41 }
  0x88   : > { %v1115_v2 = vpop.permute.xlu0 %1114 }
  0x89   : > { %v1117_v44 = vunpack.i.h.bf16 %v1115_v2  ;;  %v1116_v45 = vunpack.i.l.bf16 %v1115_v2  ;;  %v1160_v1 = vpop.permute.xlu2 %1159  ;;  %v309_v13 = vsel %vm308_vm1, %v304_v59, %v1146_v61  ;;  %v690_v59 = vld [vmem:[%s1560_s3] sm:$0x3] }
  0x8a   : > { %v1162_v15 = vunpack.i.h.bf16 %v1160_v1  ;;  %v692_v61 = vperm.slane %v690_v59, 0 }
  0x8b   : > { %v319_v52 = vsel %vm303_vm0, %v215_v24, %v1117_v44  ;;  %v318_v53 = vsel %vm303_vm0, %v214_v19, %v1116_v45  ;;  %v1147_v24 = vunpack.i.h.bf16 %v1145_v41 }
  0x8c   : > { %v322_v19 = vsel %vm308_vm1, %v318_v53, %v1106_v51  ;;  %v323_v0 = vsel %vm308_vm1, %v319_v52, %v1107_v50 }
  0x8d   : > { %v310_v14 = vsel %vm308_vm1, %v305_v36, %v1147_v24 }
  0x8e   : > { %v1110_v34 = vpop.permute.xlu1 %1109 }
  0x8f   : > { %v1112_v62 = vunpack.i.h.bf16 %v1110_v34  ;;  %v1111_v63 = vunpack.i.l.bf16 %v1110_v34 }
  0x90   : > { %v1120_v35 = vpop.permute.xlu0 %1119 }
  0x91   : > { %v1122_v54 = vunpack.i.h.bf16 %v1120_v35  ;;  %v1121_v55 = vunpack.i.l.bf16 %v1120_v35 }
  0x93   : > { %v321_v5 = vsel %vm303_vm0, %v258_v26, %v1122_v54  ;;  %v320_v2 = vsel %vm303_vm0, %v216_v25, %v1121_v55  ;;  %v1161_v26 = vunpack.i.l.bf16 %v1160_v1  ;;  %v680_v55 = vld [vmem:[%s1559_s2] sm:$0x3]  ;;  %v693_v1 = vperm.slane %v690_v59, 1 }
  0x94   : > { %v324_v16 = vsel %vm308_vm1, %v320_v2, %v1111_v63  ;;  %v325_v25 = vsel %vm308_vm1, %v321_v5, %v1112_v62  ;;  %v683_v24 = vperm.slane %v680_v55, 1 }
  0x96   : > { %v1140_v49 = vpop.permute.xlu1 %1139 }
  0x97   : > { %v1142_v11 = vunpack.i.h.bf16 %v1140_v49  ;;  %v1141_v6 = vunpack.i.l.bf16 %v1140_v49 }
  0x98   : > { %v1135_v56 = vpop.permute.xlu0 %1134 }
  0x99   : > { %v1137_v57 = vunpack.i.h.bf16 %v1135_v56  ;;  %v1136_v58 = vunpack.i.l.bf16 %v1135_v56  ;;  %v328_v12 = vsel %vm313_vm2, %v324_v16, %v1141_v6  ;;  %v329_v20 = vsel %vm313_vm2, %v325_v25, %v1142_v11 }
  0x9a   : > { %v340_v35 = vrot.slane %v328_v12, 4  ;;  %v341_v38 = vrot.slane %v329_v20, 4 }
  0x9b   : > { %v326_v8 = vsel %vm313_vm2, %v322_v19, %v1136_v58  ;;  %v327_v10 = vsel %vm313_vm2, %v323_v0, %v1137_v57  ;;  %v682_v58 = vperm.slane %v680_v55, 0 }
  0x9c   : > { %v338_v21 = vrot.slane %v326_v8, 4  ;;  %v339_v22 = vrot.slane %v327_v10, 4 }
  0x9e   : > { %v1155_v9 = vpop.permute.xlu1 %1154 }
  0x9f   : > { %v1157_v17 = vunpack.i.h.bf16 %v1155_v9  ;;  %v1156_v18 = vunpack.i.l.bf16 %v1155_v9 }
  0xa0   : > { %v1150_v23 = vpop.permute.xlu0 %1149 }
  0xa1   : > { %v314_v27 = vsel %vm313_vm2, %v309_v13, %v1156_v18  ;;  %v315_v28 = vsel %vm313_vm2, %v310_v14, %v1157_v17  ;;  %v1152_v29 = vunpack.i.h.bf16 %v1150_v23  ;;  %v1151_v30 = vunpack.i.l.bf16 %v1150_v23 }
  0xa2   : > { %v343_v33 = vsel %vm342_vm3, %v314_v27, %v338_v21  ;;  %v344_v34 = vsel %vm342_vm3, %v315_v28, %v339_v22 }
  0xa3   : > { %347 = vst [vmem:[#allocation1] ss:$2 sm:$0xff] %v343_v33  ;;  %v311_v39 = vsel %vm308_vm1, %v306_v32, %v1151_v30  ;;  %v312_v40 = vsel %vm308_vm1, %v307_v31, %v1152_v29 }
  0xa4   : > { %349 = vst [vmem:[#allocation1 + $0x1] ss:$2 sm:$0xff] %v344_v34  ;;  %v316_v41 = vsel %vm313_vm2, %v311_v39, %v1161_v26  ;;  %v317_v42 = vsel %vm313_vm2, %v312_v40, %v1162_v15 }
  0xa5   : > { %v345_v4 = vsel %vm342_vm3, %v316_v41, %v340_v35  ;;  %v346_v3 = vsel %vm342_vm3, %v317_v42, %v341_v38 }
  0xa6   : > { %355 = vst [vmem:[#allocation1 + $0x20] ss:$2 sm:$0xff] %v345_v4 }
  0xa7   : > { %357 = vst [vmem:[#allocation1 + $0x21] ss:$2 sm:$0xff] %v346_v3 }
  0xab   : > { %v362_v43 = vld.sshfl [vmem:[#allocation1] sm:$0xff pattern:$0x75316420]  ;;  %v363_v44 = vld.sshfl [vmem:[#allocation1 + $0x8] sm:$0xff pattern:$0x75316420] }
  0xae   : > { %v365_v45 = vld.sshfl [vmem:[#allocation1 + $0x20] sm:$0xff pattern:$0x75316420]  ;;  %v366_v46 = vld.sshfl [vmem:[#allocation1 + $0x28] sm:$0xff pattern:$0x75316420] }
  0xaf   : > { %v374_v47 = vpack.c.bf16 %v365_v45, %v362_v43  ;;  %v375_v48 = vpack.c.bf16 %v366_v46, %v363_v44 }
  0xb1   : > { %604 = vmatmul.bf16.vlgmr.msra.gmra.mxu0 %v374_v47  ;;  %618 = vmatmul.bf16.vlgmr.msra.gmra.mxu1 %v375_v48 }
  0xb2   : > { %646 = vmatmul.bf16.vlgmr.msra.gmra.mxu3 %v374_v47  ;;  %660 = vmatmul.bf16.vlgmr.msrb.gmra.mxu2 %v375_v48 }
  0xb5   : > { %v633_v49 = vpop.f32.mrf.mxu2 }
  0xbd   : > { %v635_v50 = vpop.f32.mrf.mxu2 }
  0xc1   : > { %1048 = vmatmul.msk.bf16.vlgmr.msrb.gmra.mxu0 %vm303_vm0, %v1362_v37 }
 0x12e   : > { %v605_v51 = vpop.f32.mrf.mxu0  ;;  %v619_v52 = vpop.f32.mrf.mxu1 }
 0x12f   : > { %v620_v54 = vadd.f32 %v619_v52, %v605_v51 }
 0x131   : > { %v634_v57 = vadd.f32 %v633_v49, %v620_v54 }
 0x133   : > { %v686_v63 = vmul.f32 %v682_v58, %v634_v57 }
 0x135   : > { %v647_v56 = vpop.f32.mrf.mxu3  ;;  %v661_v36 = vpop.f32.mrf.mxu2  ;;  %v696_v6 = vadd.f32 %v692_v61, %v686_v63 }
 0x136   : > { %v607_v53 = vpop.f32.mrf.mxu0  ;;  %v621_v60 = vpop.f32.mrf.mxu1  ;;  %v662_v37 = vadd.f32 %v661_v36, %v647_v56 }
 0x137   : > { %v622_v19 = vadd.f32 %v621_v60, %v607_v53  ;;  %v700_v9 = vmax.f32 %v696_v6, 0.0 }
 0x139   : > { %v636_v7 = vadd.f32 %v635_v50, %v622_v19 }
 0x13b   : > { %v688_v15 = vmul.f32 %v682_v58, %v636_v7 }
 0x13d   : > { %v649_v2 = vpop.f32.mrf.mxu3  ;;  %v663_v11 = vpop.f32.mrf.mxu2  ;;  %v698_v12 = vadd.f32 %v692_v61, %v688_v15 }
 0x13e   : > { %v675_v62 = vpop.f32.mrf.mxu0  ;;  %v664_v10 = vadd.f32 %v663_v11, %v649_v2 }
 0x13f   : > { %v676_v0 = vadd.f32 %v675_v62, %v662_v37  ;;  %v702_v28 = vmax.f32 %v698_v12, 0.0 }
 0x141   : > { %v687_v5 = vmul.f32 %v683_v24, %v676_v0 }
 0x143   : > { %v697_v8 = vadd.f32 %v693_v1, %v687_v5 }
 0x145   : > { %v701_v13 = vmax.f32 %v697_v8, 0.0 }
 0x146   : > { %v677_v14 = vpop.f32.mrf.mxu0 }
 0x147   : > { %v708_v26 = vrot.slane %v701_v13, 4  ;;  %v678_v16 = vadd.f32 %v677_v14, %v664_v10 }
 0x149   : > { %v711_v25 = vsel %vm342_vm3, %v708_v26, %v700_v9  ;;  %v689_v17 = vmul.f32 %v683_v24, %v678_v16  ;;  %v710_v20 = vsel %vm342_vm3, %v700_v9, %v708_v26 }
 0x14a   : > { %v712_v18 = vrot.slane %v711_v25, 4 }
 0x14b   : > { %v699_v21 = vadd.f32 %v693_v1, %v689_v17 }
 0x14c   : > { %v720_v22 = vmax.f32 %v710_v20, %v712_v18 }
 0x14d   : > { %v703_v23 = vmax.f32 %v699_v21, 0.0 }
 0x14e   : > { %v724_v27 = vrot.slane %v720_v22, 2 }
 0x14f   : > { %v709_v29 = vrot.slane %v703_v23, 4 }
 0x150   : > { %v727_v30 = vsel %vm726_vm4, %v720_v22, %v724_v27  ;;  %v729_v31 = vsel %vm728_vm5, %v720_v22, %v724_v27 }
 0x151   : > { %v730_v32 = vrot.slane %v729_v31, 2  ;;  %v1049_v33 = vrot.slane %v727_v30, 9  ;;  %v714_v34 = vsel %vm342_vm3, %v709_v29, %v702_v28  ;;  %v713_v40 = vsel %vm342_vm3, %v702_v28, %v709_v29 }
 0x152   : > { %v715_v35 = vrot.slane %v714_v34, 4 }
 0x153   : > { %v1050_v38 = vrot.slane %v730_v32, 9  ;;  %v750_v39 = vmax.f32 %v727_v30, %v1049_v33 }
 0x154   : > { %v721_v41 = vmax.f32 %v713_v40, %v715_v35 }
 0x155   : > { %v751_v42 = vmax.f32 %v730_v32, %v1050_v38  ;;  %v758_v4 = vperm.slane %v750_v39, 0  ;;  %v759_v3 = vperm.slane %v750_v39, 2 }
 0x156   : > { %v725_v43 = vrot.slane %v721_v41, 2 }
 0x157   : > { %v760_v44 = vperm.slane %v751_v42, 0  ;;  %v761_v45 = vperm.slane %v751_v42, 2  ;;  %v774_v46 = vpack.c.bf16 %v759_v3, %v758_v4 }
 0x158   : > { %v731_v47 = vsel %vm726_vm4, %v721_v41, %v725_v43  ;;  %v732_v48 = vsel %vm728_vm5, %v721_v41, %v725_v43 }
 0x159   : > { %v775_v49 = vpack.c.bf16 %v761_v45, %v760_v44  ;;  %v782_v50 = vrot.slane %v774_v46, 3  ;;  %v733_v51 = vrot.slane %v732_v48, 2  ;;  %v1051_v52 = vrot.slane %v731_v47, 9 }
 0x15b   : > { %v783_v53 = vrot.slane %v775_v49, 3  ;;  %v789_v54 = vsel %vm786_vm6, %v774_v46, %v782_v50  ;;  %v1052_v55 = vrot.slane %v733_v51, 9  ;;  %v752_v56 = vmax.f32 %v731_v47, %v1051_v52 }
 0x15c   : > { %799 = vst [vmem:[#allocation1] ss:$4 sm:$0xff] %v789_v54 }
 0x15d   : > { %v792_v36 = vsel %vm786_vm6, %v775_v49, %v783_v53  ;;  %v753_v57 = vmax.f32 %v733_v51, %v1052_v55  ;;  %v762_v58 = vperm.slane %v752_v56, 0  ;;  %v763_v59 = vperm.slane %v752_v56, 2 }
 0x15e   : > { %803 = vst [vmem:[#allocation1 + $0x20] ss:$4 sm:$0xff] %v792_v36 }
 0x15f   : > { %v764_v60 = vperm.slane %v753_v57, 0  ;;  %v765_v37 = vperm.slane %v753_v57, 2  ;;  %v776_v24 = vpack.c.bf16 %v763_v59, %v762_v58 }
 0x161   : > { %v777_v61 = vpack.c.bf16 %v765_v37, %v764_v60  ;;  %v784_v62 = vrot.slane %v776_v24, 3 }
 0x163   : > { %v800_v63 = vld [vmem:[#allocation1] sm:$0xff]  ;;  %v785_v19 = vrot.slane %v777_v61, 3  ;;  %v795_v0 = vsel %vm786_vm6, %v776_v24, %v784_v62 }
 0x164   : > { %806 = vst [vmem:[#allocation1] ss:$4 sm:$0xff] %v795_v0  ;;  %v812_v6 = vunpack.c.l.b16 %v800_v63  ;;  %v813_v7 = vunpack.c.h.b16 %v800_v63 }
 0x165   : > { %v804_v1 = vld [vmem:[#allocation1 + $0x20] sm:$0xff]  ;;  %v798_v5 = vsel %vm786_vm6, %v777_v61, %v785_v19 }
 0x166   : > { %v814_v2 = vunpack.c.l.b16 %v804_v1  ;;  %v815_v11 = vunpack.c.h.b16 %v804_v1  ;;  %809 = vst [vmem:[#allocation1 + $0x20] ss:$4 sm:$0xff] %v798_v5 }
 0x168   : > { %v820_v8 = vrot.slane %v814_v2, 7  ;;  %v823_v10 = vrot.slane %v815_v11, 7 }
 0x16a   : > { %v822_v13 = vsel %vm821_vm7, %v820_v8, %v812_v6  ;;  %v824_v14 = vsel %vm821_vm7, %v823_v10, %v813_v7 }
 0x16b   : > { %v829_v9 = vpack.c.b16 %v824_v14, %v822_v13  ;;  %v807_v26 = vld [vmem:[#allocation1] sm:$0xff] }
 0x16c   : > { %v816_v12 = vunpack.c.l.b16 %v807_v26  ;;  %v817_v20 = vunpack.c.h.b16 %v807_v26 }
 0x16d   : > { %v831_v15 = vrot.slane %v829_v9, 3  ;;  %v810_v16 = vld [vmem:[#allocation1 + $0x20] sm:$0xff] }
 0x16e   : > { %v818_v25 = vunpack.c.l.b16 %v810_v16  ;;  %v819_v17 = vunpack.c.h.b16 %v810_v16 }
 0x16f   : > { %v835_v18 = vsel %vm786_vm6, %v829_v9, %v831_v15 }
 0x170   : > { %841 = vst [vmem:[%s195_s5] sm:$0x3] %v835_v18  ;;  %v825_v21 = vrot.slane %v818_v25, 7  ;;  %v827_v22 = vrot.slane %v819_v17, 7 }
 0x172   : > { %v826_v23 = vsel %vm821_vm7, %v825_v21, %v816_v12  ;;  %v828_v27 = vsel %vm821_vm7, %v827_v22, %v817_v20 }
 0x173   : > { %v830_v28 = vpack.c.b16 %v828_v27, %v826_v23 }
 0x175   : > { %v832_v29 = vrot.slane %v830_v28, 3 }
 0x177   : > { %v838_v30 = vsel %vm786_vm6, %v830_v28, %v832_v29 }
 0x178   : > { %842 = vst [vmem:[%s195_s5 + $0x2] sm:$0x3] %v838_v30 }
 0x179 PF: > { %s14_s15 = sadd.s32 1, %s1169_s15  }
 0x17a   : > { %p11_p4 = scmp.ge.s32.totalorder %s14_s15, 4  }
 0x17c   :  { %13 = sbr.rel (!%p11_p4) target bundleno = 1 (0x1), region = 74 }

// kernel: vgg_forward.5
= control target key start
LH: loop header
LB: loop body
LE: loop exit
PB: predicated region body
PF: predicated region fallthrough
CT: control target
= control target key end

     0   :  { %s1396_s15 = smov 0   ;;  %s1756_s0 = inlined_call_operand.vmem [shape: bf16[2,10,10,16], index: 0, kind: input, shape index: {}]   ;;  %s1757_s1 = inlined_call_operand.vmem [shape: bf16[144,32], index: 1, kind: input, shape index: {}]   ;;  %s1758_s2 = inlined_call_operand.vmem [shape: f32[1,32], index: 2, kind: input, shape index: {}]   ;;  %s1759_s3 = inlined_call_operand.vmem [shape: f32[1,32], index: 3, kind: input, shape index: {}]   ;;  %s1760_s4 = inlined_call_operand.vmem [shape: bf16[2,4,4,32], index: 4, kind: output, shape index: {}]  }
   0x1 LB: > { %s1113_s16 = sadd.s32 4294967295, %s1362_s15   ;;  %p1117_p0 = scmp.ge.s32.totalorder %s1362_s15, 1  ;;  %s1362_s15 = sphi %s1396_s15, %s14_s15  }
   0x2   : > { %p162_p1 = scmp.lt.s32.totalorder %s1362_s15, 3 }
   0x4   : > { %p163_p2 = pnand %p1117_p0, %p162_p1 }
   0x5   : > { %p188_p3 = scmp.lt.s32.totalorder (!%p163_p2), %s1113_s16, 1  ;;  %s1364_s21 = smov (!%p163_p2), 48  }
   0x6   : > { %166 = sbr.rel (%p163_p2) target bundleno = 398 (0x18e), region = 36  ;;  %s1365_s22 = smov (!%p163_p2), 16  }
   0x7   : > { %s1366_s23 = smov (!%p163_p2), 96   ;;  %s1367_s24 = smov (!%p163_p2), 64  }
   0x8   : > { %s1368_s25 = smov (!%p163_p2), 32   ;;  %s1369_s26 = smov (!%p163_p2), 80  }
   0x9   : > { %s1370_s27 = smov (!%p163_p2), 112  }
   0xb   : > { %s1762_s16 = smov (!%p188_p3, %s1113_s16), 1  ;;  %vm255_vm0 = vcmask 1046528   ;;  %vm304_vm1 = vcmask 1045504   ;;  %vm497_vm2 = vcmask 130048   ;;  %vm506_vm3 = vcmask 261120  }
   0xc   : > { %s1198_s17 = smul.u32 80, %s1762_s16  ;;  %vm515_vm4 = vcmask 392192   ;;  %vm524_vm5 = vcmask 523264   ;;  %vm533_vm6 = vcmask 654336   ;;  %vm542_vm7 = vcmask 785408  }
   0xd   : > { %vm551_vm8 = vcmask 916480   ;;  %vm886_vm9 = vcmask 1041408   ;;  %vm1003_vm10 = vcmask 1041409   ;;  %vm1006_vm11 = vcmask 1042434  }
   0xe   : > { %s1410_s20 = scalar_lea.vmem %s1756_s0, %s1198_s17  ;;  %vm1009_vm12 = vcmask 1043459   ;;  %vm1053_vm13 = vcmask 254976  }
   0xf   : > { %v201_v0 = vld [vmem:[%s1410_s20 + $0x8] sm:$0xf]  ;;  %v202_v1 = vld [vmem:[%s1410_s20 + $0xc] sm:$0x1]  ;;  %v203_v2 = vld [vmem:[%s1410_s20 + $0x10] sm:$0xf] }
  0x10   : > { %v204_v3 = vld [vmem:[%s1410_s20 + $0x14] sm:$0x1]  ;;  %v1416_v4 = vunpack.c.l.bf16 %v201_v0  ;;  %v222_v5 = vunpack.c.l.bf16 %v202_v1  ;;  %v1418_v6 = vunpack.c.l.bf16 %v203_v2  ;;  %v199_v7 = vld [vmem:[%s1410_s20] sm:$0xf]  ;;  %v200_v8 = vld [vmem:[%s1410_s20 + $0x4] sm:$0x1] }
  0x11   : > { %v224_v9 = vunpack.c.l.bf16 %v204_v3  ;;  %v1422_v10 = vunpack.c.l.bf16 %v199_v7  ;;  %v220_v11 = vunpack.c.l.bf16 %v200_v8  ;;  %v205_v20 = vld [vmem:[%s1410_s20 + $0x18] sm:$0xf]  ;;  %v207_v25 = vld [vmem:[%s1410_s20 + $0x20] sm:$0xf]  ;;  %v208_v28 = vld [vmem:[%s1410_s20 + $0x24] sm:$0x1] }
  0x12   : > { %v259_v12 = vrot.slane %v1416_v4, 1  ;;  %v260_v13 = vrot.slane %v222_v5, 1  ;;  %v262_v14 = vrot.slane %v1418_v6, 1  ;;  %v1214_v15 = vpack.i.bf16 %v1418_v6, %v1416_v4  ;;  %v209_v29 = vld [vmem:[%s1410_s20 + $0x28] sm:$0xf] }
  0x13   : > { %v263_v16 = vrot.slane %v224_v9, 1  ;;  %v256_v17 = vrot.slane %v1422_v10, 1  ;;  %v257_v18 = vrot.slane %v220_v11, 1  ;;  %v305_v19 = vrot.slane %v1422_v10, 2  ;;  %v210_v30 = vld [vmem:[%s1410_s20 + $0x2c] sm:$0x1] }
  0x14   : > { %v261_v21 = vsel %vm255_vm0, %v259_v12, %v260_v13  ;;  %1215 = vrot.lane.b32.xlu1 %v1214_v15, %s1364_s21  ;;  %v306_v22 = vrot.slane %v220_v11, 2  ;;  %v308_v23 = vrot.slane %v1416_v4, 2  ;;  %v309_v24 = vrot.slane %v222_v5, 2  ;;  %v1441_v32 = vld [vmem:[%s1410_s20 + $0x1c] sm:$0x1] }
  0x15   : > { %v264_v26 = vsel %vm255_vm0, %v262_v14, %v263_v16  ;;  %v258_v27 = vsel %vm255_vm0, %v256_v17, %v257_v18  ;;  %v1444_v35 = vunpack.c.l.bf16 %v205_v20  ;;  %v1446_v36 = vunpack.c.l.bf16 %v207_v25  ;;  %v211_v43 = vld [vmem:[%s1410_s20 + $0x30] sm:$0xf]  ;;  %v212_v48 = vld [vmem:[%s1410_s20 + $0x34] sm:$0x1]  ;;  %v214_v15 = vld [vmem:[%s1410_s20 + $0x3c] sm:$0x1] }
  0x16   : > { %v1224_v31 = vpack.i.bf16 %v261_v21, %v258_v27  ;;  %v1234_v33 = vpack.i.bf16 %v264_v26, %v261_v21  ;;  %v307_v34 = vsel %vm304_vm1, %v305_v19, %v306_v22  ;;  %v310_v37 = vsel %vm304_vm1, %v308_v23, %v309_v24  ;;  %v213_v16 = vld [vmem:[%s1410_s20 + $0x38] sm:$0xf] }
  0x17   : > { %v228_v38 = vunpack.c.l.bf16 %v208_v28  ;;  %v1450_v39 = vunpack.c.l.bf16 %v209_v29  ;;  %v230_v40 = vunpack.c.l.bf16 %v210_v30  ;;  %v226_v41 = vunpack.c.l.bf16 %v1441_v32 }
  0x18   : > { %1225 = vrot.lane.b32.xlu0 %v1224_v31, %s1365_s22  ;;  %v268_v42 = vrot.slane %v1446_v36, 1  ;;  %v1219_v44 = vpack.i.bf16 %v1444_v35, %v1418_v6  ;;  %v1229_v49 = vpack.i.bf16 %v310_v37, %v307_v34  ;;  %v311_v52 = vrot.slane %v1418_v6, 2  ;;  %v1187_v34 = vld [vmem:[%s1757_s1 + $0x38] sm:$0xff] }
  0x19   : > { %v269_v45 = vrot.slane %v228_v38, 1  ;;  %v271_v46 = vrot.slane %v1450_v39, 1  ;;  %v272_v47 = vrot.slane %v230_v40, 1  ;;  %v312_v53 = vrot.slane %v224_v9, 2  ;;  %652 = vmatpush.bf16.msra.mxu0 %v1187_v34  ;;  %1189 = vmatpush.bf16.msra.mxu2 %v1187_v34 }
  0x1a   : > { %1220 = vrot.lane.b32.xlu2 %v1219_v44, %s1366_s23  ;;  %v265_v54 = vrot.slane %v1444_v35, 1  ;;  %v266_v55 = vrot.slane %v226_v41, 1  ;;  %v1469_v56 = vunpack.c.l.bf16 %v211_v43  ;;  %v232_v57 = vunpack.c.l.bf16 %v212_v48 }
  0x1b   : > { %v1462_v50 = vsel %vm255_vm0, %v268_v42, %v269_v45  ;;  %v273_v51 = vsel %vm255_vm0, %v271_v46, %v272_v47  ;;  %v1472_v58 = vsel %vm304_vm1, %v311_v52, %v312_v53  ;;  %v317_v61 = vrot.slane %v1446_v36, 2  ;;  %v1186_v42 = vld [vmem:[%s1757_s1 + $0x30] sm:$0xff]  ;;  %v1185_v47 = vld [vmem:[%s1757_s1 + $0x28] sm:$0xff] }
  0x1c   : > { %1235 = vrot.lane.b32.xlu1 %v1234_v33, %s1367_s24  ;;  %v1475_v59 = vpack.i.bf16 %v273_v51, %v1462_v50  ;;  %v1239_v60 = vpack.i.bf16 %v1472_v58, %v310_v37  ;;  %v318_v62 = vrot.slane %v228_v38, 2  ;;  %v320_v63 = vrot.slane %v1450_v39, 2 }
  0x1d   : > { %v321_v0 = vrot.slane %v230_v40, 2  ;;  %v267_v1 = vsel %vm255_vm0, %v265_v54, %v266_v55  ;;  %v274_v2 = vrot.slane %v1469_v56, 1  ;;  %v275_v3 = vrot.slane %v232_v57, 1  ;;  %v215_v40 = vld [vmem:[%s1410_s20 + $0x40] sm:$0xf]  ;;  %653 = vmatpush.bf16.msra.mxu0 %v1186_v42  ;;  %1190 = vmatpush.bf16.msra.mxu2 %v1186_v42 }
  0x1e   : > { %v1244_v5 = vpack.i.bf16 %v267_v1, %v264_v26  ;;  %v1487_v7 = vsel %vm304_vm1, %v317_v61, %v318_v62  ;;  %v323_v13 = vrot.slane %v1469_v56, 2  ;;  %v324_v14 = vrot.slane %v232_v57, 2  ;;  %v217_v54 = vld [vmem:[%s1410_s20 + $0x48] sm:$0xf]  ;;  %v1564_v55 = vld [vmem:[%s1410_s20 + $0x4c] sm:$0x1] }
  0x1f   : > { %v1490_v8 = vsel %vm304_vm1, %v320_v63, %v321_v0  ;;  %v276_v9 = vsel %vm255_vm0, %v274_v2, %v275_v3  ;;  %v1259_v17 = vpack.i.bf16 %v1469_v56, %v1450_v39  ;;  %v234_v19 = vunpack.c.l.bf16 %v214_v15  ;;  %v1188_v15 = vld [vmem:[%s1757_s1 + $0x40] sm:$0xff] }
  0x20   : > { %1230 = vrot.lane.b32.xlu0 %v1229_v49, %s1368_s25  ;;  %v1254_v11 = vpack.i.bf16 %v1490_v8, %v1487_v7  ;;  %v1264_v12 = vpack.i.bf16 %v276_v9, %v273_v51  ;;  %v1504_v18 = vsel %vm304_vm1, %v323_v13, %v324_v14  ;;  %v1506_v20 = vunpack.c.l.bf16 %v213_v16  ;;  %v1181_v13 = vld [vmem:[%s1757_s1 + $0x8] sm:$0xff]  ;;  %v1180_v14 = vld [vmem:[%s1757_s1] sm:$0xff]  ;;  %688 = vmatpush.bf16.msra.mxu1 %v1188_v15 }
  0x21   : > { %v1269_v21 = vpack.i.bf16 %v1504_v18, %v1490_v8  ;;  %v278_v23 = vrot.slane %v234_v19, 1  ;;  %v314_v26 = vrot.slane %v1444_v35, 2  ;;  %v315_v27 = vrot.slane %v226_v41, 2  ;;  %v216_v41 = vld [vmem:[%s1410_s20 + $0x44] sm:$0x1]  ;;  %654 = vmatpush.bf16.msra.mxu0 %v1185_v47  ;;  %1191 = vmatpush.bf16.msra.mxu2 %v1185_v47 }
  0x22   : > { %1240 = vrot.lane.b32.xlu2 %v1239_v60, %s1369_s26  ;;  %v277_v22 = vrot.slane %v1506_v20, 1  ;;  %v1274_v24 = vpack.i.bf16 %v1506_v20, %v1469_v56  ;;  %v1294_v29 = vpack.i.bf16 %v1446_v36, %v1444_v35  ;;  %v1299_v32 = vpack.i.bf16 %v1462_v50, %v267_v1  ;;  %1197 = vmatpush.bf16.msra.mxu3 %v1188_v15 }
  0x23   : > { %v1524_v30 = vsel %vm304_vm1, %v314_v26, %v315_v27  ;;  %v1309_v33 = vpack.i.bf16 %v1450_v39, %v1446_v36  ;;  %v326_v37 = vrot.slane %v1506_v20, 2  ;;  %v327_v38 = vrot.slane %v234_v19, 2 }
  0x24   : > { %1250 = vrot.lane.b32.xlu1 %v1475_v59, %s1365_s22  ;;  %v279_v25 = vsel %vm255_vm0, %v277_v22, %v278_v23  ;;  %v1289_v31 = vpack.i.bf16 %v1524_v30, %v1472_v58  ;;  %v1304_v43 = vpack.i.bf16 %v1487_v7, %v1524_v30  ;;  %v235_v45 = vunpack.c.l.bf16 %v215_v40 }
  0x25   : > { %v1284_v28 = vpack.i.bf16 %v279_v25, %v276_v9  ;;  %v1548_v44 = vsel %vm304_vm1, %v326_v37, %v327_v38  ;;  %v236_v46 = vunpack.c.l.bf16 %v216_v41  ;;  %v238_v62 = vunpack.c.l.bf16 %v1564_v55  ;;  %v1184_v9 = vld [vmem:[%s1757_s1 + $0x20] sm:$0xff] }
  0x26   : > { %v1324_v48 = vpack.i.bf16 %v1548_v44, %v1504_v18  ;;  %v406_v49 = vrot.slane %v235_v45, 2  ;;  %v379_v51 = vrot.slane %v235_v45, 1  ;;  %v1329_v57 = vpack.i.bf16 %v235_v45, %v1506_v20  ;;  %655 = vmatpush.bf16.msra.mxu0 %v1184_v9  ;;  %1192 = vmatpush.bf16.msra.mxu2 %v1184_v9 }
  0x27   : > { %v407_v50 = vrot.slane %v236_v46, 2  ;;  %v380_v52 = vrot.slane %v236_v46, 1  ;;  %v460_v1 = vrot.slane %v238_v62, 1  ;;  %v563_v19 = vpack.c.bf16 %v1490_v8, %v1487_v7 }
  0x28   : > { %1245 = vrot.lane.b32.xlu0 %v1244_v5, %s1370_s27 }
  0x29   : > { %v1560_v53 = vsel %vm304_vm1, %v406_v49, %v407_v50  ;;  %v381_v61 = vsel %vm255_vm0, %v379_v51, %v380_v52  ;;  %1158 = vmatmul.msk.bf16.vlgmr.msra.gmra.mxu3 %vm497_vm2, %v563_v19 }
  0x2a   : > { %1255 = vrot.lane.b32.xlu2 %v1254_v11, %s1368_s25  ;;  %v1339_v60 = vpack.i.bf16 %v1560_v53, %v1548_v44  ;;  %v1334_v63 = vpack.i.bf16 %v381_v61, %v279_v25  ;;  %v1183_v11 = vld [vmem:[%s1757_s1 + $0x18] sm:$0xff]  ;;  %v565_v25 = vpack.c.bf16 %v1548_v44, %v1504_v18 }
  0x2b   : > { %656 = vmatpush.bf16.msra.mxu0 %v1183_v11  ;;  %1193 = vmatpush.bf16.msra.mxu2 %v1183_v11 }
  0x2c   : > { %1265 = vrot.lane.b32.xlu1 %v1264_v12, %s1367_s24  ;;  %v1182_v12 = vld [vmem:[%s1757_s1 + $0x10] sm:$0xff] }
  0x2f   : > { %657 = vmatpush.bf16.msra.mxu0 %v1182_v12  ;;  %1194 = vmatpush.bf16.msra.mxu2 %v1182_v12 }
  0x30   : > { %1260 = vrot.lane.b32.xlu0 %v1259_v17, %s1364_s21  ;;  %v561_v17 = vpack.c.bf16 %v1524_v30, %v1472_v58 }
  0x32   : > { %1270 = vrot.lane.b32.xlu2 %v1269_v21, %s1369_s26  ;;  %1157 = vmatmul.msk.bf16.vlgmr.msra.gmra.mxu1 %vm497_vm2, %v561_v17 }
  0x33   : > { %658 = vmatpush.bf16.msra.mxu0 %v1181_v13  ;;  %1195 = vmatpush.bf16.msra.mxu2 %v1181_v13 }
  0x34   : > { %1280 = vrot.lane.b32.xlu1 %v1244_v5, %s1365_s22 }
  0x37   : > { %659 = vmatpush.bf16.msra.mxu0 %v1180_v14  ;;  %1196 = vmatpush.bf16.msra.mxu2 %v1180_v14 }
  0x38   : > { %1275 = vrot.lane.b32.xlu0 %v1274_v24, %s1366_s23 }
  0x39   : > { %1159 = vmatmul.msk.bf16.gmra.mxu3 %vm497_vm2, %v565_v25 }
  0x3a   : > { %1285 = vrot.lane.b32.xlu2 %v1284_v28, %s1370_s27 }
  0x3c   : > { %1295 = vrot.lane.b32.xlu1 %v1294_v29, %s1364_s21 }
  0x40   : > { %1290 = vrot.lane.b32.xlu0 %v1289_v31, %s1368_s25 }
  0x42   : > { %1300 = vrot.lane.b32.xlu2 %v1299_v32, %s1367_s24 }
  0x44   : > { %1310 = vrot.lane.b32.xlu1 %v1309_v33, %s1366_s23 }
  0x48   : > { %1305 = vrot.lane.b32.xlu0 %v1304_v43, %s1369_s26 }
  0x4a   : > { %1315 = vrot.lane.b32.xlu2 %v1475_v59, %s1370_s27  ;;  %v1571_v59 = vunpack.c.l.bf16 %v217_v54 }
  0x4c   : > { %1325 = vrot.lane.b32.xlu1 %v1324_v48, %s1368_s25  ;;  %v459_v0 = vrot.slane %v1571_v59, 1  ;;  %v1344_v2 = vpack.i.bf16 %v1571_v59, %v235_v45 }
  0x4e   : > { %v461_v3 = vsel %vm255_vm0, %v459_v0, %v460_v1 }
  0x4f   : > { %v1349_v5 = vpack.i.bf16 %v461_v3, %v381_v61 }
  0x50   : > { %1320 = vrot.lane.b32.xlu0 %v1284_v28, %s1365_s22 }
  0x52   : > { %1330 = vrot.lane.b32.xlu2 %v1329_v57, %s1364_s21 }
  0x54   : > { %1340 = vrot.lane.b32.xlu1 %v1339_v60, %s1369_s26  ;;  %s1179_s26 = sshll.u32 %s1762_s16, 3 }
  0x55   : > { %s1714_s29 = scalar_lea.vmem %s1760_s4, %s1179_s26 }
  0x58   : > { %1335 = vrot.lane.b32.xlu0 %v1334_v63, %s1367_s24 }
  0x5a   : > { %1345 = vrot.lane.b32.xlu2 %v1344_v2, %s1366_s23 }
  0x60   : > { %1350 = vrot.lane.b32.xlu0 %v1349_v5, %s1370_s27 }
  0x74   : > { %v1221_v16 = vpop.permute.xlu2 %1220 }
  0x75   : > { %v1223_v46 = vunpack.i.h.bf16 %v1221_v16  ;;  %v1222_v47 = vunpack.i.l.bf16 %v1221_v16 }
  0x7c   : > { %v1241_v22 = vpop.permute.xlu2 %1240 }
  0x7d   : > { %v1243_v38 = vunpack.i.h.bf16 %v1241_v22  ;;  %v1242_v40 = vunpack.i.l.bf16 %v1241_v22 }
  0x84   : > { %v1256_v28 = vpop.permute.xlu2 %1255 }
  0x85   : > { %v1258_v2 = vunpack.i.h.bf16 %v1256_v28  ;;  %v1257_v3 = vunpack.i.l.bf16 %v1256_v28 }
  0x86   : > { %v1216_v21 = vpop.permute.xlu1 %1215 }
  0x87   : > { %v1218_v18 = vunpack.i.h.bf16 %v1216_v21  ;;  %v1217_v33 = vunpack.i.l.bf16 %v1216_v21 }
  0x8a   : > { %v1226_v23 = vpop.permute.xlu0 %1225 }
  0x8b   : > { %v1228_v26 = vunpack.i.h.bf16 %v1226_v23  ;;  %v1227_v27 = vunpack.i.l.bf16 %v1226_v23 }
  0x8c   : > { %v1271_v49 = vpop.permute.xlu2 %1270 }
  0x8d   : > { %v499_v31 = vsel %vm497_vm2, %v1416_v4, %v1228_v26  ;;  %v498_v32 = vsel %vm497_vm2, %v1422_v10, %v1227_v27 }
  0x8e   : > { %v1236_v24 = vpop.permute.xlu1 %1235 }
  0x8f   : > { %v1238_v29 = vunpack.i.h.bf16 %v1236_v24  ;;  %v1237_v30 = vunpack.i.l.bf16 %v1236_v24  ;;  %v1272_v24 = vunpack.i.l.bf16 %v1271_v49 }
  0x92   : > { %v1231_v58 = vpop.permute.xlu0 %1230 }
  0x93   : > { %v1233_v7 = vunpack.i.h.bf16 %v1231_v58  ;;  %v1232_v8 = vunpack.i.l.bf16 %v1231_v58 }
  0x94   : > { %v1286_v16 = vpop.permute.xlu2 %1285 }
  0x95   : > { %v507_v34 = vsel %vm506_vm3, %v498_v32, %v1232_v8  ;;  %v508_v37 = vsel %vm506_vm3, %v499_v31, %v1233_v7  ;;  %v1288_v27 = vunpack.i.h.bf16 %v1286_v16  ;;  %v1287_v28 = vunpack.i.l.bf16 %v1286_v16 }
  0x96   : > { %v516_v41 = vsel %vm515_vm4, %v507_v34, %v1217_v33  ;;  %v517_v42 = vsel %vm515_vm4, %v508_v37, %v1218_v18  ;;  %v1251_v43 = vpop.permute.xlu1 %1250  ;;  %v486_v8 = vrot.slane %v1571_v59, 2 }
  0x97   : > { %v525_v44 = vsel %vm524_vm5, %v516_v41, %v1237_v30  ;;  %v526_v4 = vsel %vm524_vm5, %v517_v42, %v1238_v29  ;;  %v1253_v52 = vunpack.i.h.bf16 %v1251_v43  ;;  %v1252_v54 = vunpack.i.l.bf16 %v1251_v43 }
  0x98   : > { %v534_v10 = vsel %vm533_vm6, %v525_v44, %v1242_v40  ;;  %v535_v45 = vsel %vm533_vm6, %v526_v4, %v1243_v38  ;;  %v487_v29 = vrot.slane %v238_v62, 2 }
  0x99   : > { %v543_v57 = vsel %vm542_vm7, %v534_v10, %v1222_v47  ;;  %v544_v60 = vsel %vm542_vm7, %v535_v45, %v1223_v46  ;;  %v503_v5 = vsel %vm497_vm2, %v1450_v39, %v1253_v52  ;;  %v502_v9 = vsel %vm497_vm2, %v1446_v36, %v1252_v54 }
  0x9a   : > { %v1246_v48 = vpop.permute.xlu0 %1245  ;;  %v511_v12 = vsel %vm506_vm3, %v502_v9, %v1257_v3  ;;  %v512_v13 = vsel %vm506_vm3, %v503_v5, %v1258_v2  ;;  %v1273_v39 = vunpack.i.h.bf16 %v1271_v49  ;;  %v488_v33 = vsel %vm304_vm1, %v486_v8, %v487_v29 }
  0x9b   : > { %v1248_v50 = vunpack.i.h.bf16 %v1246_v48  ;;  %v1247_v51 = vunpack.i.l.bf16 %v1246_v48  ;;  %v567_v62 = vpack.c.bf16 %v488_v33, %v1560_v53 }
  0x9c   : > { %v1301_v40 = vpop.permute.xlu2 %1300 }
  0x9d   : > { %v552_v61 = vsel %vm551_vm8, %v543_v57, %v1247_v51  ;;  %v553_v63 = vsel %vm551_vm8, %v544_v60, %v1248_v50  ;;  %1160 = vmatmul.msk.bf16.gmra.mxu3 %vm497_vm2, %v567_v62  ;;  %v1303_v53 = vunpack.i.h.bf16 %v1301_v40  ;;  %v1302_v50 = vunpack.i.l.bf16 %v1301_v40 }
  0x9e   : > { %v560_v0 = vpack.c.bf16 %v553_v63, %v552_v61  ;;  %v1266_v1 = vpop.permute.xlu1 %1265 }
  0x9f   : > { %v1268_v17 = vunpack.i.h.bf16 %v1266_v1  ;;  %v1267_v19 = vunpack.i.l.bf16 %v1266_v1 }
  0xa0   : > { %660 = vmatmul.bf16.vlgmr.msra.gmra.mxu0 %v560_v0 }
  0xa2   : > { %v1261_v11 = vpop.permute.xlu0 %1260 }
  0xa3   : > { %v1263_v14 = vunpack.i.h.bf16 %v1261_v11  ;;  %v1262_v15 = vunpack.i.l.bf16 %v1261_v11 }
  0xa4   : > { %v1316_v51 = vpop.permute.xlu2 %1315 }
  0xa5   : > { %v521_v21 = vsel %vm515_vm4, %v512_v13, %v1263_v14  ;;  %v520_v22 = vsel %vm515_vm4, %v511_v12, %v1262_v15  ;;  %v1318_v63 = vunpack.i.h.bf16 %v1316_v51  ;;  %v1317_v0 = vunpack.i.l.bf16 %v1316_v51 }
  0xa6   : > { %v1281_v23 = vpop.permute.xlu1 %1280  ;;  %v529_v36 = vsel %vm524_vm5, %v520_v22, %v1267_v19  ;;  %v530_v25 = vsel %vm524_vm5, %v521_v21, %v1268_v17 }
  0xa7   : > { %v538_v30 = vsel %vm533_vm6, %v529_v36, %v1272_v24  ;;  %v539_v31 = vsel %vm533_vm6, %v530_v25, %v1273_v39  ;;  %v1283_v59 = vunpack.i.h.bf16 %v1281_v23  ;;  %v1282_v41 = vunpack.i.l.bf16 %v1281_v23 }
  0xa9   : > { %v501_v43 = vsel %vm497_vm2, %v1444_v35, %v1283_v59  ;;  %v500_v44 = vsel %vm497_vm2, %v1418_v6, %v1282_v41 }
  0xaa   : > { %v1276_v26 = vpop.permute.xlu0 %1275 }
  0xab   : > { %v1278_v58 = vunpack.i.h.bf16 %v1276_v26  ;;  %v1277_v7 = vunpack.i.l.bf16 %v1276_v26 }
  0xac   : > { %v1331_v21 = vpop.permute.xlu2 %1330 }
  0xad   : > { %v547_v32 = vsel %vm542_vm7, %v538_v30, %v1277_v7  ;;  %v548_v18 = vsel %vm542_vm7, %v539_v31, %v1278_v58  ;;  %v1333_v36 = vunpack.i.h.bf16 %v1331_v21  ;;  %v1332_v25 = vunpack.i.l.bf16 %v1331_v21 }
  0xae   : > { %v556_v34 = vsel %vm551_vm8, %v547_v32, %v1287_v28  ;;  %v557_v37 = vsel %vm551_vm8, %v548_v18, %v1288_v27  ;;  %v1296_v38 = vpop.permute.xlu1 %1295 }
  0xaf   : > { %v564_v55 = vpack.c.bf16 %v557_v37, %v556_v34  ;;  %v1298_v45 = vunpack.i.h.bf16 %v1296_v38  ;;  %v1297_v46 = vunpack.i.l.bf16 %v1296_v38 }
  0xb1   : > { %670 = vmatmul.bf16.vlgmr.msra.gmra.mxu2 %v564_v55 }
  0xb2   : > { %v1291_v42 = vpop.permute.xlu0 %1290 }
  0xb3   : > { %v1293_v4 = vunpack.i.h.bf16 %v1291_v42  ;;  %v1292_v10 = vunpack.i.l.bf16 %v1291_v42 }
  0xb5   : > { %v510_v47 = vsel %vm506_vm3, %v501_v43, %v1293_v4  ;;  %v509_v48 = vsel %vm506_vm3, %v500_v44, %v1292_v10  ;;  %v690_v4 = vpop.f32.mrf.mxu1  ;;  %v695_v10 = vpop.f32.mrf.mxu3 }
  0xb6   : > { %v1311_v49 = vpop.permute.xlu1 %1310  ;;  %v518_v52 = vsel %vm515_vm4, %v509_v48, %v1297_v46  ;;  %v519_v54 = vsel %vm515_vm4, %v510_v47, %v1298_v45  ;;  %v1684_v47 = vld [vmem:[%s1758_s2] ss:$0 sm:$0xff] }
  0xb7   : > { %v1313_v57 = vunpack.i.h.bf16 %v1311_v49  ;;  %v1312_v60 = vunpack.i.l.bf16 %v1311_v49  ;;  %v527_v1 = vsel %vm524_vm5, %v518_v52, %v1302_v50  ;;  %v528_v2 = vsel %vm524_vm5, %v519_v54, %v1303_v53  ;;  %v1690_v53 = vld [vmem:[%s1759_s3] ss:$0 sm:$0xff] }
  0xba   : > { %v1306_v35 = vpop.permute.xlu0 %1305 }
  0xbb   : > { %v1308_v6 = vunpack.i.h.bf16 %v1306_v35  ;;  %v1307_v61 = vunpack.i.l.bf16 %v1306_v35 }
  0xbd   : > { %v536_v3 = vsel %vm533_vm6, %v527_v1, %v1307_v61  ;;  %v537_v5 = vsel %vm533_vm6, %v528_v2, %v1308_v6  ;;  %v692_v48 = vpop.f32.mrf.mxu1  ;;  %v697_v52 = vpop.f32.mrf.mxu3 }
  0xbe   : > { %v545_v9 = vsel %vm542_vm7, %v536_v3, %v1312_v60  ;;  %v546_v11 = vsel %vm542_vm7, %v537_v5, %v1313_v57  ;;  %v1326_v15 = vpop.permute.xlu1 %1325 }
  0xbf   : > { %v554_v12 = vsel %vm551_vm8, %v545_v9, %v1317_v0  ;;  %v555_v13 = vsel %vm551_vm8, %v546_v11, %v1318_v63  ;;  %v1328_v22 = vunpack.i.h.bf16 %v1326_v15  ;;  %v1327_v23 = vunpack.i.l.bf16 %v1326_v15 }
  0xc0   : > { %v562_v14 = vpack.c.bf16 %v555_v13, %v554_v12 }
  0xc2   : > { %v1321_v16 = vpop.permute.xlu0 %1320  ;;  %665 = vmatmul.bf16.gmra.mxu0 %v562_v14 }
  0xc3   : > { %v1323_v17 = vunpack.i.h.bf16 %v1321_v16  ;;  %v1322_v19 = vunpack.i.l.bf16 %v1321_v16 }
  0xc5   : > { %v505_v39 = vsel %vm497_vm2, %v1506_v20, %v1323_v17  ;;  %v504_v24 = vsel %vm497_vm2, %v1469_v56, %v1322_v19  ;;  %v1346_v20 = vpop.permute.xlu2 %1345  ;;  %v700_v3 = vpop.f32.mrf.mxu3 }
  0xc6   : > { %v513_v26 = vsel %vm506_vm3, %v504_v24, %v1327_v23  ;;  %v514_v27 = vsel %vm506_vm3, %v505_v39, %v1328_v22  ;;  %v1341_v58 = vpop.permute.xlu1 %1340  ;;  %v1348_v33 = vunpack.i.h.bf16 %v1346_v20  ;;  %v1347_v34 = vunpack.i.l.bf16 %v1346_v20 }
  0xc7   : > { %v522_v29 = vsel %vm515_vm4, %v513_v26, %v1332_v25  ;;  %v523_v30 = vsel %vm515_vm4, %v514_v27, %v1333_v36  ;;  %v1343_v31 = vunpack.i.h.bf16 %v1341_v58  ;;  %v1342_v32 = vunpack.i.l.bf16 %v1341_v58 }
  0xca   : > { %v1336_v28 = vpop.permute.xlu0 %1335 }
  0xcb   : > { %v1338_v7 = vunpack.i.h.bf16 %v1336_v28  ;;  %v1337_v8 = vunpack.i.l.bf16 %v1336_v28 }
  0xcd   : > { %v531_v18 = vsel %vm524_vm5, %v522_v29, %v1337_v8  ;;  %v532_v56 = vsel %vm524_vm5, %v523_v30, %v1338_v7  ;;  %v702_v58 = vpop.f32.mrf.mxu3 }
  0xce   : > { %v540_v37 = vsel %vm533_vm6, %v531_v18, %v1342_v32  ;;  %v541_v38 = vsel %vm533_vm6, %v532_v56, %v1343_v31 }
  0xcf   : > { %v549_v55 = vsel %vm542_vm7, %v540_v37, %v1347_v34  ;;  %v550_v62 = vsel %vm542_vm7, %v541_v38, %v1348_v33 }
  0xd2   : > { %v1351_v40 = vpop.permute.xlu0 %1350 }
  0xd3   : > { %v1353_v59 = vunpack.i.h.bf16 %v1351_v40  ;;  %v1352_v41 = vunpack.i.l.bf16 %v1351_v40 }
  0xd5   : > { %v558_v42 = vsel %vm551_vm8, %v549_v55, %v1352_v41  ;;  %v559_v43 = vsel %vm551_vm8, %v550_v62, %v1353_v59 }
  0xd6   : > { %v566_v44 = vpack.c.bf16 %v559_v43, %v558_v42 }
  0xd8   : > { %675 = vmatmul.bf16.gmra.mxu2 %v566_v44 }
 0x11d   : > { %v661_v45 = vpop.f32.mrf.mxu0 }
 0x11e   : > { %v691_v46 = vadd.f32 %v690_v4, %v661_v45 }
 0x120   : > { %v714_v49 = vmul.f32 %v1684_v47, %v691_v46 }
 0x122   : > { %v726_v54 = vadd.f32 %v1690_v53, %v714_v49 }
 0x124   : > { %v734_v60 = vmax.f32 %v726_v54, 0.0 }
 0x125   : > { %v663_v50 = vpop.f32.mrf.mxu0 }
 0x126   : > { %v693_v51 = vadd.f32 %v692_v48, %v663_v50 }
 0x128   : > { %v715_v35 = vmul.f32 %v1684_v47, %v693_v51 }
 0x12a   : > { %v727_v57 = vadd.f32 %v1690_v53, %v715_v35 }
 0x12c   : > { %v735_v6 = vmax.f32 %v727_v57, 0.0 }
 0x12e   : > { %v742_v61 = vmax.f32 %v734_v60, %v735_v6 }
 0x130   : > { %v750_v63 = vrot.slane %v742_v61, 2  ;;  %v751_v0 = vrot.slane %v742_v61, 4  ;;  %v752_v1 = vrot.slane %v742_v61, 6  ;;  %v1161_v2 = vrot.slane %v742_v61, 9 }
 0x132   : > { %v1162_v5 = vrot.slane %v750_v63, 9  ;;  %v1163_v9 = vrot.slane %v751_v0, 9  ;;  %v1164_v11 = vrot.slane %v752_v1, 9  ;;  %v822_v12 = vmax.f32 %v742_v61, %v1161_v2 }
 0x134   : > { %v823_v13 = vmax.f32 %v750_v63, %v1162_v5  ;;  %v824_v14 = vmax.f32 %v751_v0, %v1163_v9  ;;  %v825_v15 = vmax.f32 %v752_v1, %v1164_v11  ;;  %v838_v16 = vpack.c.bf16 %v822_v12, %v822_v12  ;;  %v671_v17 = vpop.f32.mrf.mxu2 }
 0x135   : > { %v701_v8 = vadd.f32 %v700_v3, %v671_v17 }
 0x136   : > { %v839_v19 = vpack.c.bf16 %v823_v13, %v823_v13  ;;  %v840_v21 = vpack.c.bf16 %v824_v14, %v824_v14  ;;  %v841_v22 = vpack.c.bf16 %v825_v15, %v825_v15  ;;  %v870_v23 = vrot.slane %v838_v16, 2 }
 0x137   : > { %v718_v32 = vmul.f32 %v1684_v47, %v701_v8 }
 0x138   : > { %v871_v39 = vrot.slane %v839_v19, 2  ;;  %v872_v24 = vrot.slane %v840_v21, 2  ;;  %v873_v36 = vrot.slane %v841_v22, 2  ;;  %v889_v25 = vsel %vm886_vm9, %v838_v16, %v870_v23 }
 0x139   : > { %935 = vst [vmem:[#allocation1] ss:$2 sm:$0xff] %v889_v25  ;;  %v730_v59 = vadd.f32 %v1690_v53, %v718_v32 }
 0x13a   : > { %v892_v26 = vsel %vm886_vm9, %v839_v19, %v871_v39  ;;  %v895_v27 = vsel %vm886_vm9, %v840_v21, %v872_v24  ;;  %v898_v28 = vsel %vm886_vm9, %v841_v22, %v873_v36 }
 0x13b   : > { %939 = vst [vmem:[#allocation1 + $0x10] ss:$2 sm:$0xff] %v892_v26  ;;  %v738_v46 = vmax.f32 %v730_v59, 0.0 }
 0x13c   : > { %943 = vst [vmem:[#allocation1 + $0x20] ss:$2 sm:$0xff] %v895_v27  ;;  %v673_v7 = vpop.f32.mrf.mxu2 }
 0x13d   : > { %947 = vst [vmem:[#allocation1 + $0x30] ss:$2 sm:$0xff] %v898_v28  ;;  %v703_v29 = vadd.f32 %v702_v58, %v673_v7 }
 0x13f   : > { %v719_v30 = vmul.f32 %v1684_v47, %v703_v29  ;;  %v666_v31 = vpop.f32.mrf.mxu0 }
 0x140   : > { %v696_v20 = vadd.f32 %v695_v10, %v666_v31  ;;  %v936_v33 = vld.sshfl [vmem:[#allocation1] sm:$0xff pattern:$0x75643120]  ;;  %v705_v31 = vpop.f32.mrf.mxu3 }
 0x141   : > { %v731_v56 = vadd.f32 %v1690_v53, %v719_v30  ;;  %v986_v62 = vunpack.c.l.b16 %v936_v33 }
 0x142   : > { %v940_v18 = vld.sshfl [vmem:[#allocation1 + $0x10] sm:$0xff pattern:$0x75643120]  ;;  %v716_v55 = vmul.f32 %v1684_v47, %v696_v20 }
 0x143   : > { %v944_v34 = vld.sshfl [vmem:[#allocation1 + $0x20] sm:$0xff pattern:$0x75643120]  ;;  %v987_v37 = vunpack.c.l.b16 %v940_v18  ;;  %v739_v44 = vmax.f32 %v731_v56, 0.0 }
 0x144   : > { %v948_v38 = vld.sshfl [vmem:[#allocation1 + $0x30] sm:$0xff pattern:$0x75643120]  ;;  %v988_v40 = vunpack.c.l.b16 %v944_v34  ;;  %v728_v48 = vadd.f32 %v1690_v53, %v716_v55 }
 0x145   : > { %v1002_v41 = vrot.slane %v987_v37, 7  ;;  %v989_v42 = vunpack.c.l.b16 %v948_v38  ;;  %v744_v54 = vmax.f32 %v738_v46, %v739_v44 }
 0x146   : > { %v1005_v43 = vrot.slane %v988_v40, 6  ;;  %v736_v60 = vmax.f32 %v728_v48, 0.0 }
 0x147   : > { %v668_v4 = vpop.f32.mrf.mxu0  ;;  %v1004_v45 = vsel %vm1003_vm10, %v1002_v41, %v986_v62  ;;  %v1008_v51 = vrot.slane %v989_v42, 5  ;;  %v756_v61 = vrot.slane %v744_v54, 2  ;;  %v757_v1 = vrot.slane %v744_v54, 4 }
 0x148   : > { %v698_v10 = vadd.f32 %v697_v52, %v668_v4  ;;  %v1007_v50 = vsel %vm1006_vm11, %v1005_v43, %v1004_v45  ;;  %v758_v2 = vrot.slane %v744_v54, 6  ;;  %v1169_v3 = vrot.slane %v744_v54, 9  ;;  %v707_v46 = vpop.f32.mrf.mxu3 }
 0x149   : > { %v1010_v57 = vsel %vm1009_vm12, %v1008_v51, %v1007_v50  ;;  %v1170_v13 = vrot.slane %v756_v61, 9  ;;  %v1171_v21 = vrot.slane %v757_v1, 9 }
 0x14a   : > { %v717_v49 = vmul.f32 %v1684_v47, %v698_v10  ;;  %v1029_v52 = vpack.c.b16 %v1010_v57, %v1010_v57  ;;  %v1172_v22 = vrot.slane %v758_v2, 9  ;;  %v830_v23 = vmax.f32 %v744_v54, %v1169_v3 }
 0x14b   : > { %v831_v26 = vmax.f32 %v756_v61, %v1170_v13  ;;  %v832_v8 = vmax.f32 %v757_v1, %v1171_v21 }
 0x14c   : > { %v729_v35 = vadd.f32 %v1690_v53, %v717_v49  ;;  %v1033_v0 = vrot.slane %v1029_v52, 2  ;;  %v833_v29 = vmax.f32 %v758_v2, %v1172_v22  ;;  %v846_v30 = vpack.c.bf16 %v830_v23, %v830_v23 }
 0x14d   : > { %v847_v34 = vpack.c.bf16 %v831_v26, %v831_v26  ;;  %v848_v59 = vpack.c.bf16 %v832_v8, %v832_v8 }
 0x14e   : > { %v737_v6 = vmax.f32 %v729_v35, 0.0  ;;  %v1039_v14 = vsel %vm886_vm9, %v1029_v52, %v1033_v0  ;;  %v849_v41 = vpack.c.bf16 %v833_v29, %v833_v29  ;;  %v878_v55 = vrot.slane %v846_v30, 2 }
 0x14f   : > { %1054 = vst.msk [vmem:[%s1714_s29] sm:$0x3] %vm1053_vm13, %v1039_v14  ;;  %v879_v42 = vrot.slane %v847_v34, 2  ;;  %v880_v43 = vrot.slane %v848_v59, 2 }
 0x150   : > { %v743_v63 = vmax.f32 %v736_v60, %v737_v6  ;;  %v881_v44 = vrot.slane %v849_v41, 2  ;;  %v913_v4 = vsel %vm886_vm9, %v846_v30, %v878_v55 }
 0x151   : > { %v916_v49 = vsel %vm886_vm9, %v847_v34, %v879_v42  ;;  %v919_v54 = vsel %vm886_vm9, %v848_v59, %v880_v43 }
 0x152   : > { %v753_v5 = vrot.slane %v743_v63, 2  ;;  %v754_v9 = vrot.slane %v743_v63, 4  ;;  %v755_v11 = vrot.slane %v743_v63, 6  ;;  %v1165_v12 = vrot.slane %v743_v63, 9 }
 0x153   : > { %v922_v60 = vsel %vm886_vm9, %v849_v41, %v881_v44 }
 0x154   : > { %v1166_v15 = vrot.slane %v753_v5, 9  ;;  %v1167_v16 = vrot.slane %v754_v9, 9  ;;  %v1168_v17 = vrot.slane %v755_v11, 9  ;;  %v826_v19 = vmax.f32 %v743_v63, %v1165_v12 }
 0x156   : > { %v827_v39 = vmax.f32 %v753_v5, %v1166_v15  ;;  %v828_v24 = vmax.f32 %v754_v9, %v1167_v16  ;;  %v829_v36 = vmax.f32 %v755_v11, %v1168_v17  ;;  %v842_v25 = vpack.c.bf16 %v826_v19, %v826_v19 }
 0x158   : > { %v843_v27 = vpack.c.bf16 %v827_v39, %v827_v39  ;;  %v844_v28 = vpack.c.bf16 %v828_v24, %v828_v24  ;;  %v845_v58 = vpack.c.bf16 %v829_v36, %v829_v36  ;;  %v874_v7 = vrot.slane %v842_v25, 2 }
 0x15a   : > { %v875_v32 = vrot.slane %v843_v27, 2  ;;  %v876_v20 = vrot.slane %v844_v28, 2  ;;  %v877_v18 = vrot.slane %v845_v58, 2  ;;  %v901_v56 = vsel %vm886_vm9, %v842_v25, %v874_v7 }
 0x15b   : > { %950 = vst [vmem:[#allocation1] ss:$2 sm:$0xff] %v901_v56  ;;  %v676_v33 = vpop.f32.mrf.mxu2 }
 0x15c   : > { %v904_v37 = vsel %vm886_vm9, %v843_v27, %v875_v32  ;;  %v907_v38 = vsel %vm886_vm9, %v844_v28, %v876_v20  ;;  %v910_v40 = vsel %vm886_vm9, %v845_v58, %v877_v18  ;;  %v706_v62 = vadd.f32 %v705_v31, %v676_v33 }
 0x15d   : > { %953 = vst [vmem:[#allocation1 + $0x10] ss:$2 sm:$0xff] %v904_v37 }
 0x15e   : > { %956 = vst [vmem:[#allocation1 + $0x20] ss:$2 sm:$0xff] %v907_v38  ;;  %v720_v45 = vmul.f32 %v1684_v47, %v706_v62 }
 0x15f   : > { %959 = vst [vmem:[#allocation1 + $0x30] ss:$2 sm:$0xff] %v910_v40 }
 0x160   : > { %v732_v61 = vadd.f32 %v1690_v53, %v720_v45 }
 0x162   : > { %v951_v10 = vld.sshfl [vmem:[#allocation1] sm:$0xff pattern:$0x75643120]  ;;  %v740_v13 = vmax.f32 %v732_v61, 0.0 }
 0x163   : > { %962 = vst [vmem:[#allocation1] ss:$2 sm:$0xff] %v913_v4  ;;  %v678_v48 = vpop.f32.mrf.mxu2  ;;  %v990_v0 = vunpack.c.l.b16 %v951_v10 }
 0x164   : > { %v954_v50 = vld.sshfl [vmem:[#allocation1 + $0x10] sm:$0xff pattern:$0x75643120]  ;;  %v708_v51 = vadd.f32 %v707_v46, %v678_v48 }
 0x165   : > { %v957_v35 = vld.sshfl [vmem:[#allocation1 + $0x20] sm:$0xff pattern:$0x75643120]  ;;  %965 = vst [vmem:[#allocation1 + $0x10] ss:$2 sm:$0xff] %v916_v49  ;;  %v991_v57 = vunpack.c.l.b16 %v954_v50 }
 0x166   : > { %v960_v6 = vld.sshfl [vmem:[#allocation1 + $0x30] sm:$0xff pattern:$0x75643120]  ;;  %968 = vst [vmem:[#allocation1 + $0x20] ss:$2 sm:$0xff] %v919_v54  ;;  %v992_v52 = vunpack.c.l.b16 %v957_v35  ;;  %v721_v63 = vmul.f32 %v1684_v47, %v708_v51 }
 0x167   : > { %971 = vst [vmem:[#allocation1 + $0x30] ss:$2 sm:$0xff] %v922_v60  ;;  %v993_v1 = vunpack.c.l.b16 %v960_v6  ;;  %v1011_v2 = vrot.slane %v991_v57, 7 }
 0x168   : > { %v1013_v3 = vrot.slane %v992_v52, 6  ;;  %v733_v5 = vadd.f32 %v1690_v53, %v721_v63 }
 0x169   : > { %v1012_v9 = vsel %vm1003_vm10, %v1011_v2, %v990_v0  ;;  %v1015_v11 = vrot.slane %v993_v1, 5 }
 0x16a   : > { %v1014_v12 = vsel %vm1006_vm11, %v1013_v3, %v1012_v9  ;;  %v741_v14 = vmax.f32 %v733_v5, 0.0  ;;  %v963_v19 = vld.sshfl [vmem:[#allocation1] sm:$0xff pattern:$0x75643120] }
 0x16b   : > { %v1016_v15 = vsel %vm1009_vm12, %v1015_v11, %v1014_v12  ;;  %v994_v26 = vunpack.c.l.b16 %v963_v19 }
 0x16c   : > { %v1030_v16 = vpack.c.b16 %v1016_v15, %v1016_v15  ;;  %v745_v17 = vmax.f32 %v740_v13, %v741_v14  ;;  %v966_v47 = vld.sshfl [vmem:[#allocation1 + $0x10] sm:$0xff pattern:$0x75643120] }
 0x16d   : > { %v969_v21 = vld.sshfl [vmem:[#allocation1 + $0x20] sm:$0xff pattern:$0x75643120]  ;;  %v995_v22 = vunpack.c.l.b16 %v966_v47 }
 0x16e   : > { %v1034_v23 = vrot.slane %v1030_v16, 2  ;;  %v759_v39 = vrot.slane %v745_v17, 2  ;;  %v760_v24 = vrot.slane %v745_v17, 4  ;;  %v761_v53 = vrot.slane %v745_v17, 6 }
 0x16f   : > { %v1173_v36 = vrot.slane %v745_v17, 9  ;;  %v972_v25 = vld.sshfl [vmem:[#allocation1 + $0x30] sm:$0xff pattern:$0x75643120]  ;;  %v996_v27 = vunpack.c.l.b16 %v969_v21  ;;  %v1017_v28 = vrot.slane %v995_v22, 7 }
 0x170   : > { %v1042_v58 = vsel %vm886_vm9, %v1030_v16, %v1034_v23  ;;  %v1174_v7 = vrot.slane %v759_v39, 9  ;;  %v1175_v8 = vrot.slane %v760_v24, 9  ;;  %v1176_v29 = vrot.slane %v761_v53, 9 }
 0x171   : > { %1055 = vst.msk [vmem:[%s1714_s29 + $0x2] sm:$0x3] %vm1053_vm13, %v1042_v58  ;;  %v834_v30 = vmax.f32 %v745_v17, %v1173_v36  ;;  %v997_v31 = vunpack.c.l.b16 %v972_v25  ;;  %v1018_v32 = vsel %vm1003_vm10, %v1017_v28, %v994_v26  ;;  %v1019_v20 = vrot.slane %v996_v27, 6 }
 0x172   : > { %v835_v18 = vmax.f32 %v759_v39, %v1174_v7  ;;  %v836_v56 = vmax.f32 %v760_v24, %v1175_v8  ;;  %v837_v33 = vmax.f32 %v761_v53, %v1176_v29 }
 0x173   : > { %v850_v34 = vpack.c.bf16 %v834_v30, %v834_v30  ;;  %v1020_v37 = vsel %vm1006_vm11, %v1019_v20, %v1018_v32  ;;  %v1021_v38 = vrot.slane %v997_v31, 5 }
 0x174   : > { %v851_v40 = vpack.c.bf16 %v835_v18, %v835_v18  ;;  %v852_v59 = vpack.c.bf16 %v836_v56, %v836_v56  ;;  %v853_v41 = vpack.c.bf16 %v837_v33, %v837_v33 }
 0x175   : > { %v882_v55 = vrot.slane %v850_v34, 2  ;;  %v1022_v62 = vsel %vm1009_vm12, %v1021_v38, %v1020_v37 }
 0x176   : > { %v883_v42 = vrot.slane %v851_v40, 2  ;;  %v884_v43 = vrot.slane %v852_v59, 2  ;;  %v885_v44 = vrot.slane %v853_v41, 2  ;;  %v1031_v4 = vpack.c.b16 %v1022_v62, %v1022_v62 }
 0x177   : > { %v925_v10 = vsel %vm886_vm9, %v850_v34, %v882_v55 }
 0x178   : > { %v928_v45 = vsel %vm886_vm9, %v851_v40, %v883_v42  ;;  %v931_v46 = vsel %vm886_vm9, %v852_v59, %v884_v43  ;;  %v934_v48 = vsel %vm886_vm9, %v853_v41, %v885_v44  ;;  %974 = vst [vmem:[#allocation1] ss:$2 sm:$0xff] %v925_v10  ;;  %v1035_v49 = vrot.slane %v1031_v4, 2 }
 0x179   : > { %977 = vst [vmem:[#allocation1 + $0x10] ss:$2 sm:$0xff] %v928_v45 }
 0x17a   : > { %980 = vst [vmem:[#allocation1 + $0x20] ss:$2 sm:$0xff] %v931_v46  ;;  %v1045_v50 = vsel %vm886_vm9, %v1031_v4, %v1035_v49 }
 0x17b   : > { %983 = vst [vmem:[#allocation1 + $0x30] ss:$2 sm:$0xff] %v934_v48 }
 0x17c   : > { %1056 = vst.msk [vmem:[%s1714_s29 + $0x4] sm:$0x3] %vm1053_vm13, %v1045_v50 }
 0x17f   : > { %v975_v51 = vld.sshfl [vmem:[#allocation1] sm:$0xff pattern:$0x75643120] }
 0x180   : > { %v978_v54 = vld.sshfl [vmem:[#allocation1 + $0x10] sm:$0xff pattern:$0x75643120]  ;;  %v998_v52 = vunpack.c.l.b16 %v975_v51 }
 0x181   : > { %v981_v35 = vld.sshfl [vmem:[#allocation1 + $0x20] sm:$0xff pattern:$0x75643120]  ;;  %v999_v57 = vunpack.c.l.b16 %v978_v54 }
 0x182   : > { %v984_v60 = vld.sshfl [vmem:[#allocation1 + $0x30] sm:$0xff pattern:$0x75643120]  ;;  %v1000_v6 = vunpack.c.l.b16 %v981_v35 }
 0x183   : > { %v1001_v61 = vunpack.c.l.b16 %v984_v60  ;;  %v1023_v63 = vrot.slane %v999_v57, 7 }
 0x184   : > { %v1025_v0 = vrot.slane %v1000_v6, 6 }
 0x185   : > { %v1024_v1 = vsel %vm1003_vm10, %v1023_v63, %v998_v52  ;;  %v1027_v2 = vrot.slane %v1001_v61, 5 }
 0x186   : > { %v1026_v3 = vsel %vm1006_vm11, %v1025_v0, %v1024_v1 }
 0x187   : > { %v1028_v5 = vsel %vm1009_vm12, %v1027_v2, %v1026_v3 }
 0x188   : > { %v1032_v9 = vpack.c.b16 %v1028_v5, %v1028_v5 }
 0x18a   : > { %v1036_v11 = vrot.slane %v1032_v9, 2 }
 0x18c   : > { %v1048_v12 = vsel %vm886_vm9, %v1032_v9, %v1036_v11 }
 0x18d   : > { %1057 = vst.msk [vmem:[%s1714_s29 + $0x6] sm:$0x3] %vm1053_vm13, %v1048_v12 }
 0x18e PF: > { %s14_s15 = sadd.s32 1, %s1362_s15  }
 0x18f   : > { %p11_p4 = scmp.ge.s32.totalorder %s14_s15, 4  }
 0x191   :  { %13 = sbr.rel (!%p11_p4) target bundleno = 1 (0x1), region = 69 }

// kernel: vgg_forward.7
= control target key start
LH: loop header
LB: loop body
LE: loop exit
PB: predicated region body
PF: predicated region fallthrough
CT: control target
= control target key end

     0   :  { %s1262_s0 = inlined_call_operand.vmem [shape: bf16[2,1024], index: 0, kind: input, shape index: {}]   ;;  %s1263_s1 = inlined_call_operand.vmem [shape: bf16[1024,10], index: 1, kind: input, shape index: {}]   ;;  %s1264_s2 = inlined_call_operand.vmem [shape: f32[1,10], index: 2, kind: input, shape index: {}]   ;;  %s1265_s3 = inlined_call_operand.hbm [shape: f32[2,10], index: 3, kind: output, shape index: {}]  }
   0x1   :  { %v951_v0 = vld [vmem:[%s1263_s1 + $0x38] sm:$0xff]  ;;  %v950_v4 = vld [vmem:[%s1263_s1 + $0x30] sm:$0xff]  ;;  %v949_v8 = vld [vmem:[%s1263_s1 + $0x28] sm:$0xff] }
   0x2   :  { %v959_v1 = vld [vmem:[%s1263_s1 + $0x78] sm:$0xff]  ;;  %550 = vmatpush.bf16.msra.mxu0 %v951_v0  ;;  %v958_v5 = vld [vmem:[%s1263_s1 + $0x70] sm:$0xff]  ;;  %v957_v9 = vld [vmem:[%s1263_s1 + $0x68] sm:$0xff] }
   0x3   :  { %v967_v2 = vld [vmem:[%s1263_s1 + $0xb8] sm:$0xff]  ;;  %563 = vmatpush.bf16.msra.mxu1 %v959_v1  ;;  %v966_v6 = vld [vmem:[%s1263_s1 + $0xb0] sm:$0xff]  ;;  %v965_v10 = vld [vmem:[%s1263_s1 + $0xa8] sm:$0xff] }
   0x4   :  { %v975_v3 = vld [vmem:[%s1263_s1 + $0xf8] sm:$0xff]  ;;  %576 = vmatpush.bf16.msra.mxu2 %v967_v2  ;;  %v974_v7 = vld [vmem:[%s1263_s1 + $0xf0] sm:$0xff]  ;;  %v973_v11 = vld [vmem:[%s1263_s1 + $0xe8] sm:$0xff] }
   0x5   :  { %589 = vmatpush.bf16.msra.mxu3 %v975_v3  ;;  %v948_v12 = vld [vmem:[%s1263_s1 + $0x20] sm:$0xff]  ;;  %v947_v17 = vld [vmem:[%s1263_s1 + $0x18] sm:$0xff]  ;;  %v946_v21 = vld [vmem:[%s1263_s1 + $0x10] sm:$0xff] }
   0x6   :  { %551 = vmatpush.bf16.msra.mxu0 %v950_v4  ;;  %v956_v13 = vld [vmem:[%s1263_s1 + $0x60] sm:$0xff]  ;;  %v955_v18 = vld [vmem:[%s1263_s1 + $0x58] sm:$0xff]  ;;  %v954_v22 = vld [vmem:[%s1263_s1 + $0x50] sm:$0xff] }
   0x7   :  { %564 = vmatpush.bf16.msra.mxu1 %v958_v5  ;;  %v964_v14 = vld [vmem:[%s1263_s1 + $0xa0] sm:$0xff]  ;;  %v963_v19 = vld [vmem:[%s1263_s1 + $0x98] sm:$0xff] }
   0x8   :  { %577 = vmatpush.bf16.msra.mxu2 %v966_v6  ;;  %v972_v15 = vld [vmem:[%s1263_s1 + $0xe0] sm:$0xff]  ;;  %v971_v20 = vld [vmem:[%s1263_s1 + $0xd8] sm:$0xff] }
   0x9   :  { %590 = vmatpush.bf16.msra.mxu3 %v974_v7  ;;  %v15_v16 = vld [vmem:[%s1262_s0] sm:$0xff] }
   0xa   :  { %552 = vmatpush.bf16.msra.mxu0 %v949_v8  ;;  %149 = vst [vmem:[#allocation1] ss:$9 sm:$0xff] %v15_v16 }
   0xb   :  { %565 = vmatpush.bf16.msra.mxu1 %v957_v9 }
   0xc   :  { %578 = vmatpush.bf16.msra.mxu2 %v965_v10 }
   0xd   :  { %591 = vmatpush.bf16.msra.mxu3 %v973_v11 }
   0xe   :  { %553 = vmatpush.bf16.msra.mxu0 %v948_v12 }
   0xf   :  { %566 = vmatpush.bf16.msra.mxu1 %v956_v13 }
  0x10   :  { %579 = vmatpush.bf16.msra.mxu2 %v964_v14 }
  0x11   :  { %592 = vmatpush.bf16.msra.mxu3 %v972_v15 }
  0x12   :  { %554 = vmatpush.bf16.msra.mxu0 %v947_v17 }
  0x13   :  { %567 = vmatpush.bf16.msra.mxu1 %v955_v18 }
  0x14   :  { %8 = vsyncpa [#allocation3], 0  ;;  %580 = vmatpush.bf16.msra.mxu2 %v963_v19  ;;  %v962_v23 = vld [vmem:[%s1263_s1 + $0x90] sm:$0xff]  ;;  %v945_v25 = vld [vmem:[%s1263_s1 + $0x8] sm:$0xff]  ;;  %vm655_vm0 = vcmask 74752   ;;  %s679_s7 = sshll.u32 %s1265_s3, 4  ;;  %s680_s7 = int_to_ptr.hbm [resolvable:$true] %s679_s7 }
  0x15   :  { %593 = vmatpush.bf16.msra.mxu3 %v971_v20  ;;  %v970_v24 = vld [vmem:[%s1263_s1 + $0xd0] sm:$0xff]  ;;  %v953_v26 = vld [vmem:[%s1263_s1 + $0x48] sm:$0xff]  ;;  %v944_v29 = vld [vmem:[%s1263_s1] sm:$0xff] }
  0x16   :  { %555 = vmatpush.bf16.msra.mxu0 %v946_v21  ;;  %v961_v27 = vld [vmem:[%s1263_s1 + $0x88] sm:$0xff]  ;;  %v952_v30 = vld [vmem:[%s1263_s1 + $0x40] sm:$0xff]  ;;  %v983_v33 = vld [vmem:[%s1263_s1 + $0x138] sm:$0xff] }
  0x17   :  { %568 = vmatpush.bf16.msra.mxu1 %v954_v22  ;;  %v969_v28 = vld [vmem:[%s1263_s1 + $0xc8] sm:$0xff]  ;;  %v960_v31 = vld [vmem:[%s1263_s1 + $0x80] sm:$0xff]  ;;  %v991_v34 = vld [vmem:[%s1263_s1 + $0x178] sm:$0xff] }
  0x18   :  { %581 = vmatpush.bf16.msra.mxu2 %v962_v23  ;;  %v968_v32 = vld [vmem:[%s1263_s1 + $0xc0] sm:$0xff]  ;;  %v999_v35 = vld [vmem:[%s1263_s1 + $0x1b8] sm:$0xff]  ;;  %v982_v37 = vld [vmem:[%s1263_s1 + $0x130] sm:$0xff] }
  0x19   :  { %594 = vmatpush.bf16.msra.mxu3 %v970_v24  ;;  %v1007_v36 = vld [vmem:[%s1263_s1 + $0x1f8] sm:$0xff]  ;;  %v150_v39 = vld [vmem:[#allocation1] sm:$0xff]  ;;  %v990_v40 = vld [vmem:[%s1263_s1 + $0x170] sm:$0xff] }
  0x1a   :  { %556 = vmatpush.bf16.msra.mxu0 %v945_v25  ;;  %v152_v38 = vld [vmem:[#allocation1 + $0x12] sm:$0xff]  ;;  %v153_v41 = vld [vmem:[#allocation1 + $0x1b] sm:$0xff]  ;;  %v151_v42 = vld [vmem:[#allocation1 + $0x9] sm:$0xff] }
  0x1b   :  { %569 = vmatpush.bf16.msra.mxu1 %v953_v26  ;;  %v998_v43 = vld [vmem:[%s1263_s1 + $0x1b0] sm:$0xff]  ;;  %v981_v45 = vld [vmem:[%s1263_s1 + $0x128] sm:$0xff]  ;;  %v980_v49 = vld [vmem:[%s1263_s1 + $0x120] sm:$0xff] }
  0x1c   :  { %582 = vmatpush.bf16.msra.mxu2 %v961_v27  ;;  %v1006_v44 = vld [vmem:[%s1263_s1 + $0x1f0] sm:$0xff]  ;;  %v989_v46 = vld [vmem:[%s1263_s1 + $0x168] sm:$0xff]  ;;  %v988_v50 = vld [vmem:[%s1263_s1 + $0x160] sm:$0xff] }
  0x1d   :  { %595 = vmatpush.bf16.msra.mxu3 %v969_v28  ;;  %v997_v47 = vld [vmem:[%s1263_s1 + $0x1a8] sm:$0xff]  ;;  %v996_v51 = vld [vmem:[%s1263_s1 + $0x1a0] sm:$0xff]  ;;  %v979_v53 = vld [vmem:[%s1263_s1 + $0x118] sm:$0xff] }
  0x1e   :  { %557 = vmatpush.bf16.msra.mxu0 %v944_v29  ;;  %v1005_v48 = vld [vmem:[%s1263_s1 + $0x1e8] sm:$0xff]  ;;  %v1004_v52 = vld [vmem:[%s1263_s1 + $0x1e0] sm:$0xff]  ;;  %v987_v54 = vld [vmem:[%s1263_s1 + $0x158] sm:$0xff] }
  0x1f   :  { %570 = vmatpush.bf16.msra.mxu1 %v952_v30  ;;  %v995_v55 = vld [vmem:[%s1263_s1 + $0x198] sm:$0xff]  ;;  %v978_v57 = vld [vmem:[%s1263_s1 + $0x110] sm:$0xff]  ;;  %v977_v61 = vld [vmem:[%s1263_s1 + $0x108] sm:$0xff] }
  0x20   :  { %583 = vmatpush.bf16.msra.mxu2 %v960_v31  ;;  %v1003_v56 = vld [vmem:[%s1263_s1 + $0x1d8] sm:$0xff]  ;;  %v986_v58 = vld [vmem:[%s1263_s1 + $0x150] sm:$0xff]  ;;  %v985_v62 = vld [vmem:[%s1263_s1 + $0x148] sm:$0xff] }
  0x21   :  { %596 = vmatpush.bf16.msra.mxu3 %v968_v32  ;;  %558 = vmatmul.bf16.vlgmr.msra.gmra.mxu0 %v150_v39  ;;  %v994_v59 = vld [vmem:[%s1263_s1 + $0x190] sm:$0xff]  ;;  %v993_v63 = vld [vmem:[%s1263_s1 + $0x188] sm:$0xff]  ;;  %v976_v1 = vld [vmem:[%s1263_s1 + $0x100] sm:$0xff] }
  0x22   :  { %602 = vmatpush.bf16.msrb.mxu0 %v983_v33  ;;  %571 = vmatmul.bf16.vlgmr.msra.gmra.mxu1 %v151_v42  ;;  %v1002_v60 = vld [vmem:[%s1263_s1 + $0x1d0] sm:$0xff]  ;;  %v1001_v0 = vld [vmem:[%s1263_s1 + $0x1c8] sm:$0xff]  ;;  %v984_v2 = vld [vmem:[%s1263_s1 + $0x140] sm:$0xff] }
  0x23   :  { %615 = vmatpush.bf16.msrb.mxu1 %v991_v34  ;;  %584 = vmatmul.bf16.vlgmr.msra.gmra.mxu2 %v152_v38  ;;  %v992_v3 = vld [vmem:[%s1263_s1 + $0x180] sm:$0xff]  ;;  %v155_v6 = vld [vmem:[#allocation1 + $0x2d] sm:$0xff]  ;;  %v156_v7 = vld [vmem:[#allocation1 + $0x36] sm:$0xff] }
  0x24   :  { %628 = vmatpush.bf16.msrb.mxu2 %v999_v35  ;;  %597 = vmatmul.bf16.vlgmr.msra.gmra.mxu3 %v153_v41  ;;  %v1000_v4 = vld [vmem:[%s1263_s1 + $0x1c0] sm:$0xff] }
  0x25   :  { %641 = vmatpush.bf16.msrb.mxu3 %v1007_v36  ;;  %v154_v5 = vld [vmem:[#allocation1 + $0x24] sm:$0xff]  ;;  %v1009_v15 = vld [vmem:[%s1264_s2] ss:$0 sm:$0xff]  ;;  %s1038_s2 = smov [#allocation2]  }
  0x26   :  { %603 = vmatpush.bf16.msrb.mxu0 %v982_v37  ;;  %v157_v8 = vld [vmem:[#allocation1 + $0x3f] sm:$0xff]  ;;  %s677_s4 = sshll.u32 %s1038_s2, 4  ;;  %s678_s4 = int_to_ptr.vmem [resolvable:$true] %s677_s4 }
  0x27   :  { %616 = vmatpush.bf16.msrb.mxu1 %v990_v40 }
  0x28   :  { %629 = vmatpush.bf16.msrb.mxu2 %v998_v43 }
  0x29   :  { %642 = vmatpush.bf16.msrb.mxu3 %v1006_v44 }
  0x2a   :  { %604 = vmatpush.bf16.msrb.mxu0 %v981_v45 }
  0x2b   :  { %617 = vmatpush.bf16.msrb.mxu1 %v989_v46 }
  0x2c   :  { %630 = vmatpush.bf16.msrb.mxu2 %v997_v47 }
  0x2d   :  { %643 = vmatpush.bf16.msrb.mxu3 %v1005_v48 }
  0x2e   :  { %605 = vmatpush.bf16.msrb.mxu0 %v980_v49 }
  0x2f   :  { %618 = vmatpush.bf16.msrb.mxu1 %v988_v50 }
  0x30   :  { %631 = vmatpush.bf16.msrb.mxu2 %v996_v51 }
  0x31   :  { %644 = vmatpush.bf16.msrb.mxu3 %v1004_v52 }
  0x32   :  { %606 = vmatpush.bf16.msrb.mxu0 %v979_v53 }
  0x33   :  { %619 = vmatpush.bf16.msrb.mxu1 %v987_v54 }
  0x34   :  { %632 = vmatpush.bf16.msrb.mxu2 %v995_v55 }
  0x35   :  { %645 = vmatpush.bf16.msrb.mxu3 %v1003_v56 }
  0x36   :  { %607 = vmatpush.bf16.msrb.mxu0 %v978_v57 }
  0x37   :  { %620 = vmatpush.bf16.msrb.mxu1 %v986_v58 }
  0x38   :  { %633 = vmatpush.bf16.msrb.mxu2 %v994_v59 }
  0x39   :  { %646 = vmatpush.bf16.msrb.mxu3 %v1002_v60 }
  0x3a   :  { %608 = vmatpush.bf16.msrb.mxu0 %v977_v61 }
  0x3b   :  { %621 = vmatpush.bf16.msrb.mxu1 %v985_v62 }
  0x3c   :  { %634 = vmatpush.bf16.msrb.mxu2 %v993_v63 }
  0x3d   :  { %647 = vmatpush.bf16.msrb.mxu3 %v1001_v0 }
  0x3e   :  { %609 = vmatpush.bf16.msrb.mxu0 %v976_v1 }
  0x3f   :  { %622 = vmatpush.bf16.msrb.mxu1 %v984_v2 }
  0x40   :  { %635 = vmatpush.bf16.msrb.mxu2 %v992_v3 }
  0x41   :  { %648 = vmatpush.bf16.msrb.mxu3 %v1000_v4  ;;  %610 = vmatmul.bf16.vlgmr.msrb.gmra.mxu0 %v154_v5 }
  0x42   :  { %623 = vmatmul.bf16.vlgmr.msrb.gmra.mxu1 %v155_v6 }
  0x43   :  { %636 = vmatmul.bf16.vlgmr.msrb.gmra.mxu2 %v156_v7 }
  0x44   :  { %649 = vmatmul.bf16.vlgmr.msrb.gmra.mxu3 %v157_v8 }
  0x9e   :  { %v559_v9 = vpop.f32.mrf.mxu0 }
  0x9f   :  { %v572_v10 = vpop.f32.mrf.mxu1  ;;  %v560_v18 = vadd.f32 %v1009_v15, %v559_v9 }
  0xa1   :  { %v573_v19 = vadd.f32 %v572_v10, %v560_v18 }
  0xa6   :  { %v585_v11 = vpop.f32.mrf.mxu2  ;;  %v561_v13 = vpop.f32.mrf.mxu0 }
  0xa7   :  { %v598_v12 = vpop.f32.mrf.mxu3  ;;  %v574_v14 = vpop.f32.mrf.mxu1  ;;  %v586_v20 = vadd.f32 %v585_v11, %v573_v19 }
  0xa9   :  { %v599_v21 = vadd.f32 %v598_v12, %v586_v20 }
  0xae   :  { %v587_v16 = vpop.f32.mrf.mxu2 }
  0xaf   :  { %v600_v17 = vpop.f32.mrf.mxu3 }
  0xbe   :  { %v611_v22 = vpop.f32.mrf.mxu0 }
  0xbf   :  { %v624_v23 = vpop.f32.mrf.mxu1  ;;  %v612_v24 = vadd.f32 %v611_v22, %v599_v21 }
  0xc1   :  { %v625_v25 = vadd.f32 %v624_v23, %v612_v24 }
  0xc6   :  { %v637_v26 = vpop.f32.mrf.mxu2  ;;  %v613_v29 = vpop.f32.mrf.mxu0 }
  0xc7   :  { %v650_v27 = vpop.f32.mrf.mxu3  ;;  %v638_v28 = vadd.f32 %v637_v26, %v625_v25  ;;  %v626_v30 = vpop.f32.mrf.mxu1 }
  0xc9   :  { %v651_v31 = vadd.f32 %v650_v27, %v638_v28 }
  0xcb   :  { %v654_v32 = vmul.f32 %v651_v31, %v651_v31 }
  0xcd   :  { %v656_v33 = vsel %vm655_vm0, %v654_v32, 0.0 }
  0xce   :  { %v639_v34 = vpop.f32.mrf.mxu2  ;;  %657 = vadd.xlane.f32.xlu0 %v656_v33 }
  0xcf   :  { %v652_v35 = vpop.f32.mrf.mxu3 }
 0x141   :  { %v658_v36 = vpop.xlane.xlu0 %657 }
 0x142   :  { %v659_v37 = vmax.f32 %v658_v36, 1e-24 }
 0x144   :  { %1010 = vrsqrt.f32 %v659_v37  ;;  %vm666_vm2 = vweird.f32 %v659_v37 }
 0x14a   :  { %v1011_v38 = vpop.eup %1010 }
 0x14b   :  { %v661_v39 = vmul.f32 %v1011_v38, %v659_v37  ;;  %vm667_vm1 = vweird.f32 %v1011_v38 }
 0x14c   :  { %vm668_vm3 = vmor %vm666_vm2, %vm667_vm1 }
 0x14d   :  { %v662_v40 = vmul.f32 %v1011_v38, %v661_v39 }
 0x14f   :  { %v663_v41 = vmul.f32 0.5, %v662_v40 }
 0x151   :  { %v664_v42 = vsub.f32 1.5, %v663_v41 }
 0x153   :  { %v665_v43 = vmul.f32 %v1011_v38, %v664_v42 }
 0x155   :  { %v669_v44 = vsel %vm668_vm3, %v1011_v38, %v665_v43 }
 0x156   :  { %v670_v45 = vmul.f32 %v669_v44, %v651_v31 }
 0x158   :  { %671 = vst.msk [vmem:[#allocation2] sm:$0x3] %vm655_vm0, %v670_v45 }
 0x159   :  { %682 = dma.vmem_to_hbm [thread:$0]  %s678_s4, 32, %s680_s7, [#allocation3]  }
 0x15a   :  { %1036 = dma.done.wait [#allocation3], 32  }
 0x15b   :  { %1037 = vsyncadd [#allocation3], 4294967264 }
 0x15c   :  { %687 = vsyncpa [#allocation3], 1 }

// kernel: vgg_forward.4
= control target key start
LH: loop header
LB: loop body
LE: loop exit
PB: predicated region body
PF: predicated region fallthrough
CT: control target
= control target key end

     0   :  { %s3482_s15 = smov 0   ;;  %s5187_s0 = inlined_call_operand.vmem [shape: bf16[2,18,18,3], index: 0, kind: input, shape index: {}]   ;;  %s5188_s1 = inlined_call_operand.vmem [shape: bf16[27,16], index: 1, kind: input, shape index: {}]   ;;  %s5189_s2 = inlined_call_operand.vmem [shape: f32[1,16], index: 2, kind: input, shape index: {}]   ;;  %s5190_s3 = inlined_call_operand.vmem [shape: f32[1,16], index: 3, kind: input, shape index: {}]   ;;  %s5191_s4 = inlined_call_operand.vmem [shape: bf16[2,8,8,16], index: 4, kind: output, shape index: {}]  }
   0x1 LB: > { %s2629_s16 = sadd.s32 4294967295, %s3446_s15   ;;  %p2633_p0 = scmp.ge.s32.totalorder %s3446_s15, 1  ;;  %s3446_s15 = sphi %s3482_s15, %s14_s15  }
   0x2   : > { %p162_p1 = scmp.lt.s32.totalorder %s3446_s15, 3 }
   0x4   : > { %p163_p2 = pnand %p2633_p0, %p162_p1 }
   0x6   : > { %166 = sbr.rel (%p163_p2) target bundleno = 683 (0x2ab), region = 36 }
   0xb   : > { %p188_p3 = scmp.lt.s32.totalorder %s2629_s16, 1  ;;  %vm355_vm0 = vcmask 1046528   ;;  %s3448_s21 = smov 3   ;;  %vm532_vm1 = vcmask 1045504   ;;  %vm1344_vm2 = vcmask 48128   ;;  %vm1311_vm3 = vcmask 23552  }
   0xc   : > { %s3449_s22 = smov 6   ;;  %s3450_s23 = smov 9   ;;  %vm1377_vm4 = vcmask 72704   ;;  %vm1410_vm5 = vcmask 97280   ;;  %vm1443_vm6 = vcmask 121856   ;;  %vm1476_vm7 = vcmask 146432  }
   0xd   : > { %s5392_s16 = smov (!%p188_p3, %s2629_s16), 1  ;;  %s3451_s24 = smov 12   ;;  %vm1655_vm8 = vcmask 1044480   ;;  %vm1509_vm9 = vcmask 171008   ;;  %vm1542_vm10 = vcmask 195584   ;;  %vm1606_vm11 = vcmask 220160  }
   0xe   : > { %s2780_s17 = smul.u32 216, %s5392_s16  ;;  %s3452_s25 = smov 15   ;;  %vm2431_vm12 = vcmask 1041409   ;;  %vm2434_vm13 = vcmask 1042434   ;;  %vm2437_vm14 = vcmask 1043459   ;;  %vm2440_vm15 = vcmask 1044484  }
   0xf   : > { %s3453_s26 = smov 18   ;;  %s3454_s27 = smov 21  }
  0x10   : > { %s3496_s20 = scalar_lea.vmem %s5187_s0, %s2780_s17  ;;  %s3455_s28 = smov 24  }
  0x11   : > { %v2767_v0 = vld [vmem:[%s3496_s20 + $0x30] sm:$0xff]   ;;  %v3500_v1 = vld [vmem:[%s3496_s20 + $0x38] sm:$0x1]  ;;  %v3511_v7 = vld [vmem:[%s3496_s20 + $0x20] sm:$0x1]  ;;  %s2727_s13 = sshll.u32 %s5392_s16, 5 }
  0x12   : > { %v2766_v2 = vld [vmem:[%s3496_s20 + $0x18] sm:$0xff]   ;;  %v3503_v3 = vunpack.c.l.bf16 %v2767_v0  ;;  %v3505_v4 = vunpack.c.h.bf16 %v2767_v0  ;;  %v5200_v5 = vunpack.c.l.bf16 %v3500_v1  ;;  %v2731_v8 = vld [vmem:[%s3496_s20] sm:$0xff]   ;;  %v3515_v9 = vld [vmem:[%s3496_s20 + $0x8] sm:$0x1]  ;;  %v5197_v11 = vunpack.c.l.bf16 %v3511_v7  ;;  %s5016_s17 = scalar_lea.vmem %s5191_s4, %s2727_s13 }
  0x13   : > { %v3508_v6 = vunpack.c.l.bf16 %v2766_v2  ;;  %v3517_v10 = vunpack.c.h.bf16 %v2766_v2  ;;  %v3520_v12 = vunpack.c.l.bf16 %v2731_v8  ;;  %v3522_v13 = vunpack.c.h.bf16 %v2731_v8  ;;  %v214_v14 = vld [vmem:[%s3496_s20 + $0x3c] sm:$0xff]   ;;  %v3536_v23 = vld [vmem:[%s3496_s20 + $0x44] sm:$0x1]  ;;  %v3551_v33 = vld [vmem:[%s3496_s20 + $0x2c] sm:$0x1] }
  0x14   : > { %v376_v15 = vrot.slane %v3503_v3, 1  ;;  %v377_v16 = vrot.slane %v3505_v4, 1  ;;  %v379_v17 = vrot.slane %v5200_v5, 1  ;;  %v369_v20 = vrot.slane %v5197_v11, 1  ;;  %v208_v28 = vld [vmem:[%s3496_s20 + $0x24] sm:$0xff]   ;;  %v202_v38 = vld [vmem:[%s3496_s20 + $0xc] sm:$0xff]  }
  0x15   : > { %v366_v18 = vrot.slane %v3508_v6, 1  ;;  %v367_v19 = vrot.slane %v3517_v10, 1  ;;  %v5201_v21 = vunpack.c.l.bf16 %v3515_v9  ;;  %v356_v22 = vrot.slane %v3520_v12, 1  ;;  %v3569_v43 = vld [vmem:[%s3496_s20 + $0x14] sm:$0x1]  ;;  %v2769_v52 = vld [vmem:[%s3496_s20 + $0x60] sm:$0xff]  }
  0x16   : > { %v378_v24 = vsel %vm355_vm0, %v376_v15, %v377_v16  ;;  %v380_v25 = vsel %vm355_vm0, %v377_v16, %v379_v17  ;;  %v357_v26 = vrot.slane %v3522_v13, 1  ;;  %v3541_v27 = vunpack.c.l.bf16 %v214_v14  ;;  %v3591_v57 = vld [vmem:[%s3496_s20 + $0x68] sm:$0x1]  ;;  %v220_v58 = vld [vmem:[%s3496_s20 + $0x54] sm:$0xff]  }
  0x17   : > { %v3544_v29 = vpack.i.bf16 %v380_v25, %v378_v24  ;;  %v368_v30 = vsel %vm355_vm0, %v366_v18, %v367_v19  ;;  %v370_v31 = vsel %vm355_vm0, %v367_v19, %v369_v20  ;;  %v359_v32 = vrot.slane %v5201_v21, 1  ;;  %v2768_v19 = vld [vmem:[%s3496_s20 + $0x48] sm:$0xff]   ;;  %v2771_v5 = vld [vmem:[%s3496_s20 + $0x90] sm:$0xff]  }
  0x18   : > { %v3553_v34 = vpack.i.bf16 %v370_v31, %v368_v30  ;;  %v358_v35 = vsel %vm355_vm0, %v356_v22, %v357_v26  ;;  %v3556_v36 = vunpack.c.h.bf16 %v214_v14  ;;  %v5194_v37 = vunpack.c.l.bf16 %v3536_v23  ;;  %v3607_v14 = vld [vmem:[%s3496_s20 + $0x5c] sm:$0x1] }
  0x19   : > { %5267 = vst [vmem:[#allocation2_spill] sm:$0xff] %v3544_v29  ;;  %2819 = vrot.lane.b32.xlu2 %v3544_v29, %s3448_s21  ;;  %v360_v39 = vsel %vm355_vm0, %v357_v26, %v359_v32  ;;  %v381_v40 = vrot.slane %v3541_v27, 1  ;;  %v3564_v41 = vunpack.c.l.bf16 %v208_v28  ;;  %v3566_v42 = vunpack.c.h.bf16 %v208_v28  ;;  %v3622_v26 = vld [vmem:[%s3496_s20 + $0x50] sm:$0x1]  ;;  %v232_v28 = vld [vmem:[%s3496_s20 + $0x84] sm:$0xff]  }
  0x1a   : > { %5268 = vst [vmem:[#allocation3_spill] sm:$0xff] %v3553_v34  ;;  %2809 = vrot.lane.b32.xlu1 %v3553_v34, %s3448_s21  ;;  %v2798_v44 = vpack.i.bf16 %v360_v39, %v358_v35  ;;  %v382_v45 = vrot.slane %v3556_v36, 1  ;;  %v384_v46 = vrot.slane %v5194_v37, 1  ;;  %v5198_v47 = vunpack.c.l.bf16 %v3551_v33  ;;  %v3739_v29 = vld [vmem:[%s3496_s20 + $0x98] sm:$0x1] }
  0x1b   : > { %v371_v48 = vrot.slane %v3564_v41, 1  ;;  %v372_v49 = vrot.slane %v3566_v42, 1  ;;  %v3579_v50 = vunpack.c.l.bf16 %v202_v38  ;;  %v3581_v51 = vunpack.c.h.bf16 %v202_v38 }
  0x1c   : > { %2799 = vrot.lane.b32.xlu0 %v2798_v44, %s3448_s21  ;;  %v383_v53 = vsel %vm355_vm0, %v381_v40, %v382_v45  ;;  %v385_v54 = vsel %vm355_vm0, %v382_v45, %v384_v46  ;;  %v374_v55 = vrot.slane %v5198_v47, 1  ;;  %v5202_v56 = vunpack.c.l.bf16 %v3569_v43  ;;  %v3642_v45 = vld [vmem:[%s3496_s20 + $0x8c] sm:$0x1]  ;;  %v3716_v47 = vld [vmem:[%s3496_s20 + $0xa4] sm:$0x1] }
  0x1d   : > { %v3594_v59 = vpack.i.bf16 %v385_v54, %v383_v53  ;;  %v373_v60 = vsel %vm355_vm0, %v371_v48, %v372_v49  ;;  %v361_v61 = vrot.slane %v3579_v50, 1  ;;  %v362_v62 = vrot.slane %v3581_v51, 1  ;;  %v2770_v53 = vld [vmem:[%s3496_s20 + $0x78] sm:$0xff]  }
  0x1e   : > { %v375_v63 = vsel %vm355_vm0, %v372_v49, %v374_v55  ;;  %v364_v0 = vrot.slane %v5202_v56, 1  ;;  %v3602_v2 = vunpack.c.l.bf16 %v2769_v52  ;;  %v3604_v8 = vunpack.c.h.bf16 %v2769_v52 }
  0x1f   : > { %5269 = vst [vmem:[#allocation4_spill] sm:$0xff] %v3594_v59  ;;  %v3609_v15 = vpack.i.bf16 %v375_v63, %v373_v60  ;;  %v363_v16 = vsel %vm355_vm0, %v361_v61, %v362_v62  ;;  %v5192_v17 = vunpack.c.l.bf16 %v3591_v57  ;;  %v3613_v18 = vunpack.c.l.bf16 %v220_v58 }
  0x20   : > { %v365_v20 = vsel %vm355_vm0, %v362_v62, %v364_v0  ;;  %v396_v22 = vrot.slane %v3602_v2, 1  ;;  %v397_v24 = vrot.slane %v3604_v8, 1  ;;  %v3619_v25 = vunpack.c.h.bf16 %v220_v58 }
  0x21   : > { %5270 = vst [vmem:[#allocation5_spill] sm:$0xff] %v3609_v15  ;;  %2824 = vrot.lane.b32.xlu2 %v3594_v59, %s3448_s21  ;;  %v3627_v30 = vpack.i.bf16 %v365_v20, %v363_v16  ;;  %v399_v31 = vrot.slane %v5192_v17, 1  ;;  %v5196_v32 = vunpack.c.l.bf16 %v3607_v14  ;;  %v391_v35 = vrot.slane %v3613_v18, 1  ;;  %v3665_v16 = vld [vmem:[%s3496_s20 + $0x80] sm:$0x1]  ;;  %v2772_v17 = vld [vmem:[%s3496_s20 + $0xa8] sm:$0xff]  }
  0x22   : > { %5271 = vst [vmem:[#allocation6_spill] sm:$0xff] %v3613_v18  ;;  %2814 = vrot.lane.b32.xlu1 %v3609_v15, %s3448_s21  ;;  %v398_v38 = vsel %vm355_vm0, %v396_v22, %v397_v24  ;;  %v392_v39 = vrot.slane %v3619_v25, 1  ;;  %v3637_v40 = vunpack.c.l.bf16 %v2768_v19  ;;  %v3639_v44 = vunpack.c.h.bf16 %v2768_v19  ;;  %v226_v19 = vld [vmem:[%s3496_s20 + $0x6c] sm:$0xff]  }
  0x23   : > { %5272 = vst [vmem:[#allocation7_spill] sm:$0xff] %v3619_v25  ;;  %v400_v46 = vsel %vm355_vm0, %v397_v24, %v399_v31  ;;  %v394_v48 = vrot.slane %v5196_v32, 1  ;;  %v5195_v49 = vunpack.c.l.bf16 %v3622_v26  ;;  %v3648_v52 = vunpack.c.l.bf16 %v232_v28 }
  0x24   : > { %5273 = vst [vmem:[#allocation8_spill] sm:$0xff] %v3627_v30  ;;  %2804 = vrot.lane.b32.xlu0 %v3627_v30, %s3448_s21  ;;  %v3653_v54 = vpack.i.bf16 %v400_v46, %v398_v38  ;;  %v393_v55 = vsel %vm355_vm0, %v391_v35, %v392_v39  ;;  %v386_v58 = vrot.slane %v3637_v40, 1  ;;  %v387_v60 = vrot.slane %v3639_v44, 1  ;;  %v3681_v46 = vld [vmem:[%s3496_s20 + $0x74] sm:$0x1] }
  0x25   : > { %v395_v61 = vsel %vm355_vm0, %v392_v39, %v394_v48  ;;  %v389_v62 = vrot.slane %v5195_v49, 1  ;;  %v3661_v63 = vunpack.c.h.bf16 %v232_v28  ;;  %v5193_v0 = vunpack.c.l.bf16 %v3642_v45 }
  0x26   : > { %5274 = vst [vmem:[#allocation9_spill] sm:$0xff] %v3653_v54  ;;  %v3668_v20 = vpack.i.bf16 %v395_v61, %v393_v55  ;;  %v388_v22 = vsel %vm355_vm0, %v386_v58, %v387_v60  ;;  %v411_v24 = vrot.slane %v3648_v52, 1  ;;  %v3672_v31 = vunpack.c.l.bf16 %v2770_v53 }
  0x27   : > { %v390_v35 = vsel %vm355_vm0, %v387_v60, %v389_v62  ;;  %v412_v28 = vrot.slane %v3661_v63, 1  ;;  %v414_v38 = vrot.slane %v5193_v0, 1  ;;  %v3678_v39 = vunpack.c.h.bf16 %v2770_v53 }
  0x28   : > { %5275 = vst [vmem:[#allocation10_spill] sm:$0xff] %v3668_v20  ;;  %v3683_v48 = vpack.i.bf16 %v390_v35, %v388_v22  ;;  %v5199_v55 = vunpack.c.l.bf16 %v3665_v16  ;;  %v406_v58 = vrot.slane %v3672_v31, 1  ;;  %v3687_v61 = vunpack.c.l.bf16 %v226_v19  ;;  %v3698_v22 = vld [vmem:[%s3496_s20 + $0xb0] sm:$0x1]  ;;  %v238_v35 = vld [vmem:[%s3496_s20 + $0x9c] sm:$0xff]  }
  0x29   : > { %5276 = vst [vmem:[#allocation11_spill] sm:$0xff] %v3672_v31  ;;  %2839 = vrot.lane.b32.xlu2 %v3653_v54, %s3448_s21  ;;  %v413_v60 = vsel %vm355_vm0, %v411_v24, %v412_v28  ;;  %v415_v53 = vsel %vm355_vm0, %v412_v28, %v414_v38  ;;  %v407_v62 = vrot.slane %v3678_v39, 1  ;;  %v3695_v0 = vunpack.c.h.bf16 %v226_v19 }
  0x2a   : > { %5277 = vst [vmem:[#allocation12_spill] sm:$0xff] %v3678_v39  ;;  %2834 = vrot.lane.b32.xlu1 %v3668_v20, %s3448_s21  ;;  %v3703_v37 = vpack.i.bf16 %v415_v53, %v413_v60  ;;  %v409_v49 = vrot.slane %v5199_v55, 1  ;;  %v5207_v24 = vunpack.c.l.bf16 %v3681_v46  ;;  %v401_v28 = vrot.slane %v3687_v61, 1 }
  0x2b   : > { %5278 = vst [vmem:[#allocation13_spill] sm:$0xff] %v3683_v48  ;;  %v408_v38 = vsel %vm355_vm0, %v406_v58, %v407_v62  ;;  %v402_v19 = vrot.slane %v3695_v0, 1  ;;  %v3711_v32 = vunpack.c.l.bf16 %v2772_v17  ;;  %v3713_v11 = vunpack.c.h.bf16 %v2772_v17 }
  0x2c   : > { %5279 = vst [vmem:[#allocation14_spill] sm:$0xff] %v3698_v22  ;;  %2829 = vrot.lane.b32.xlu0 %v3683_v48, %s3448_s21  ;;  %v410_v60 = vsel %vm355_vm0, %v407_v62, %v409_v49  ;;  %v404_v53 = vrot.slane %v5207_v24, 1  ;;  %v5212_v55 = vunpack.c.l.bf16 %v3698_v22  ;;  %v3724_v58 = vunpack.c.l.bf16 %v238_v35 }
  0x2d   : > { %5280 = vst [vmem:[#allocation15_spill] sm:$0xff] %v3703_v37  ;;  %v3727_v21 = vpack.i.bf16 %v410_v60, %v408_v38  ;;  %v403_v17 = vsel %vm355_vm0, %v401_v28, %v402_v19  ;;  %v426_v56 = vrot.slane %v3711_v32, 1  ;;  %v427_v20 = vrot.slane %v3713_v11, 1 }
  0x2e   : > { %5281 = vst [vmem:[#allocation16_spill] sm:$0xff] %v3711_v32  ;;  %v405_v54 = vsel %vm355_vm0, %v402_v19, %v404_v53  ;;  %v429_v49 = vrot.slane %v5212_v55, 1  ;;  %v3735_v62 = vunpack.c.h.bf16 %v238_v35  ;;  %v5215_v24 = vunpack.c.l.bf16 %v3716_v47 }
  0x2f   : > { %5282 = vst [vmem:[#allocation17_spill] sm:$0xff] %v3713_v11  ;;  %v421_v38 = vrot.slane %v3724_v58, 1  ;;  %v3742_v60 = vunpack.c.l.bf16 %v2771_v5  ;;  %v3744_v28 = vpack.i.bf16 %v405_v54, %v403_v17  ;;  %v3749_v53 = vunpack.c.h.bf16 %v2771_v5 }
  0x30   : > { %5283 = vst [vmem:[#allocation18_spill] sm:$0xff] %v3727_v21  ;;  %v422_v59 = vrot.slane %v3735_v62, 1  ;;  %v424_v19 = vrot.slane %v5215_v24, 1  ;;  %v428_v35 = vsel %vm355_vm0, %v426_v56, %v427_v20  ;;  %v430_v55 = vsel %vm355_vm0, %v427_v20, %v429_v49  ;;  %v244_v24 = vld [vmem:[%s3496_s20 + $0xb4] sm:$0xff]   ;;  %v3770_v20 = vld [vmem:[%s3496_s20 + $0xbc] sm:$0x1] }
  0x31   : > { %5284 = vst [vmem:[#allocation19_spill] sm:$0xff] %v3744_v28  ;;  %2854 = vrot.lane.b32.xlu2 %v3703_v37, %s3448_s21  ;;  %v5223_v48 = vunpack.c.l.bf16 %v3739_v29  ;;  %v416_v54 = vrot.slane %v3742_v60, 1  ;;  %v417_v17 = vrot.slane %v3749_v53, 1  ;;  %v3767_v56 = vpack.i.bf16 %v430_v55, %v428_v35 }
  0x32   : > { %2849 = vrot.lane.b32.xlu1 %v3727_v21, %s3448_s21  ;;  %v423_v5 = vsel %vm355_vm0, %v421_v38, %v422_v59  ;;  %v425_v30 = vsel %vm355_vm0, %v422_v59, %v424_v19  ;;  %v538_v34 = vrot.slane %v3579_v50, 2  ;;  %v3775_v38 = vunpack.c.l.bf16 %v244_v24 }
  0x33   : > { %v419_v37 = vrot.slane %v5223_v48, 1  ;;  %5285 = vst [vmem:[#allocation20_spill] sm:$0xff] %v3767_v56  ;;  %v418_v49 = vsel %vm355_vm0, %v416_v54, %v417_v17  ;;  %v3777_v59 = vpack.i.bf16 %v425_v30, %v423_v5  ;;  %v539_v19 = vrot.slane %v3581_v51, 2 }
  0x34   : > { %2844 = vrot.lane.b32.xlu0 %v3744_v28, %s3448_s21  ;;  %5286 = vst [vmem:[#allocation21_spill] sm:$0xff] %v3775_v38  ;;  %v5288_v48 = vunpack.c.l.bf16 %v3569_v43  ;;  %v533_v55 = vrot.slane %v3520_v12, 2  ;;  %v534_v35 = vrot.slane %v3522_v13, 2  ;;  %v5289_v15 = vunpack.c.l.bf16 %v3515_v9 }
  0x35   : > { %v420_v21 = vsel %vm355_vm0, %v417_v17, %v419_v37  ;;  %5287 = vst [vmem:[#allocation22_spill] sm:$0xff] %v3777_v59  ;;  %v3786_v22 = vunpack.c.h.bf16 %v244_v24  ;;  %v5229_v37 = vunpack.c.l.bf16 %v3770_v20  ;;  %v431_v30 = vrot.slane %v3775_v38, 1 }
  0x36   : > { %v541_v28 = vrot.slane %v5288_v48, 2  ;;  %v536_v54 = vrot.slane %v5289_v15, 2  ;;  %v3789_v17 = vpack.i.bf16 %v420_v21, %v418_v49  ;;  %v540_v9 = vsel %vm532_vm1, %v538_v34, %v539_v19 }
  0x37   : > { %v432_v43 = vrot.slane %v3786_v22, 1  ;;  %v434_v48 = vrot.slane %v5229_v37, 1  ;;  %v535_v21 = vsel %vm532_vm1, %v533_v55, %v534_v35  ;;  %v554_v34 = vrot.slane %v3505_v4, 2 }
  0x38   : > { %5290 = vst [vmem:[#allocation23_spill] sm:$0xff] %v3789_v17  ;;  %v542_v15 = vsel %vm532_vm1, %v539_v19, %v541_v28  ;;  %v537_v24 = vsel %vm532_vm1, %v534_v35, %v536_v54  ;;  %v5291_v28 = vunpack.c.l.bf16 %v3500_v1  ;;  %v548_v55 = vrot.slane %v3564_v41, 2 }
  0x39   : > { %2869 = vrot.lane.b32.xlu2 %v3767_v56, %s3448_s21  ;;  %v3805_v5 = vpack.i.bf16 %v542_v15, %v540_v9  ;;  %v433_v49 = vsel %vm355_vm0, %v431_v30, %v432_v43  ;;  %v435_v37 = vsel %vm355_vm0, %v432_v43, %v434_v48  ;;  %v2878_v56 = vpack.i.bf16 %v537_v24, %v535_v21 }
  0x3a   : > { %2864 = vrot.lane.b32.xlu1 %v3777_v59, %s3448_s21  ;;  %v553_v59 = vrot.slane %v3503_v3, 2  ;;  %v556_v19 = vrot.slane %v5291_v28, 2  ;;  %v549_v35 = vrot.slane %v3566_v42, 2  ;;  %v5292_v54 = vunpack.c.l.bf16 %v3551_v33 }
  0x3b   : > { %v3817_v15 = vpack.i.bf16 %v435_v37, %v433_v49  ;;  %v543_v30 = vrot.slane %v3508_v6, 2  ;;  %v544_v43 = vrot.slane %v3517_v10, 2  ;;  %v5294_v1 = vunpack.c.l.bf16 %v3511_v7 }
  0x3c   : > { %2859 = vrot.lane.b32.xlu0 %v3789_v17, %s3448_s21  ;;  %v551_v9 = vrot.slane %v5292_v54, 2  ;;  %v555_v21 = vsel %vm532_vm1, %v553_v59, %v554_v34  ;;  %v557_v33 = vsel %vm532_vm1, %v554_v34, %v556_v19  ;;  %v550_v37 = vsel %vm532_vm1, %v548_v55, %v549_v35 }
  0x3d   : > { %5293 = vst [vmem:[#allocation24_spill] sm:$0xff] %v3817_v15  ;;  %v546_v48 = vrot.slane %v5294_v1, 2  ;;  %v3832_v49 = vpack.i.bf16 %v557_v33, %v555_v21  ;;  %v545_v28 = vsel %vm532_vm1, %v543_v30, %v544_v43  ;;  %v569_v59 = vrot.slane %v3619_v25, 2 }
  0x3e   : > { %v552_v24 = vsel %vm532_vm1, %v549_v35, %v551_v9  ;;  %v5295_v34 = vunpack.c.l.bf16 %v3607_v14  ;;  %v563_v55 = vrot.slane %v3637_v40, 2  ;;  %v564_v35 = vrot.slane %v3639_v44, 2 }
  0x3f   : > { %v547_v7 = vsel %vm532_vm1, %v544_v43, %v546_v48  ;;  %v3836_v54 = vpack.i.bf16 %v552_v24, %v550_v37  ;;  %v5296_v9 = vunpack.c.l.bf16 %v3622_v26  ;;  %v558_v30 = vrot.slane %v3541_v27, 2 }
  0x40   : > { %v571_v19 = vrot.slane %v5295_v34, 2  ;;  %v3846_v21 = vpack.i.bf16 %v547_v7, %v545_v28  ;;  %v559_v43 = vrot.slane %v3556_v36, 2  ;;  %v5297_v48 = vunpack.c.l.bf16 %v3536_v23 }
  0x41   : > { %2884 = vrot.lane.b32.xlu2 %v3805_v5, %s3449_s22  ;;  %v566_v1 = vrot.slane %v5296_v9, 2  ;;  %v565_v37 = vsel %vm532_vm1, %v563_v55, %v564_v35  ;;  %v583_v9 = vrot.slane %v3672_v31, 2  ;;  %v578_v55 = vrot.slane %v3687_v61, 2 }
  0x42   : > { %2879 = vrot.lane.b32.xlu1 %v2878_v56, %s3449_s22  ;;  %v568_v56 = vrot.slane %v3613_v18, 2  ;;  %v561_v14 = vrot.slane %v5297_v48, 2  ;;  %v572_v26 = vsel %vm532_vm1, %v569_v59, %v571_v19  ;;  %v560_v7 = vsel %vm532_vm1, %v558_v30, %v559_v43 }
  0x43   : > { %v567_v24 = vsel %vm532_vm1, %v564_v35, %v566_v1  ;;  %v579_v35 = vrot.slane %v3695_v0, 2  ;;  %v5299_v1 = vunpack.c.l.bf16 %v3681_v46  ;;  %v573_v30 = vrot.slane %v3602_v2, 2 }
  0x44   : > { %2874 = vrot.lane.b32.xlu0 %v3817_v15, %s3448_s21  ;;  %v570_v33 = vsel %vm532_vm1, %v568_v56, %v569_v59  ;;  %v562_v23 = vsel %vm532_vm1, %v559_v43, %v561_v14  ;;  %v3866_v34 = vpack.i.bf16 %v567_v24, %v565_v37  ;;  %v584_v56 = vrot.slane %v3678_v39, 2 }
  0x45   : > { %v3862_v28 = vpack.i.bf16 %v572_v26, %v570_v33  ;;  %v5298_v59 = vunpack.c.l.bf16 %v3665_v16  ;;  %v581_v48 = vrot.slane %v5299_v1, 2  ;;  %v3876_v33 = vpack.i.bf16 %v562_v23, %v560_v7 }
  0x46   : > { %v574_v43 = vrot.slane %v3604_v8, 2  ;;  %v5301_v14 = vunpack.c.l.bf16 %v3591_v57  ;;  %v585_v26 = vsel %vm532_vm1, %v583_v9, %v584_v56  ;;  %v580_v37 = vsel %vm532_vm1, %v578_v55, %v579_v35 }
  0x47   : > { %v586_v19 = vrot.slane %v5298_v59, 2  ;;  %5300 = vst [vmem:[#allocation25_spill] sm:$0xff] %v3876_v33  ;;  %v582_v24 = vsel %vm532_vm1, %v579_v35, %v581_v48  ;;  %v598_v1 = vrot.slane %v3724_v58, 2  ;;  %v599_v9 = vrot.slane %v3735_v62, 2 }
  0x48   : > { %v576_v16 = vrot.slane %v5301_v14, 2  ;;  %v575_v23 = vsel %vm532_vm1, %v573_v30, %v574_v43  ;;  %v3896_v59 = vpack.i.bf16 %v582_v24, %v580_v37  ;;  %v593_v55 = vrot.slane %v3742_v60, 2 }
  0x49   : > { %2899 = vrot.lane.b32.xlu2 %v3832_v49, %s3449_s22  ;;  %v587_v46 = vsel %vm532_vm1, %v584_v56, %v586_v19  ;;  %v5303_v56 = vunpack.c.l.bf16 %v3716_v47  ;;  %v594_v35 = vrot.slane %v3749_v53, 2  ;;  %v5304_v48 = vunpack.c.l.bf16 %v3739_v29 }
  0x4a   : > { %2894 = vrot.lane.b32.xlu1 %v3836_v54, %s3449_s22  ;;  %v3892_v7 = vpack.i.bf16 %v587_v46, %v585_v26  ;;  %v577_v57 = vsel %vm532_vm1, %v574_v43, %v576_v16  ;;  %5302 = vst [vmem:[#allocation26_spill] sm:$0xff] %v3896_v59  ;;  %v588_v30 = vrot.slane %v3648_v52, 2  ;;  %v589_v43 = vrot.slane %v3661_v63, 2 }
  0x4b   : > { %v601_v19 = vrot.slane %v5303_v56, 2  ;;  %v596_v14 = vrot.slane %v5304_v48, 2  ;;  %v3906_v26 = vpack.i.bf16 %v577_v57, %v575_v23  ;;  %v5305_v16 = vunpack.c.l.bf16 %v3642_v45 }
  0x4c   : > { %2889 = vrot.lane.b32.xlu0 %v3846_v21, %s3449_s22  ;;  %v600_v46 = vsel %vm532_vm1, %v598_v1, %v599_v9  ;;  %v595_v37 = vsel %vm532_vm1, %v593_v55, %v594_v35  ;;  %v590_v57 = vsel %vm532_vm1, %v588_v30, %v589_v43  ;;  %v608_v48 = vrot.slane %v3775_v38, 2  ;;  %v5309_v30 = vld [vmem:[#allocation14_spill] sm:$0xff] }
  0x4d   : > { %v591_v47 = vrot.slane %v5305_v16, 2  ;;  %v602_v29 = vsel %vm532_vm1, %v599_v9, %v601_v19  ;;  %v597_v24 = vsel %vm532_vm1, %v594_v35, %v596_v14  ;;  %v609_v1 = vrot.slane %v3786_v22, 2 }
  0x4e   : > { %v3922_v23 = vpack.i.bf16 %v602_v29, %v600_v46  ;;  %v3926_v56 = vpack.i.bf16 %v597_v24, %v595_v37  ;;  %v5308_v9 = vunpack.c.l.bf16 %v3770_v20  ;;  %v603_v35 = vrot.slane %v3711_v32, 2 }
  0x4f   : > { %v592_v45 = vsel %vm532_vm1, %v589_v43, %v591_v47  ;;  %v604_v14 = vrot.slane %v3713_v11, 2  ;;  %v5310_v43 = vunpack.c.l.bf16 %v5309_v30  ;;  %v610_v47 = vsel %vm532_vm1, %v608_v48, %v609_v1 }
  0x50   : > { %5306 = vst [vmem:[#allocation27_spill] sm:$0xff] %v3922_v23  ;;  %v611_v19 = vrot.slane %v5308_v9, 2  ;;  %v3932_v55 = vpack.i.bf16 %v592_v45, %v590_v57  ;;  %v2958_v46 = vpack.i.bf16 %v3581_v51, %v3579_v50  ;;  %v3961_v45 = vpack.i.bf16 %v3505_v4, %v3503_v3 }
  0x51   : > { %2914 = vrot.lane.b32.xlu2 %v3862_v28, %s3449_s22  ;;  %5307 = vst [vmem:[#allocation28_spill] sm:$0xff] %v3926_v56  ;;  %v606_v16 = vrot.slane %v5310_v43, 2  ;;  %v605_v29 = vsel %vm532_vm1, %v603_v35, %v604_v14  ;;  %v3965_v48 = vpack.i.bf16 %v3566_v42, %v3564_v41  ;;  %v3983_v35 = vpack.i.bf16 %v3639_v44, %v3637_v40 }
  0x52   : > { %2909 = vrot.lane.b32.xlu1 %v3866_v34, %s3449_s22  ;;  %v612_v20 = vsel %vm532_vm1, %v609_v1, %v611_v19  ;;  %5313 = vst [vmem:[#allocation30_spill] sm:$0xff] %v3961_v45  ;;  %v3969_v1 = vpack.i.bf16 %v3517_v10, %v3508_v6  ;;  %v2988_v19 = vpack.i.bf16 %v3619_v25, %v3613_v18 }
  0x53   : > { %v607_v37 = vsel %vm532_vm1, %v604_v14, %v606_v16  ;;  %v3950_v24 = vpack.i.bf16 %v612_v20, %v610_v47  ;;  %5314 = vst [vmem:[#allocation31_spill] sm:$0xff] %v3965_v48  ;;  %v3987_v14 = vpack.i.bf16 %v3556_v36, %v3541_v27  ;;  %v3003_v43 = vpack.i.bf16 %v3678_v39, %v3672_v31 }
  0x54   : > { %2904 = vrot.lane.b32.xlu0 %v3876_v33, %s3449_s22  ;;  %v3952_v57 = vpack.i.bf16 %v607_v37, %v605_v29  ;;  %5315 = vst [vmem:[#allocation32_spill] sm:$0xff] %v3969_v1  ;;  %v4000_v16 = vpack.i.bf16 %v3695_v0, %v3687_v61  ;;  %v4004_v47 = vpack.i.bf16 %v3604_v8, %v3602_v2  ;;  %v2773_v37 = vld [vmem:[%s3496_s20 + $0xc0] sm:$0xff]  }
  0x55   : > { %5311 = vst [vmem:[#allocation14_spill] sm:$0xff] %v3950_v24  ;;  %v4019_v29 = vpack.i.bf16 %v3749_v53, %v3742_v60 }
  0x56   : > { %5312 = vst [vmem:[#allocation29_spill] sm:$0xff] %v3952_v57 }
  0x57   : > { %5316 = vst [vmem:[#allocation33_spill] sm:$0xff] %v3983_v35 }
  0x58   : > { %5317 = vst [vmem:[#allocation34_spill] sm:$0xff] %v3987_v14 }
  0x59   : > { %2929 = vrot.lane.b32.xlu2 %v3892_v7, %s3449_s22  ;;  %5318 = vst [vmem:[#allocation35_spill] sm:$0xff] %v4000_v16 }
  0x5a   : > { %2924 = vrot.lane.b32.xlu1 %v3896_v59, %s3449_s22  ;;  %5319 = vst [vmem:[#allocation36_spill] sm:$0xff] %v4004_v47 }
  0x5b   : > { %5321 = vst [vmem:[#allocation38_spill] sm:$0xff] %v4019_v29 }
  0x5c   : > { %2919 = vrot.lane.b32.xlu0 %v3906_v26, %s3449_s22 }
  0x61   : > { %2944 = vrot.lane.b32.xlu2 %v3922_v23, %s3449_s22  ;;  %v5324_v23 = vld [vmem:[#allocation3_spill] sm:$0xff] }
  0x62   : > { %2939 = vrot.lane.b32.xlu1 %v3926_v56, %s3449_s22  ;;  %v5323_v56 = vld [vmem:[#allocation5_spill] sm:$0xff] }
  0x64   : > { %2934 = vrot.lane.b32.xlu0 %v3932_v55, %s3449_s22 }
  0x69   : > { %2959 = vrot.lane.b32.xlu2 %v2958_v46, %s3450_s23  ;;  %v4015_v46 = vpack.i.bf16 %v3735_v62, %v3724_v58 }
  0x6a   : > { %2954 = vrot.lane.b32.xlu1 %v3950_v24, %s3449_s22 }
  0x6b   : > { %5320 = vst [vmem:[#allocation37_spill] sm:$0xff] %v4015_v46 }
  0x6c   : > { %2949 = vrot.lane.b32.xlu0 %v3952_v57, %s3449_s22 }
  0x71   : > { %2974 = vrot.lane.b32.xlu2 %v3961_v45, %s3450_s23 }
  0x72   : > { %2969 = vrot.lane.b32.xlu1 %v3965_v48, %s3450_s23 }
  0x73   : > { %v3975_v9 = vpop.permute.xlu2 %2819 }
  0x74   : > { %2964 = vrot.lane.b32.xlu0 %v3969_v1, %s3450_s23 }
  0x79   : > { %2989 = vrot.lane.b32.xlu2 %v2988_v19, %s3450_s23  ;;  %v3008_v19 = vpack.i.bf16 %v3661_v63, %v3648_v52 }
  0x7a   : > { %2984 = vrot.lane.b32.xlu1 %v3983_v35, %s3450_s23 }
  0x7b   : > { %v3992_v30 = vpop.permute.xlu2 %2824 }
  0x7c   : > { %2979 = vrot.lane.b32.xlu0 %v3987_v14, %s3450_s23 }
  0x81   : > { %3004 = vrot.lane.b32.xlu2 %v3003_v43, %s3450_s23  ;;  %v4026_v43 = vunpack.c.l.bf16 %v2773_v37 }
  0x82   : > { %2999 = vrot.lane.b32.xlu1 %v4000_v16, %s3450_s23  ;;  %v4028_v16 = vunpack.c.h.bf16 %v2773_v37  ;;  %v3023_v37 = vpack.i.bf16 %v3713_v11, %v3711_v32 }
  0x83   : > { %v4009_v20 = vpop.permute.xlu2 %2839 }
  0x84   : > { %2994 = vrot.lane.b32.xlu0 %v4004_v47, %s3450_s23  ;;  %v4039_v48 = vpack.i.bf16 %v4028_v16, %v4026_v43 }
  0x86   : > { %5322 = vst [vmem:[#allocation39_spill] sm:$0xff] %v4039_v48 }
  0x89   : > { %3019 = vrot.lane.b32.xlu2 %v4015_v46, %s3450_s23  ;;  %v3028_v46 = vpack.i.bf16 %v3786_v22, %v3775_v38  ;;  %v2822_v38 = vunpack.i.h.bf16 %v3975_v9 }
  0x8a   : > { %3014 = vrot.lane.b32.xlu1 %v4019_v29, %s3450_s23 }
  0x8b   : > { %v4032_v47 = vpop.permute.xlu2 %2854 }
  0x8c   : > { %3009 = vrot.lane.b32.xlu0 %v3008_v19, %s3450_s23  ;;  %v4035_v35 = vpop.permute.xlu1 %2809 }
  0x8e   : > { %v4041_v45 = vpop.permute.xlu0 %2799 }
  0x91   : > { %3034 = vrot.lane.b32.xlu2 %v4039_v48, %s3450_s23 }
  0x92   : > { %3029 = vrot.lane.b32.xlu1 %v3028_v46, %s3450_s23  ;;  %v5325_v46 = vld [vmem:[#allocation8_spill] sm:$0xff] }
  0x93   : > { %v4050_v19 = vpop.permute.xlu2 %2869 }
  0x94   : > { %3024 = vrot.lane.b32.xlu0 %v3023_v37, %s3450_s23  ;;  %v4053_v29 = vpop.permute.xlu1 %2814 }
  0x96   : > { %v2805_v14 = vpop.permute.xlu0 %2804 }
  0x97   : > { %v2807_v24 = vunpack.i.h.bf16 %v2805_v14  ;;  %v2806_v1 = vunpack.i.l.bf16 %v2805_v14 }
  0x99   : > { %3049 = vrot.lane.b32.xlu2 %v5323_v56, %s3451_s24  ;;  %v1315_v11 = vsel %vm1311_vm3, %v3581_v51, %v2807_v24  ;;  %v1314_v14 = vsel %vm1311_vm3, %v3579_v50, %v2806_v1  ;;  %v5329_v51 = vld [vmem:[#allocation4_spill] sm:$0xff]  ;;  %v5330_v50 = vld [vmem:[#allocation2_spill] sm:$0xff] }
  0x9a   : > { %3044 = vrot.lane.b32.xlu1 %v5324_v23, %s3451_s24 }
  0x9b   : > { %v2885_v48 = vpop.permute.xlu2 %2884 }
  0x9c   : > { %3039 = vrot.lane.b32.xlu0 %v5325_v46, %s3451_s24  ;;  %v2835_v57 = vpop.permute.xlu1 %2834  ;;  %v2887_v37 = vunpack.i.h.bf16 %v2885_v48  ;;  %v2886_v32 = vunpack.i.l.bf16 %v2885_v48  ;;  %v2821_v46 = vunpack.i.l.bf16 %v3975_v9  ;;  %v5328_v48 = vld [vmem:[#allocation13_spill] sm:$0xff] }
  0x9e   : > { %v4066_v56 = vsel %vm1344_vm2, %v1314_v14, %v2886_v32  ;;  %v4069_v23 = vsel %vm1344_vm2, %v1315_v11, %v2887_v37  ;;  %v4071_v59 = vpop.permute.xlu0 %2829  ;;  %v1321_v37 = vsel %vm1311_vm3, %v3505_v4, %v2822_v38  ;;  %v1320_v14 = vsel %vm1311_vm3, %v3503_v3, %v2821_v46  ;;  %v5334_v3 = vld [vmem:[#allocation10_spill] sm:$0xff] }
  0x9f   : > { %5326 = vst [vmem:[#allocation8_spill] sm:$0xff] %v4066_v56  ;;  %v2836_v56 = vunpack.i.l.bf16 %v2835_v57 }
  0xa0   : > { %5327 = vst [vmem:[#allocation40_spill] sm:$0xff] %v4069_v23  ;;  %v2837_v23 = vunpack.i.h.bf16 %v2835_v57 }
  0xa1   : > { %3064 = vrot.lane.b32.xlu2 %v5328_v48, %s3451_s24  ;;  %v1326_v57 = vsel %vm1311_vm3, %v3613_v18, %v2836_v56  ;;  %v5337_v56 = vld [vmem:[#allocation15_spill] sm:$0xff] }
  0xa2   : > { %3059 = vrot.lane.b32.xlu1 %v5329_v51, %s3451_s24 }
  0xa3   : > { %v2900_v24 = vpop.permute.xlu2 %2899 }
  0xa4   : > { %3054 = vrot.lane.b32.xlu0 %v5330_v50, %s3451_s24  ;;  %v2850_v32 = vpop.permute.xlu1 %2849  ;;  %v2902_v1 = vunpack.i.h.bf16 %v2900_v24  ;;  %v2901_v11 = vunpack.i.l.bf16 %v2900_v24  ;;  %v5332_v50 = vld [vmem:[#allocation19_spill] sm:$0xff]  ;;  %v5333_v24 = vld [vmem:[#allocation9_spill] sm:$0xff] }
  0xa6   : > { %v4086_v9 = vsel %vm1344_vm2, %v1321_v37, %v2902_v1  ;;  %v4089_v48 = vsel %vm1344_vm2, %v1320_v14, %v2901_v11  ;;  %v4091_v51 = vpop.permute.xlu0 %2844  ;;  %v1327_v11 = vsel %vm1311_vm3, %v3619_v25, %v2837_v23  ;;  %v2801_v23 = vunpack.i.l.bf16 %v4041_v45 }
  0xa7   : > { %5331 = vst [vmem:[#allocation41_spill] sm:$0xff] %v4089_v48  ;;  %v2851_v48 = vunpack.i.l.bf16 %v2850_v32 }
  0xa9   : > { %3079 = vrot.lane.b32.xlu2 %v5332_v50, %s3451_s24 }
  0xaa   : > { %3074 = vrot.lane.b32.xlu1 %v5333_v24, %s3451_s24  ;;  %v2802_v24 = vunpack.i.h.bf16 %v4041_v45  ;;  %v1332_v45 = vsel %vm1311_vm3, %v3672_v31, %v2851_v48  ;;  %v808_v48 = vrot.slane %v4026_v43, 1 }
  0xab   : > { %v2915_v4 = vpop.permute.xlu2 %2914 }
  0xac   : > { %3069 = vrot.lane.b32.xlu0 %v5334_v3, %s3451_s24  ;;  %v2865_v38 = vpop.permute.xlu1 %2864  ;;  %v2917_v46 = vunpack.i.h.bf16 %v2915_v4  ;;  %v2916_v1 = vunpack.i.l.bf16 %v2915_v4  ;;  %v2852_v3 = vunpack.i.h.bf16 %v2850_v32  ;;  %v4115_v4 = vld [vmem:[%s3496_s20 + $0xc8] sm:$0x1] }
  0xae   : > { %v4104_v37 = vsel %vm1344_vm2, %v1327_v11, %v2917_v46  ;;  %v4107_v14 = vsel %vm1344_vm2, %v1326_v57, %v2916_v1  ;;  %v4109_v50 = vpop.permute.xlu0 %2859  ;;  %v1313_v46 = vsel %vm1311_vm3, %v3522_v13, %v2802_v24  ;;  %v5338_v11 = vld [vmem:[#allocation18_spill] sm:$0xff]  ;;  %v1312_v13 = vsel %vm1311_vm3, %v3520_v12, %v2801_v23 }
  0xaf   : > { %5335 = vst [vmem:[#allocation42_spill] sm:$0xff] %v4104_v37  ;;  %v5341_v12 = vunpack.c.l.bf16 %v4115_v4 }
  0xb0   : > { %5336 = vst [vmem:[#allocation43_spill] sm:$0xff] %v4107_v14  ;;  %v2817_v14 = vunpack.i.h.bf16 %v4053_v29 }
  0xb1   : > { %3094 = vrot.lane.b32.xlu2 %v3789_v17, %s3451_s24  ;;  %v1333_v17 = vsel %vm1311_vm3, %v3678_v39, %v2852_v3  ;;  %v811_v23 = vrot.slane %v5341_v12, 1  ;;  %v5343_v12 = vld [vmem:[#allocation22_spill] sm:$0xff] }
  0xb2   : > { %3089 = vrot.lane.b32.xlu1 %v5337_v56, %s3451_s24 }
  0xb3   : > { %v2930_v1 = vpop.permute.xlu2 %2929 }
  0xb4   : > { %3084 = vrot.lane.b32.xlu0 %v5338_v11, %s3451_s24  ;;  %v2932_v57 = vunpack.i.h.bf16 %v2930_v1  ;;  %v2931_v25 = vunpack.i.l.bf16 %v2930_v1  ;;  %v2880_v32 = vpop.permute.xlu1 %2879 }
  0xb5   : > { %v2882_v37 = vunpack.i.h.bf16 %v2880_v32  ;;  %v2881_v56 = vunpack.i.l.bf16 %v2880_v32  ;;  %v809_v32 = vrot.slane %v4028_v16, 1 }
  0xb6   : > { %v4132_v24 = vsel %vm1344_vm2, %v1333_v17, %v2932_v57  ;;  %v4135_v11 = vsel %vm1344_vm2, %v1332_v45, %v2931_v25  ;;  %v4137_v1 = vpop.permute.xlu0 %2874  ;;  %v2867_v17 = vunpack.i.h.bf16 %v2865_v38  ;;  %v2866_v57 = vunpack.i.l.bf16 %v2865_v38  ;;  %v5342_v45 = vld [vmem:[#allocation20_spill] sm:$0xff] }
  0xb7   : > { %5339 = vst [vmem:[#allocation44_spill] sm:$0xff] %v4132_v24  ;;  %v1345_v3 = vsel %vm1344_vm2, %v1312_v13, %v2881_v56  ;;  %v1346_v18 = vsel %vm1344_vm2, %v1313_v46, %v2882_v37  ;;  %v2816_v25 = vunpack.i.l.bf16 %v4053_v29  ;;  %v2812_v56 = vunpack.i.h.bf16 %v4035_v35 }
  0xb8   : > { %5340 = vst [vmem:[#allocation45_spill] sm:$0xff] %v4135_v11  ;;  %v2811_v37 = vunpack.i.l.bf16 %v4035_v35  ;;  %v1319_v46 = vsel %vm1311_vm3, %v3566_v42, %v2817_v14  ;;  %v812_v29 = vsel %vm355_vm0, %v809_v32, %v811_v23  ;;  %v1338_v35 = vsel %vm1311_vm3, %v3724_v58, %v2866_v57 }
  0xb9   : > { %3109 = vrot.lane.b32.xlu2 %v3817_v15, %s3451_s24  ;;  %v810_v15 = vsel %vm355_vm0, %v808_v48, %v809_v32  ;;  %v1318_v42 = vsel %vm1311_vm3, %v3564_v41, %v2816_v25  ;;  %v1317_v58 = vsel %vm1311_vm3, %v3517_v10, %v2812_v56  ;;  %v2832_v57 = vunpack.i.h.bf16 %v4071_v59 }
  0xba   : > { %3104 = vrot.lane.b32.xlu1 %v5342_v45, %s3451_s24  ;;  %v1339_v45 = vsel %vm1311_vm3, %v3735_v62, %v2867_v17  ;;  %v4177_v41 = vpack.i.bf16 %v812_v29, %v810_v15  ;;  %v2827_v10 = vunpack.i.h.bf16 %v3992_v30 }
  0xbb   : > { %v2945_v13 = vpop.permute.xlu2 %2944 }
  0xbc   : > { %3099 = vrot.lane.b32.xlu0 %v5343_v12, %s3451_s24  ;;  %v2947_v38 = vunpack.i.h.bf16 %v2945_v13  ;;  %v2946_v11 = vunpack.i.l.bf16 %v2945_v13  ;;  %v2895_v24 = vpop.permute.xlu1 %2894  ;;  %v5363_v12 = vld [vmem:[#allocation42_spill] sm:$0xff] }
  0xbd   : > { %v2897_v31 = vunpack.i.h.bf16 %v2895_v24  ;;  %v2896_v39 = vunpack.i.l.bf16 %v2895_v24  ;;  %v1316_v24 = vsel %vm1311_vm3, %v3508_v6, %v2811_v37  ;;  %v1325_v37 = vsel %vm1311_vm3, %v3639_v44, %v2832_v57 }
  0xbe   : > { %v4166_v14 = vsel %vm1344_vm2, %v1339_v45, %v2947_v38  ;;  %v4169_v13 = vsel %vm1344_vm2, %v1338_v35, %v2946_v11  ;;  %v2890_v48 = vpop.permute.xlu0 %2889  ;;  %v1323_v44 = vsel %vm1311_vm3, %v3556_v36, %v2827_v10 }
  0xbf   : > { %v1352_v32 = vsel %vm1344_vm2, %v1319_v46, %v2897_v31  ;;  %v1351_v23 = vsel %vm1344_vm2, %v1318_v42, %v2896_v39  ;;  %v2892_v62 = vunpack.i.h.bf16 %v2890_v48  ;;  %v2891_v17 = vunpack.i.l.bf16 %v2890_v48 }
  0xc0   : > { %v2831_v31 = vunpack.i.l.bf16 %v4071_v59  ;;  %v2826_v39 = vunpack.i.l.bf16 %v3992_v30 }
  0xc1   : > { %v4181_v11 = vsel %vm1344_vm2, %v1317_v58, %v2892_v62  ;;  %v4184_v25 = vsel %vm1344_vm2, %v1316_v24, %v2891_v17  ;;  %3124 = vrot.lane.b32.xlu2 %v3846_v21, %s3452_s25  ;;  %v2846_v58 = vunpack.i.l.bf16 %v4091_v51  ;;  %v2842_v24 = vunpack.i.h.bf16 %v4009_v20 }
  0xc2   : > { %3119 = vrot.lane.b32.xlu1 %v3805_v5, %s3452_s25  ;;  %v1324_v5 = vsel %vm1311_vm3, %v3637_v40, %v2831_v31  ;;  %v1322_v17 = vsel %vm1311_vm3, %v3541_v27, %v2826_v39  ;;  %v2847_v40 = vunpack.i.h.bf16 %v4091_v51  ;;  %v2841_v27 = vunpack.i.l.bf16 %v4009_v20 }
  0xc3   : > { %v2960_v6 = vpop.permute.xlu2 %2959  ;;  %v1330_v51 = vsel %vm1311_vm3, %v3687_v61, %v2846_v58  ;;  %v2862_v61 = vunpack.i.h.bf16 %v4109_v50 }
  0xc4   : > { %3114 = vrot.lane.b32.xlu0 %v4177_v41, %s3451_s24  ;;  %v2962_v15 = vunpack.i.h.bf16 %v2960_v6  ;;  %v2961_v45 = vunpack.i.l.bf16 %v2960_v6  ;;  %v2910_v56 = vpop.permute.xlu1 %2909  ;;  %v1331_v10 = vsel %vm1311_vm3, %v3695_v0, %v2847_v40  ;;  %v1329_v0 = vsel %vm1311_vm3, %v3604_v8, %v2842_v24 }
  0xc5   : > { %v2912_v46 = vunpack.i.h.bf16 %v2910_v56  ;;  %v2911_v59 = vunpack.i.l.bf16 %v2910_v56  ;;  %v2857_v8 = vunpack.i.h.bf16 %v4032_v47 }
  0xc6   : > { %v4200_v38 = vsel %vm1377_vm4, %v1345_v3, %v2961_v45  ;;  %v4203_v29 = vsel %vm1377_vm4, %v1346_v18, %v2962_v15  ;;  %v2905_v30 = vpop.permute.xlu0 %2904 }
  0xc7   : > { %v1357_v35 = vsel %vm1344_vm2, %v1324_v5, %v2911_v59  ;;  %v1358_v42 = vsel %vm1344_vm2, %v1325_v37, %v2912_v46  ;;  %v2907_v48 = vunpack.i.h.bf16 %v2905_v30  ;;  %v2906_v62 = vunpack.i.l.bf16 %v2905_v30 }
  0xc8   : > { %v1328_v30 = vsel %vm1311_vm3, %v3602_v2, %v2841_v27  ;;  %v2856_v2 = vunpack.i.l.bf16 %v4032_v47  ;;  %v2877_v27 = vunpack.i.h.bf16 %v4137_v1 }
  0xc9   : > { %v4213_v3 = vsel %vm1344_vm2, %v1323_v44, %v2907_v48  ;;  %v4216_v18 = vsel %vm1344_vm2, %v1322_v17, %v2906_v62  ;;  %3139 = vrot.lane.b32.xlu2 %v3876_v33, %s3452_s25  ;;  %v5362_v33 = vld [vmem:[#allocation11_spill] sm:$0xff] }
  0xca   : > { %3134 = vrot.lane.b32.xlu1 %v3832_v49, %s3452_s25 }
  0xcb   : > { %v2975_v36 = vpop.permute.xlu2 %2974 }
  0xcc   : > { %3129 = vrot.lane.b32.xlu0 %v3836_v54, %s3452_s25  ;;  %v2977_v57 = vunpack.i.h.bf16 %v2975_v36  ;;  %v2976_v31 = vunpack.i.l.bf16 %v2975_v36  ;;  %v2925_v6 = vpop.permute.xlu1 %2924 }
  0xcd   : > { %v2927_v39 = vunpack.i.h.bf16 %v2925_v6  ;;  %v2926_v15 = vunpack.i.l.bf16 %v2925_v6 }
  0xce   : > { %v4232_v45 = vsel %vm1377_vm4, %v1351_v23, %v2976_v31  ;;  %v4235_v56 = vsel %vm1377_vm4, %v1352_v32, %v2977_v57  ;;  %v2920_v20 = vpop.permute.xlu0 %2919  ;;  %v2861_v23 = vunpack.i.l.bf16 %v4109_v50  ;;  %v1337_v50 = vsel %vm1311_vm3, %v3749_v53, %v2862_v61  ;;  %v5345_v61 = vld [vmem:[#allocation26_spill] sm:$0xff] }
  0xcf   : > { %v1363_v37 = vsel %vm1344_vm2, %v1330_v51, %v2926_v15  ;;  %v1364_v46 = vsel %vm1344_vm2, %v1331_v10, %v2927_v39  ;;  %v2922_v59 = vunpack.i.h.bf16 %v2920_v20  ;;  %v2921_v5 = vunpack.i.l.bf16 %v2920_v20 }
  0xd0   : > { %v1336_v58 = vsel %vm1311_vm3, %v3742_v60, %v2861_v23  ;;  %v1335_v60 = vsel %vm1311_vm3, %v3661_v63, %v2857_v8  ;;  %v1334_v15 = vsel %vm1311_vm3, %v3648_v52, %v2856_v2  ;;  %v2876_v51 = vunpack.i.l.bf16 %v4137_v1 }
  0xd1   : > { %v4246_v32 = vsel %vm1344_vm2, %v1329_v0, %v2922_v59  ;;  %v4249_v48 = vsel %vm1344_vm2, %v1328_v30, %v2921_v5  ;;  %3154 = vrot.lane.b32.xlu2 %v3906_v26, %s3452_s25  ;;  %v2872_v20 = vunpack.i.h.bf16 %v4050_v19  ;;  %v2871_v59 = vunpack.i.l.bf16 %v4050_v19  ;;  %v5344_v0 = vld [vmem:[#allocation21_spill] sm:$0xff] }
  0xd2   : > { %3149 = vrot.lane.b32.xlu1 %v3862_v28, %s3452_s25  ;;  %v1343_v5 = vsel %vm1311_vm3, %v3786_v22, %v2877_v27  ;;  %v1342_v30 = vsel %vm1311_vm3, %v5344_v0, %v2876_v51  ;;  %v5350_v51 = vld [vmem:[#allocation27_spill] sm:$0xff] }
  0xd3   : > { %v2990_v62 = vpop.permute.xlu2 %2989 }
  0xd4   : > { %3144 = vrot.lane.b32.xlu0 %v3866_v34, %s3452_s25  ;;  %v2992_v44 = vunpack.i.h.bf16 %v2990_v62  ;;  %v2991_v17 = vunpack.i.l.bf16 %v2990_v62  ;;  %v2940_v40 = vpop.permute.xlu1 %2939 }
  0xd5   : > { %v2942_v36 = vunpack.i.h.bf16 %v2940_v40  ;;  %v2941_v24 = vunpack.i.l.bf16 %v2940_v40 }
  0xd6   : > { %v4265_v57 = vsel %vm1377_vm4, %v1357_v35, %v2991_v17  ;;  %v4268_v47 = vsel %vm1377_vm4, %v1358_v42, %v2992_v44  ;;  %v2935_v53 = vpop.permute.xlu0 %2934  ;;  %v909_v44 = vrot.slane %v4026_v43, 2 }
  0xd7   : > { %v1369_v31 = vsel %vm1344_vm2, %v1336_v58, %v2941_v24  ;;  %v1370_v6 = vsel %vm1344_vm2, %v1337_v50, %v2942_v36  ;;  %v2937_v10 = vunpack.i.h.bf16 %v2935_v53  ;;  %v2936_v39 = vunpack.i.l.bf16 %v2935_v53 }
  0xd8   : > { %v910_v58 = vrot.slane %v4028_v16, 2  ;;  %v5346_v36 = vunpack.c.l.bf16 %v4115_v4  ;;  %v5349_v4 = vld [vmem:[#allocation29_spill] sm:$0xff] }
  0xd9   : > { %v4278_v35 = vsel %vm1344_vm2, %v1335_v60, %v2937_v10  ;;  %v4281_v42 = vsel %vm1344_vm2, %v1334_v15, %v2936_v39  ;;  %3169 = vrot.lane.b32.xlu2 %v3932_v55, %s3452_s25  ;;  %v5347_v60 = vld [vmem:[#allocation17_spill] sm:$0xff] }
  0xda   : > { %3164 = vrot.lane.b32.xlu1 %v3892_v7, %s3452_s25  ;;  %v912_v24 = vrot.slane %v5346_v36, 2  ;;  %v1341_v43 = vsel %vm1311_vm3, %v5347_v60, %v2872_v20 }
  0xdb   : > { %v3005_v1 = vpop.permute.xlu2 %3004 }
  0xdc   : > { %3159 = vrot.lane.b32.xlu0 %v5345_v61, %s3452_s25  ;;  %v3007_v23 = vunpack.i.h.bf16 %v3005_v1  ;;  %v3006_v8 = vunpack.i.l.bf16 %v3005_v1  ;;  %v2955_v62 = vpop.permute.xlu1 %2954  ;;  %v911_v1 = vsel %vm532_vm1, %v909_v44, %v910_v58  ;;  %v913_v20 = vsel %vm532_vm1, %v910_v58, %v912_v24 }
  0xdd   : > { %v2957_v2 = vunpack.i.h.bf16 %v2955_v62  ;;  %v2956_v50 = vunpack.i.l.bf16 %v2955_v62 }
  0xde   : > { %v4297_v17 = vsel %vm1377_vm4, %v1363_v37, %v3006_v8  ;;  %v4300_v19 = vsel %vm1377_vm4, %v1364_v46, %v3007_v23  ;;  %v2950_v40 = vpop.permute.xlu0 %2949  ;;  %v5348_v37 = vld [vmem:[#allocation16_spill] sm:$0xff] }
  0xdf   : > { %v1375_v27 = vsel %vm1344_vm2, %v1342_v30, %v2956_v50  ;;  %v1376_v53 = vsel %vm1344_vm2, %v1343_v5, %v2957_v2  ;;  %v2952_v10 = vunpack.i.h.bf16 %v2950_v40  ;;  %v2951_v39 = vunpack.i.l.bf16 %v2950_v40  ;;  %v5351_v30 = vld [vmem:[#allocation28_spill] sm:$0xff] }
  0xe0   : > { %v1340_v15 = vsel %vm1311_vm3, %v5348_v37, %v2871_v59  ;;  %vm2565_vm3 = vcmask 125952  }
  0xe1   : > { %v4312_v46 = vsel %vm1344_vm2, %v1341_v43, %v2952_v10  ;;  %v4315_v16 = vsel %vm1344_vm2, %v1340_v15, %v2951_v39  ;;  %3184 = vrot.lane.b32.xlu2 %v5349_v4, %s3452_s25  ;;  %v4331_v10 = vpack.i.bf16 %v913_v20, %v911_v1  ;;  %v5352_v43 = vld [vmem:[#allocation8_spill] sm:$0xff]  ;;  %vm2449_vm2 = vcmask 1047559  }
  0xe2   : > { %3179 = vrot.lane.b32.xlu1 %v5350_v51, %s3452_s25 }
  0xe3   : > { %v3020_v5 = vpop.permute.xlu2 %3019 }
  0xe4   : > { %3174 = vrot.lane.b32.xlu0 %v5351_v30, %s3452_s25  ;;  %v3022_v59 = vunpack.i.h.bf16 %v3020_v5  ;;  %v3021_v23 = vunpack.i.l.bf16 %v3020_v5  ;;  %v2970_v8 = vpop.permute.xlu1 %2969 }
  0xe5   : > { %v2972_v62 = vunpack.i.h.bf16 %v2970_v8  ;;  %v2971_v2 = vunpack.i.l.bf16 %v2970_v8 }
  0xe6   : > { %v4326_v50 = vsel %vm1377_vm4, %v1369_v31, %v3021_v23  ;;  %v4329_v40 = vsel %vm1377_vm4, %v1370_v6, %v3022_v59  ;;  %v2965_v36 = vpop.permute.xlu0 %2964  ;;  %v5353_v31 = vld [vmem:[#allocation40_spill] sm:$0xff] }
  0xe7   : > { %v1382_v44 = vsel %vm1377_vm4, %v4184_v25, %v2971_v2  ;;  %v1383_v58 = vsel %vm1377_vm4, %v4181_v11, %v2972_v62  ;;  %v2967_v24 = vunpack.i.h.bf16 %v2965_v36  ;;  %v2966_v39 = vunpack.i.l.bf16 %v2965_v36  ;;  %v5354_v6 = vld [vmem:[#allocation32_spill] sm:$0xff]  ;;  %v5355_v11 = vld [vmem:[#allocation14_spill] sm:$0xff] }
  0xe9   : > { %v4339_v15 = vsel %vm1377_vm4, %v5352_v43, %v2966_v39  ;;  %v4343_v5 = vsel %vm1377_vm4, %v5353_v31, %v2967_v24  ;;  %3199 = vrot.lane.b32.xlu2 %v5354_v6, %s3453_s26 }
  0xea   : > { %3194 = vrot.lane.b32.xlu1 %v4331_v10, %s3452_s25 }
  0xeb   : > { %v3035_v25 = vpop.permute.xlu2 %3034 }
  0xec   : > { %3189 = vrot.lane.b32.xlu0 %v5355_v11, %s3452_s25  ;;  %v3037_v1 = vunpack.i.h.bf16 %v3035_v25  ;;  %v3036_v20 = vunpack.i.l.bf16 %v3035_v25  ;;  %v2985_v59 = vpop.permute.xlu1 %2984  ;;  %v5356_v25 = vld [vmem:[#allocation41_spill] sm:$0xff] }
  0xed   : > { %v2987_v23 = vunpack.i.h.bf16 %v2985_v59  ;;  %v2986_v8 = vunpack.i.l.bf16 %v2985_v59 }
  0xee   : > { %v4352_v62 = vsel %vm1377_vm4, %v1375_v27, %v3036_v20  ;;  %v4355_v2 = vsel %vm1377_vm4, %v1376_v53, %v3037_v1  ;;  %v2980_v36 = vpop.permute.xlu0 %2979  ;;  %v5357_v53 = vld [vmem:[#allocation34_spill] sm:$0xff] }
  0xef   : > { %v1388_v24 = vsel %vm1377_vm4, %v4216_v18, %v2986_v8  ;;  %v1389_v39 = vsel %vm1377_vm4, %v4213_v3, %v2987_v23  ;;  %v2982_v43 = vunpack.i.h.bf16 %v2980_v36  ;;  %v2981_v31 = vunpack.i.l.bf16 %v2980_v36  ;;  %v5358_v1 = vld [vmem:[#allocation30_spill] sm:$0xff]  ;;  %v5359_v3 = vld [vmem:[#allocation31_spill] sm:$0xff]  ;;  %v5360_v36 = vld [vmem:[#allocation12_spill] sm:$0xff] }
  0xf1   : > { %v4363_v6 = vsel %vm1377_vm4, %v4086_v9, %v2982_v43  ;;  %v4367_v27 = vsel %vm1377_vm4, %v5356_v25, %v2981_v31  ;;  %3214 = vrot.lane.b32.xlu2 %v5357_v53, %s3453_s26  ;;  %v3228_v43 = vpack.i.bf16 %v5348_v37, %v5360_v36 }
  0xf2   : > { %3209 = vrot.lane.b32.xlu1 %v5358_v1, %s3453_s26  ;;  %v5361_v1 = vld [vmem:[#allocation6_spill] sm:$0xff] }
  0xf3   : > { %v3050_v18 = vpop.permute.xlu2 %3049  ;;  %v3223_v61 = vpack.i.bf16 %v5362_v33, %v5361_v1 }
  0xf4   : > { %3204 = vrot.lane.b32.xlu0 %v5359_v3, %s3453_s26  ;;  %v3052_v20 = vunpack.i.h.bf16 %v3050_v18  ;;  %v3051_v59 = vunpack.i.l.bf16 %v3050_v18  ;;  %v3000_v23 = vpop.permute.xlu1 %2999 }
  0xf5   : > { %v3002_v9 = vunpack.i.h.bf16 %v3000_v23  ;;  %v3001_v8 = vunpack.i.l.bf16 %v3000_v23 }
  0xf6   : > { %v4378_v31 = vsel %vm1410_vm5, %v1382_v44, %v3051_v59  ;;  %v4381_v25 = vsel %vm1410_vm5, %v1383_v58, %v3052_v20  ;;  %v2995_v53 = vpop.permute.xlu0 %2994  ;;  %v5364_v44 = vld [vmem:[#allocation43_spill] sm:$0xff] }
  0xf7   : > { %v1394_v3 = vsel %vm1377_vm4, %v4249_v48, %v3001_v8  ;;  %v1395_v18 = vsel %vm1377_vm4, %v4246_v32, %v3002_v9  ;;  %v2997_v23 = vunpack.i.h.bf16 %v2995_v53  ;;  %v2996_v51 = vunpack.i.l.bf16 %v2995_v53  ;;  %v5365_v48 = vld [vmem:[#allocation33_spill] sm:$0xff] }
  0xf9   : > { %v4391_v37 = vsel %vm1377_vm4, %v5363_v12, %v2997_v23  ;;  %v4395_v58 = vsel %vm1377_vm4, %v5364_v44, %v2996_v51  ;;  %3229 = vrot.lane.b32.xlu2 %v3228_v43, %s3453_s26  ;;  %v3233_v23 = vpack.i.bf16 %v3648_v52, %v5347_v60  ;;  %v5366_v44 = vld [vmem:[#allocation44_spill] sm:$0xff] }
  0xfa   : > { %3224 = vrot.lane.b32.xlu1 %v3223_v61, %s3453_s26 }
  0xfb   : > { %v3065_v33 = vpop.permute.xlu2 %3064 }
  0xfc   : > { %3219 = vrot.lane.b32.xlu0 %v5365_v48, %s3453_s26  ;;  %v3067_v20 = vunpack.i.h.bf16 %v3065_v33  ;;  %v3066_v32 = vunpack.i.l.bf16 %v3065_v33  ;;  %v3015_v59 = vpop.permute.xlu1 %3014  ;;  %v5368_v48 = vld [vmem:[#allocation20_spill] sm:$0xff] }
  0xfd   : > { %v3017_v9 = vunpack.i.h.bf16 %v3015_v59  ;;  %v3016_v8 = vunpack.i.l.bf16 %v3015_v59 }
  0xfe   : > { %v4402_v12 = vsel %vm1410_vm5, %v1388_v24, %v3066_v32  ;;  %v4405_v36 = vsel %vm1410_vm5, %v1389_v39, %v3067_v20  ;;  %v3010_v51 = vpop.permute.xlu0 %3009  ;;  %v5367_v24 = vld [vmem:[#allocation45_spill] sm:$0xff] }
  0xff   : > { %v1400_v43 = vsel %vm1377_vm4, %v4281_v42, %v3016_v8  ;;  %v1401_v61 = vsel %vm1377_vm4, %v4278_v35, %v3017_v9  ;;  %v3012_v53 = vunpack.i.h.bf16 %v3010_v51  ;;  %v3011_v1 = vunpack.i.l.bf16 %v3010_v51  ;;  %v5369_v42 = vld [vmem:[#allocation18_spill] sm:$0xff] }
 0x101   : > { %v4415_v33 = vsel %vm1377_vm4, %v5366_v44, %v3012_v53  ;;  %v4419_v39 = vsel %vm1377_vm4, %v5367_v24, %v3011_v1  ;;  %3244 = vrot.lane.b32.xlu2 %v5368_v48, %s3454_s27 }
 0x102   : > { %3239 = vrot.lane.b32.xlu1 %v5369_v42, %s3454_s27 }
 0x103   : > { %v3080_v35 = vpop.permute.xlu2 %3079 }
 0x104   : > { %3234 = vrot.lane.b32.xlu0 %v3233_v23, %s3453_s26  ;;  %v3082_v20 = vunpack.i.h.bf16 %v3080_v35  ;;  %v3081_v52 = vunpack.i.l.bf16 %v3080_v35  ;;  %v3030_v60 = vpop.permute.xlu1 %3029 }
 0x105   : > { %v3032_v32 = vunpack.i.h.bf16 %v3030_v60  ;;  %v3031_v59 = vunpack.i.l.bf16 %v3030_v60 }
 0x106   : > { %v4427_v9 = vsel %vm1410_vm5, %v1394_v3, %v3081_v52  ;;  %v4430_v8 = vsel %vm1410_vm5, %v1395_v18, %v3082_v20  ;;  %v3025_v51 = vpop.permute.xlu0 %3024  ;;  %v5370_v18 = vld [vmem:[#allocation3_spill] sm:$0xff] }
 0x107   : > { %v1406_v53 = vsel %vm1377_vm4, %v4315_v16, %v3031_v59  ;;  %v1407_v1 = vsel %vm1377_vm4, %v4312_v46, %v3032_v32  ;;  %v3027_v44 = vunpack.i.h.bf16 %v3025_v51  ;;  %v3026_v23 = vunpack.i.l.bf16 %v3025_v51 }
 0x109   : > { %v4438_v24 = vsel %vm1377_vm4, %v4166_v14, %v3027_v44  ;;  %v4442_v3 = vsel %vm1377_vm4, %v4169_v13, %v3026_v23  ;;  %3259 = vrot.lane.b32.xlu2 %v5370_v18, %s3454_s27 }
 0x10a   : > { %3254 = vrot.lane.b32.xlu1 %v5349_v4, %s3455_s28 }
 0x10b   : > { %v3095_v16 = vpop.permute.xlu2 %3094 }
 0x10c   : > { %3249 = vrot.lane.b32.xlu0 %v3892_v7, %s3455_s28  ;;  %v3097_v46 = vunpack.i.h.bf16 %v3095_v16  ;;  %v3096_v48 = vunpack.i.l.bf16 %v3095_v16  ;;  %v3045_v42 = vpop.permute.xlu1 %3044 }
 0x10d   : > { %v3047_v14 = vunpack.i.h.bf16 %v3045_v42  ;;  %v3046_v35 = vunpack.i.l.bf16 %v3045_v42 }
 0x10e   : > { %v4451_v20 = vsel %vm1410_vm5, %v1400_v43, %v3096_v48  ;;  %v4454_v13 = vsel %vm1410_vm5, %v1401_v61, %v3097_v46  ;;  %v3040_v52 = vpop.permute.xlu0 %3039  ;;  %v5371_v61 = vld [vmem:[#allocation13_spill] sm:$0xff] }
 0x10f   : > { %v1413_v60 = vsel %vm1410_vm5, %v4339_v15, %v3046_v35  ;;  %v1414_v4 = vsel %vm1410_vm5, %v4343_v5, %v3047_v14  ;;  %v3042_v32 = vunpack.i.h.bf16 %v3040_v52  ;;  %v3041_v7 = vunpack.i.l.bf16 %v3040_v52 }
 0x110   : > { %v3278_v35 = vpack.i.bf16 %v5344_v0, %v3661_v63 }
 0x111   : > { %v4462_v59 = vsel %vm1410_vm5, %v4200_v38, %v3041_v7  ;;  %v4466_v43 = vsel %vm1410_vm5, %v4203_v29, %v3042_v32  ;;  %3274 = vrot.lane.b32.xlu2 %v3866_v34, %s3455_s28  ;;  %v5372_v34 = vld [vmem:[#allocation7_spill] sm:$0xff] }
 0x112   : > { %3269 = vrot.lane.b32.xlu1 %v3846_v21, %s3455_s28  ;;  %v3283_v46 = vpack.i.bf16 %v5372_v34, %v3786_v22  ;;  %v5373_v22 = vld [vmem:[#allocation15_spill] sm:$0xff] }
 0x113   : > { %v3110_v15 = vpop.permute.xlu2 %3109 }
 0x114   : > { %3264 = vrot.lane.b32.xlu0 %v5371_v61, %s3454_s27  ;;  %v3112_v5 = vunpack.i.h.bf16 %v3110_v15  ;;  %v3111_v51 = vunpack.i.l.bf16 %v3110_v15  ;;  %v3060_v44 = vpop.permute.xlu1 %3059 }
 0x115   : > { %v3062_v23 = vunpack.i.h.bf16 %v3060_v44  ;;  %v3061_v38 = vunpack.i.l.bf16 %v3060_v44 }
 0x116   : > { %v4475_v18 = vsel %vm1410_vm5, %v1406_v53, %v3111_v51  ;;  %v4478_v29 = vsel %vm1410_vm5, %v1407_v1, %v3112_v5  ;;  %v3055_v16 = vpop.permute.xlu0 %3054 }
 0x117   : > { %v1419_v21 = vsel %vm1410_vm5, %v4367_v27, %v3061_v38  ;;  %v1420_v48 = vsel %vm1410_vm5, %v4363_v6, %v3062_v23  ;;  %v3057_v42 = vunpack.i.h.bf16 %v3055_v16  ;;  %v3056_v14 = vunpack.i.l.bf16 %v3055_v16 }
 0x119   : > { %v4490_v53 = vsel %vm1410_vm5, %v4235_v56, %v3057_v42  ;;  %v4494_v1 = vsel %vm1410_vm5, %v4232_v45, %v3056_v14  ;;  %3289 = vrot.lane.b32.xlu2 %v5373_v22, %s3454_s27  ;;  %v5376_v22 = vld [vmem:[#allocation5_spill] sm:$0xff] }
 0x11a   : > { %3284 = vrot.lane.b32.xlu1 %v3283_v46, %s3453_s26 }
 0x11b   : > { %v3125_v6 = vpop.permute.xlu2 %3124 }
 0x11c   : > { %3279 = vrot.lane.b32.xlu0 %v3278_v35, %s3453_s26  ;;  %v3127_v27 = vunpack.i.h.bf16 %v3125_v6  ;;  %v3126_v52 = vunpack.i.l.bf16 %v3125_v6  ;;  %v3075_v63 = vpop.permute.xlu1 %3074 }
 0x11d   : > { %v3077_v0 = vunpack.i.h.bf16 %v3075_v63  ;;  %v3076_v32 = vunpack.i.l.bf16 %v3075_v63 }
 0x11e   : > { %v4501_v56 = vsel %vm1443_vm6, %v1413_v60, %v3126_v52  ;;  %v4504_v45 = vsel %vm1443_vm6, %v1414_v4, %v3127_v27  ;;  %v3070_v7 = vpop.permute.xlu0 %3069  ;;  %v5374_v4 = vld [vmem:[#allocation24_spill] sm:$0xff] }
 0x11f   : > { %v1425_v15 = vsel %vm1410_vm5, %v4395_v58, %v3076_v32  ;;  %v1426_v61 = vsel %vm1410_vm5, %v4391_v37, %v3077_v0  ;;  %v3072_v5 = vunpack.i.h.bf16 %v3070_v7  ;;  %v3071_v51 = vunpack.i.l.bf16 %v3070_v7 }
 0x121   : > { %v4512_v44 = vsel %vm1410_vm5, %v4265_v57, %v3071_v51  ;;  %v4516_v60 = vsel %vm1410_vm5, %v4268_v47, %v3072_v5  ;;  %3304 = vrot.lane.b32.xlu2 %v5355_v11, %s3455_s28 }
 0x122   : > { %3299 = vrot.lane.b32.xlu1 %v3932_v55, %s3455_s28 }
 0x123   : > { %v3140_v58 = vpop.permute.xlu2 %3139 }
 0x124   : > { %3294 = vrot.lane.b32.xlu0 %v5374_v4, %s3454_s27  ;;  %v3142_v37 = vunpack.i.h.bf16 %v3140_v58  ;;  %v3141_v23 = vunpack.i.l.bf16 %v3140_v58  ;;  %v3090_v38 = vpop.permute.xlu1 %3089 }
 0x125   : > { %v3092_v16 = vunpack.i.h.bf16 %v3090_v38  ;;  %v3091_v57 = vunpack.i.l.bf16 %v3090_v38 }
 0x126   : > { %v4525_v34 = vsel %vm1443_vm6, %v1419_v21, %v3141_v23  ;;  %v4528_v47 = vsel %vm1443_vm6, %v1420_v48, %v3142_v37  ;;  %v3085_v46 = vpop.permute.xlu0 %3084  ;;  %v5375_v48 = vld [vmem:[#allocation10_spill] sm:$0xff] }
 0x127   : > { %v1431_v11 = vsel %vm1410_vm5, %v4419_v39, %v3091_v57  ;;  %v1432_v55 = vsel %vm1410_vm5, %v4415_v33, %v3092_v16  ;;  %v3087_v42 = vunpack.i.h.bf16 %v3085_v46  ;;  %v3086_v14 = vunpack.i.l.bf16 %v3085_v46 }
 0x129   : > { %v4536_v35 = vsel %vm1410_vm5, %v4297_v17, %v3086_v14  ;;  %v4540_v21 = vsel %vm1410_vm5, %v4300_v19, %v3087_v42  ;;  %3319 = vrot.lane.b32.xlu2 %v3836_v54, %s3455_s28 }
 0x12a   : > { %3314 = vrot.lane.b32.xlu1 %v5375_v48, %s3454_s27 }
 0x12b   : > { %v3155_v39 = vpop.permute.xlu2 %3154 }
 0x12c   : > { %3309 = vrot.lane.b32.xlu0 %v5376_v22, %s3454_s27  ;;  %v3157_v33 = vunpack.i.h.bf16 %v3155_v39  ;;  %v3156_v6 = vunpack.i.l.bf16 %v3155_v39  ;;  %v3105_v27 = vpop.permute.xlu1 %3104 }
 0x12d   : > { %v3107_v52 = vunpack.i.h.bf16 %v3105_v27  ;;  %v3106_v17 = vunpack.i.l.bf16 %v3105_v27  ;;  %v5380_v27 = vld [vmem:[#allocation2_spill] sm:$0xff] }
 0x12e   : > { %v4549_v63 = vsel %vm1443_vm6, %v1425_v15, %v3156_v6  ;;  %v4552_v19 = vsel %vm1443_vm6, %v1426_v61, %v3157_v33  ;;  %v3100_v0 = vpop.permute.xlu0 %3099  ;;  %v5377_v61 = vld [vmem:[#allocation39_spill] sm:$0xff] }
 0x12f   : > { %v4556_v54 = vsel %vm1410_vm5, %v4442_v3, %v3106_v17  ;;  %v4560_v32 = vsel %vm1410_vm5, %v4438_v24, %v3107_v52  ;;  %v3102_v7 = vunpack.i.h.bf16 %v3100_v0  ;;  %v3101_v5 = vunpack.i.l.bf16 %v3100_v0  ;;  %v5378_v3 = vld [vmem:[#allocation38_spill] sm:$0xff]  ;;  %v5381_v52 = vld [vmem:[#allocation36_spill] sm:$0xff] }
 0x131   : > { %v4564_v51 = vsel %vm1410_vm5, %v4326_v50, %v3101_v5  ;;  %v4568_v15 = vsel %vm1410_vm5, %v4329_v40, %v3102_v7  ;;  %3334 = vrot.lane.b32.xlu2 %v5377_v61, %s3453_s26 }
 0x132   : > { %3329 = vrot.lane.b32.xlu1 %v5378_v3, %s3453_s26  ;;  %v250_v3 = vld [vmem:[%s3496_s20 + $0xcc] sm:$0xff]  }
 0x133   : > { %v3170_v58 = vpop.permute.xlu2 %3169 }
 0x134   : > { %3324 = vrot.lane.b32.xlu0 %v3862_v28, %s3455_s28  ;;  %v3172_v24 = vunpack.i.h.bf16 %v3170_v58  ;;  %v3171_v4 = vunpack.i.l.bf16 %v3170_v58  ;;  %v3120_v37 = vpop.permute.xlu1 %3119 }
 0x135   : > { %v3122_v23 = vunpack.i.h.bf16 %v3120_v37  ;;  %v3121_v50 = vunpack.i.l.bf16 %v3120_v37  ;;  %v5382_v37 = vld [vmem:[#allocation9_spill] sm:$0xff] }
 0x136   : > { %v4577_v38 = vsel %vm1443_vm6, %v1431_v11, %v3171_v4  ;;  %v4580_v40 = vsel %vm1443_vm6, %v1432_v55, %v3172_v24  ;;  %v3115_v16 = vpop.permute.xlu0 %3114  ;;  %v252_v24 = vld [vmem:[%s3496_s20 + $0xd4] sm:$0x1] }
 0x137   : > { %v4584_v57 = vsel %vm1443_vm6, %v4462_v59, %v3121_v50  ;;  %v4588_v46 = vsel %vm1443_vm6, %v4466_v43, %v3122_v23  ;;  %v3117_v28 = vunpack.i.h.bf16 %v3115_v16  ;;  %v3116_v42 = vunpack.i.l.bf16 %v3115_v16  ;;  %v5379_v43 = vld [vmem:[#allocation23_spill] sm:$0xff] }
 0x139   : > { %v4592_v14 = vsel %vm1410_vm5, %v4352_v62, %v3116_v42  ;;  %v4596_v11 = vsel %vm1410_vm5, %v4355_v2, %v3117_v28  ;;  %3349 = vrot.lane.b32.xlu2 %v5351_v30, %s3455_s28  ;;  %v306_v28 = vunpack.c.l.bf16 %v252_v24  ;;  %v2643_v24 = vld [vmem:[%s5188_s1 + $0x8] sm:$0xf] }
 0x13a   : > { %3344 = vrot.lane.b32.xlu1 %v4177_v41, %s3454_s27 }
 0x13b   : > { %v4602_v59 = vpop.permute.xlu2 %3184 }
 0x13c   : > { %3339 = vrot.lane.b32.xlu0 %v5379_v43, %s3454_s27  ;;  %v3135_v55 = vpop.permute.xlu1 %3134 }
 0x13d   : > { %v3137_v48 = vunpack.i.h.bf16 %v3135_v55  ;;  %v3136_v39 = vunpack.i.l.bf16 %v3135_v55 }
 0x13e   : > { %v3130_v62 = vpop.permute.xlu0 %3129 }
 0x13f   : > { %v1450_v22 = vsel %vm1443_vm6, %v4494_v1, %v3136_v39  ;;  %v1451_v2 = vsel %vm1443_vm6, %v4490_v53, %v3137_v48  ;;  %v3132_v33 = vunpack.i.h.bf16 %v3130_v62  ;;  %v3131_v30 = vunpack.i.l.bf16 %v3130_v62 }
 0x141   : > { %v4612_v41 = vsel %vm1443_vm6, %v4378_v31, %v3131_v30  ;;  %v4616_v6 = vsel %vm1443_vm6, %v4381_v25, %v3132_v33  ;;  %3364 = vrot.lane.b32.xlu2 %v5380_v27, %s3454_s27  ;;  %v1213_v33 = vrot.slane %v306_v28, 2  ;;  %v1112_v27 = vrot.slane %v306_v28, 1 }
 0x142   : > { %3359 = vrot.lane.b32.xlu1 %v5381_v52, %s3453_s26 }
 0x143   : > { %v4622_v1 = vpop.permute.xlu2 %3199 }
 0x144   : > { %3354 = vrot.lane.b32.xlu0 %v4331_v10, %s3455_s28  ;;  %v3150_v53 = vpop.permute.xlu1 %3149 }
 0x145   : > { %v3152_v17 = vunpack.i.h.bf16 %v3150_v53  ;;  %v3151_v31 = vunpack.i.l.bf16 %v3150_v53  ;;  %v5384_v53 = vld [vmem:[#allocation37_spill] sm:$0xff] }
 0x146   : > { %v3145_v0 = vpop.permute.xlu0 %3144 }
 0x147   : > { %v4628_v25 = vsel %vm1443_vm6, %v4512_v44, %v3151_v31  ;;  %v4632_v7 = vsel %vm1443_vm6, %v4516_v60, %v3152_v17  ;;  %v3147_v5 = vunpack.i.h.bf16 %v3145_v0  ;;  %v3146_v61 = vunpack.i.l.bf16 %v3145_v0 }
 0x148   : > { %v304_v44 = vunpack.c.l.bf16 %v250_v3  ;;  %v305_v60 = vunpack.c.h.bf16 %v250_v3 }
 0x149   : > { %v4637_v58 = vsel %vm1443_vm6, %v4402_v12, %v3146_v61  ;;  %v4641_v10 = vsel %vm1443_vm6, %v4405_v36, %v3147_v5  ;;  %3379 = vrot.lane.b32.xlu2 %v3906_v26, %s3455_s28 }
 0x14a   : > { %3374 = vrot.lane.b32.xlu1 %v3832_v49, %s3455_s28  ;;  %v3388_v43 = vpack.i.bf16 %v305_v60, %v304_v44  ;;  %v1210_v39 = vrot.slane %v304_v44, 2  ;;  %v1211_v62 = vrot.slane %v305_v60, 2  ;;  %v1109_v30 = vrot.slane %v304_v44, 1 }
 0x14b   : > { %v3215_v4 = vpop.permute.xlu2 %3214 }
 0x14c   : > { %3369 = vrot.lane.b32.xlu0 %v5382_v37, %s3454_s27  ;;  %v3217_v12 = vunpack.i.h.bf16 %v3215_v4  ;;  %v3216_v23 = vunpack.i.l.bf16 %v3215_v4  ;;  %v3165_v50 = vpop.permute.xlu1 %3164  ;;  %v1212_v52 = vsel %vm532_vm1, %v1210_v39, %v1211_v62  ;;  %v2729_v4 = vld [vmem:[%s5188_s1 + $0x8] sm:$0x30] }
 0x14d   : > { %v3167_v16 = vunpack.i.h.bf16 %v3165_v50  ;;  %v3166_v36 = vunpack.i.l.bf16 %v3165_v50  ;;  %v3456_v50 = vmov 65535  }
 0x14e   : > { %v4651_v42 = vsel %vm1476_vm7, %v1450_v22, %v3216_v23  ;;  %v4654_v26 = vsel %vm1476_vm7, %v1451_v2, %v3217_v12  ;;  %v4656_v49 = vpop.permute.xlu0 %3159  ;;  %v1110_v22 = vrot.slane %v305_v60, 1  ;;  %v5383_v2 = vld [vmem:[#allocation22_spill] sm:$0xff]  ;;  %v2644_v23 = vor.u32 %v2729_v4, %v2643_v24  ;;  %v5390_v24 = vld [vmem:[#allocation25_spill] sm:$0xff] }
 0x14f   : > { %v4660_v55 = vsel %vm1443_vm6, %v4536_v35, %v3166_v36  ;;  %v4664_v48 = vsel %vm1443_vm6, %v4540_v21, %v3167_v16  ;;  %v1214_v35 = vsel %vm532_vm1, %v1211_v62, %v1213_v33  ;;  %v1656_v16 = vsel %vm1655_vm8, 4294967295, %v3456_v50  ;;  %v5385_v36 = vld [vmem:[#allocation27_spill] sm:$0xff] }
 0x150   : > { %v1111_v31 = vsel %vm355_vm0, %v1109_v30, %v1110_v22  ;;  %v1113_v0 = vsel %vm355_vm0, %v1110_v22, %v1112_v27  ;;  %v3408_v5 = vpack.i.bf16 %v1214_v35, %v1212_v52  ;;  %v1657_v28 = vsel %vm532_vm1, %v1656_v16, 0  ;;  %v2728_v52 = vld [vmem:[%s5188_s1] sm:$0xff] }
 0x151   : > { %3394 = vrot.lane.b32.xlu2 %v5383_v2, %s3454_s27  ;;  %v3398_v60 = vpack.i.bf16 %v1113_v0, %v1111_v31  ;;  %v5388_v31 = vld [vmem:[#allocation35_spill] sm:$0xff]  ;;  %vm2443_vm0 = vcmask 1045509   ;;  %vm2446_vm1 = vcmask 1046534  }
 0x152   : > { %3389 = vrot.lane.b32.xlu1 %v3388_v43, %s3453_s26  ;;  %v1659_v43 = vand.u32 %v2644_v23, %v1657_v28  ;;  %v3161_v28 = vunpack.i.l.bf16 %v4656_v49 }
 0x153   : > { %v4675_v17 = vpop.permute.xlu2 %3229 }
 0x154   : > { %3384 = vrot.lane.b32.xlu0 %v5384_v53, %s3453_s26  ;;  %v4673_v21 = vpop.permute.xlu1 %3179  ;;  %2775 = vmatpush.bf16.msra.mxu2 %v1659_v43 }
 0x155   : > { %2776 = vmatpush.bf16.msra.mxu3 %v1659_v43  ;;  %1667 = vmatpush.bf16.msra.mxu0 %v1659_v43  ;;  %v3181_v16 = vunpack.i.l.bf16 %v4673_v21 }
 0x156   : > { %v3175_v61 = vpop.permute.xlu0 %3174  ;;  %2774 = vmatpush.bf16.msra.mxu1 %v1659_v43 }
 0x157   : > { %v3177_v3 = vunpack.i.h.bf16 %v3175_v61  ;;  %v3176_v44 = vunpack.i.l.bf16 %v3175_v61 }
 0x158   : > { %2778 = vmatpush.bf16.msra.mxu2 %v2728_v52 }
 0x159   : > { %v4687_v37 = vsel %vm1443_vm6, %v4451_v20, %v3176_v44  ;;  %v4691_v12 = vsel %vm1443_vm6, %v4454_v13, %v3177_v3  ;;  %3409 = vrot.lane.b32.xlu2 %v3408_v5, %s3455_s28  ;;  %2779 = vmatpush.bf16.msra.mxu3 %v2728_v52 }
 0x15a   : > { %3404 = vrot.lane.b32.xlu1 %v5385_v36, %s3455_s28  ;;  %1668 = vmatpush.bf16.msra.mxu0 %v2728_v52 }
 0x15b   : > { %v3245_v33 = vpop.permute.xlu2 %3244  ;;  %2777 = vmatpush.bf16.msra.mxu1 %v2728_v52 }
 0x15c   : > { %3399 = vrot.lane.b32.xlu0 %v3398_v60, %s3454_s27  ;;  %v3195_v39 = vpop.permute.xlu1 %3194  ;;  %v5389_v60 = vld [vmem:[#allocation26_spill] sm:$0xff] }
 0x15d   : > { %v3197_v20 = vunpack.i.h.bf16 %v3195_v39  ;;  %v3196_v62 = vunpack.i.l.bf16 %v3195_v39  ;;  %v3162_v39 = vunpack.i.h.bf16 %v4656_v49 }
 0x15e   : > { %v3190_v13 = vpop.permute.xlu0 %3189 }
 0x15f   : > { %v4700_v30 = vsel %vm1443_vm6, %v4592_v14, %v3196_v62  ;;  %v4704_v22 = vsel %vm1443_vm6, %v4596_v11, %v3197_v20  ;;  %v3192_v27 = vunpack.i.h.bf16 %v3190_v13  ;;  %v3191_v2 = vunpack.i.l.bf16 %v3190_v13  ;;  %v5386_v14 = vld [vmem:[#allocation19_spill] sm:$0xff]  ;;  %v5387_v11 = vld [vmem:[#allocation4_spill] sm:$0xff] }
 0x160   : > { %v3232_v20 = vunpack.i.h.bf16 %v4675_v17  ;;  %v3231_v62 = vunpack.i.l.bf16 %v4675_v17  ;;  %v1468_v13 = vsel %vm1443_vm6, %v4564_v51, %v3181_v16 }
 0x161   : > { %v4711_v35 = vsel %vm1443_vm6, %v4475_v18, %v3191_v2  ;;  %v4715_v53 = vsel %vm1443_vm6, %v4478_v29, %v3192_v27  ;;  %3424 = vrot.lane.b32.xlu2 %v5386_v14, %s3454_s27  ;;  %v3247_v2 = vunpack.i.h.bf16 %v3245_v33  ;;  %v1460_v14 = vsel %vm1443_vm6, %v4427_v9, %v3161_v28 }
 0x162   : > { %3419 = vrot.lane.b32.xlu1 %v5387_v11, %s3454_s27  ;;  %v1461_v11 = vsel %vm1443_vm6, %v4430_v8, %v3162_v39 }
 0x163   : > { %v4733_v44 = vpop.permute.xlu2 %3259  ;;  %v1494_v51 = vsel %vm1476_vm7, %v1461_v11, %v3231_v62  ;;  %v3202_v62 = vunpack.i.h.bf16 %v4622_v1 }
 0x164   : > { %3414 = vrot.lane.b32.xlu0 %v5388_v31, %s3453_s26  ;;  %v3210_v0 = vpop.permute.xlu1 %3209 }
 0x165   : > { %v3212_v18 = vunpack.i.h.bf16 %v3210_v0  ;;  %v3211_v5 = vunpack.i.l.bf16 %v3210_v0 }
 0x166   : > { %v4723_v61 = vpop.permute.xlu0 %3204 }
 0x167   : > { %v4727_v29 = vsel %vm1476_vm7, %v4612_v41, %v3211_v5  ;;  %v4731_v3 = vsel %vm1476_vm7, %v4616_v6, %v3212_v18  ;;  %v3182_v6 = vunpack.i.h.bf16 %v4673_v21  ;;  %v3246_v21 = vunpack.i.l.bf16 %v3245_v33 }
 0x169   : > { %v1469_v27 = vsel %vm1443_vm6, %v4568_v15, %v3182_v6  ;;  %v1501_v15 = vsel %vm1476_vm7, %v1468_v13, %v3232_v20  ;;  %v3201_v13 = vunpack.i.l.bf16 %v4622_v1 }
 0x16a   : > { %3434 = vrot.lane.b32.xlu1 %v5389_v60, %s3455_s28  ;;  %v1534_v9 = vsel %vm1509_vm9, %v1501_v15, %v3246_v21 }
 0x16b   : > { %v4743_v50 = vpop.permute.xlu2 %3274  ;;  %v1477_v1 = vsel %vm1476_vm7, %v4584_v57, %v3201_v13  ;;  %v3187_v13 = vunpack.i.h.bf16 %v4602_v59 }
 0x16c   : > { %3429 = vrot.lane.b32.xlu0 %v5390_v24, %s3455_s28  ;;  %v4739_v4 = vpop.permute.xlu1 %3224 }
 0x16d   : > { %v3227_v52 = vunpack.i.h.bf16 %v4739_v4 }
 0x16e   : > { %v4741_v23 = vpop.permute.xlu0 %3219 }
 0x16f   : > { %v1493_v60 = vsel %vm1476_vm7, %v1460_v14, %v3227_v52  ;;  %v3261_v52 = vunpack.i.l.bf16 %v4733_v44  ;;  %v3221_v11 = vunpack.i.l.bf16 %v4741_v23 }
 0x173   : > { %v4766_v33 = vpop.permute.xlu2 %3289 }
 0x174   : > { %v3240_v41 = vpop.permute.xlu1 %3239 }
 0x175   : > { %v3242_v17 = vunpack.i.h.bf16 %v3240_v41  ;;  %v3241_v31 = vunpack.i.l.bf16 %v3240_v41 }
 0x176   : > { %v4747_v36 = vpop.permute.xlu0 %3234 }
 0x177   : > { %v3236_v43 = vunpack.i.l.bf16 %v4747_v36  ;;  %v1527_v39 = vsel %vm1509_vm9, %v1494_v51, %v3242_v17 }
 0x179   : > { %v1502_v49 = vsel %vm1476_vm7, %v1469_v27, %v3236_v43  ;;  %v1526_v43 = vsel %vm1509_vm9, %v1493_v60, %v3241_v31  ;;  %v1478_v31 = vsel %vm1476_vm7, %v4588_v46, %v3202_v62  ;;  %v1485_v46 = vsel %vm1476_vm7, %v4525_v34, %v3221_v11 }
 0x17a   : > { %v1535_v8 = vsel %vm1509_vm9, %v1502_v49, %v3247_v2  ;;  %v3262_v2 = vunpack.i.h.bf16 %v4733_v44  ;;  %v3222_v49 = vunpack.i.h.bf16 %v4741_v23  ;;  %v1510_v44 = vsel %vm1509_vm9, %v1477_v1, %v3261_v52 }
 0x17b   : > { %v3237_v62 = vunpack.i.h.bf16 %v4747_v36  ;;  %v3291_v52 = vunpack.i.l.bf16 %v4766_v33 }
 0x17c   : > { %v3255_v0 = vpop.permute.xlu1 %3254  ;;  %v1511_v15 = vsel %vm1509_vm9, %v1478_v31, %v3262_v2  ;;  %v3292_v2 = vunpack.i.h.bf16 %v4766_v33 }
 0x17d   : > { %v3257_v18 = vunpack.i.h.bf16 %v3255_v0  ;;  %v3256_v5 = vunpack.i.l.bf16 %v3255_v0 }
 0x17e   : > { %v3250_v24 = vpop.permute.xlu0 %3249 }
 0x17f   : > { %v3252_v16 = vunpack.i.h.bf16 %v3250_v24  ;;  %v3251_v41 = vunpack.i.l.bf16 %v3250_v24  ;;  %v1567_v6 = vsel %vm1542_vm10, %v1534_v9, %v3256_v5  ;;  %v1568_v28 = vsel %vm1542_vm10, %v1535_v8, %v3257_v18  ;;  %v3305_v9 = vpop.permute.xlu2 %3304 }
 0x180   : > { %v1587_v20 = vpack.c.bf16 %v1568_v28, %v1567_v6  ;;  %v3277_v18 = vunpack.i.h.bf16 %v4743_v50  ;;  %v3276_v5 = vunpack.i.l.bf16 %v4743_v50  ;;  %v3306_v33 = vunpack.i.l.bf16 %v3305_v9 }
 0x181   : > { %v1559_v27 = vsel %vm1542_vm10, %v1526_v43, %v3251_v41  ;;  %v1560_v21 = vsel %vm1542_vm10, %v1527_v39, %v3252_v16  ;;  %v1486_v16 = vsel %vm1476_vm7, %v4528_v47, %v3222_v49 }
 0x182   : > { %v1583_v14 = vpack.c.bf16 %v1560_v21, %v1559_v27  ;;  %2657 = vmatmul.msk.bf16.vlgmr.msra.gmra.mxu3 %vm1606_vm11, %v1587_v20  ;;  %v3186_v27 = vunpack.i.l.bf16 %v4602_v59  ;;  %v1471_v59 = vsel %vm1443_vm6, %v4560_v32, %v3187_v13 }
 0x184   : > { %2653 = vmatmul.msk.bf16.vlgmr.msra.gmra.mxu2 %vm1606_vm11, %v1583_v14  ;;  %v3270_v17 = vpop.permute.xlu1 %3269  ;;  %v1495_v14 = vsel %vm1476_vm7, %v4660_v55, %v3237_v62  ;;  %v1470_v1 = vsel %vm1443_vm6, %v4556_v54, %v3186_v27 }
 0x185   : > { %v3272_v0 = vunpack.i.h.bf16 %v3270_v17  ;;  %v3271_v51 = vunpack.i.l.bf16 %v3270_v17  ;;  %v1528_v55 = vsel %vm1509_vm9, %v1495_v14, %v3291_v52  ;;  %v3226_v14 = vunpack.i.l.bf16 %v4739_v4 }
 0x186   : > { %v3265_v23 = vpop.permute.xlu0 %3264 }
 0x187   : > { %v3267_v60 = vunpack.i.h.bf16 %v3265_v23  ;;  %v3266_v24 = vunpack.i.l.bf16 %v3265_v23  ;;  %v1543_v8 = vsel %vm1542_vm10, %v1510_v44, %v3271_v51  ;;  %v1544_v57 = vsel %vm1542_vm10, %v1511_v15, %v3272_v0  ;;  %v3320_v21 = vpop.permute.xlu2 %3319 }
 0x188   : > { %v1575_v41 = vpack.c.bf16 %v1544_v57, %v1543_v8  ;;  %v3307_v51 = vunpack.i.h.bf16 %v3305_v9 }
 0x189   : > { %v1518_v6 = vsel %vm1509_vm9, %v1485_v46, %v3266_v24  ;;  %v1519_v28 = vsel %vm1509_vm9, %v1486_v16, %v3267_v60 }
 0x18a   : > { %2645 = vmatmul.msk.bf16.vlgmr.msra.gmra.mxu0 %vm1606_vm11, %v1575_v41  ;;  %v1551_v50 = vsel %vm1542_vm10, %v1518_v6, %v3276_v5  ;;  %v1552_v43 = vsel %vm1542_vm10, %v1519_v28, %v3277_v18  ;;  %v3207_v41 = vunpack.i.h.bf16 %v4723_v61  ;;  %v3206_v6 = vunpack.i.l.bf16 %v4723_v61 }
 0x18b   : > { %v1579_v39 = vpack.c.bf16 %v1552_v43, %v1551_v50  ;;  %v3322_v50 = vunpack.i.h.bf16 %v3320_v21  ;;  %v3321_v43 = vunpack.i.l.bf16 %v3320_v21 }
 0x18c   : > { %v4804_v20 = vpop.permute.xlu1 %3284  ;;  %v1480_v13 = vsel %vm1476_vm7, %v4504_v45, %v3207_v41 }
 0x18d   : > { %2649 = vmatmul.msk.bf16.vlgmr.msra.gmra.mxu1 %vm1606_vm11, %v1579_v39  ;;  %v3286_v11 = vunpack.i.l.bf16 %v4804_v20  ;;  %v3287_v21 = vunpack.i.h.bf16 %v4804_v20 }
 0x18e   : > { %v3280_v34 = vpop.permute.xlu0 %3279 }
 0x18f   : > { %v3281_v47 = vunpack.i.l.bf16 %v3280_v34  ;;  %v3282_v17 = vunpack.i.h.bf16 %v3280_v34  ;;  %v1504_v54 = vsel %vm1476_vm7, %v1471_v59, %v3286_v11  ;;  %v3335_v46 = vpop.permute.xlu2 %3334  ;;  %v1488_v59 = vsel %vm1476_vm7, %v4641_v10, %v3287_v21 }
 0x190   : > { %v3336_v41 = vunpack.i.l.bf16 %v3335_v46 }
 0x191   : > { %v1496_v49 = vsel %vm1476_vm7, %v4664_v48, %v3281_v47  ;;  %v1503_v60 = vsel %vm1476_vm7, %v1470_v1, %v3282_v17  ;;  %v1479_v47 = vsel %vm1476_vm7, %v4501_v56, %v3206_v6  ;;  %v1487_v1 = vsel %vm1476_vm7, %v4637_v58, %v3226_v14 }
 0x192   : > { %v1529_v15 = vsel %vm1509_vm9, %v1496_v49, %v3292_v2 }
 0x194   : > { %v3300_v36 = vpop.permute.xlu1 %3299 }
 0x195   : > { %v3302_v31 = vunpack.i.h.bf16 %v3300_v36  ;;  %v3301_v0 = vunpack.i.l.bf16 %v3300_v36 }
 0x196   : > { %v3295_v44 = vpop.permute.xlu0 %3294 }
 0x197   : > { %v3297_v48 = vunpack.i.h.bf16 %v3295_v44  ;;  %v3296_v18 = vunpack.i.l.bf16 %v3295_v44  ;;  %v1561_v5 = vsel %vm1542_vm10, %v1528_v55, %v3301_v0  ;;  %v1562_v23 = vsel %vm1542_vm10, %v1529_v15, %v3302_v31  ;;  %v3350_v56 = vpop.permute.xlu2 %3349 }
 0x198   : > { %v1584_v32 = vpack.c.bf16 %v1562_v23, %v1561_v5  ;;  %v3352_v58 = vunpack.i.h.bf16 %v3350_v56 }
 0x199   : > { %v1536_v24 = vsel %vm1509_vm9, %v1503_v60, %v3296_v18  ;;  %v1537_v9 = vsel %vm1509_vm9, %v1504_v54, %v3297_v48  ;;  %v3351_v18 = vunpack.i.l.bf16 %v3350_v56 }
 0x19a   : > { %2654 = vmatmul.msk.bf16.gmra.mxu2 %vm1606_vm11, %v1584_v32  ;;  %v1569_v8 = vsel %vm1542_vm10, %v1536_v24, %v3306_v33  ;;  %v1570_v57 = vsel %vm1542_vm10, %v1537_v9, %v3307_v51 }
 0x19b   : > { %v1588_v16 = vpack.c.bf16 %v1570_v57, %v1569_v8 }
 0x19c   : > { %v3315_v28 = vpop.permute.xlu1 %3314 }
 0x19d   : > { %2658 = vmatmul.msk.bf16.gmra.mxu3 %vm1606_vm11, %v1588_v16  ;;  %v3317_v11 = vunpack.i.h.bf16 %v3315_v28  ;;  %v3316_v17 = vunpack.i.l.bf16 %v3315_v28  ;;  %v3337_v16 = vunpack.i.h.bf16 %v3335_v46 }
 0x19e   : > { %v3310_v39 = vpop.permute.xlu0 %3309 }
 0x19f   : > { %v3312_v34 = vunpack.i.h.bf16 %v3310_v39  ;;  %v3311_v62 = vunpack.i.l.bf16 %v3310_v39  ;;  %v1520_v4 = vsel %vm1509_vm9, %v1487_v1, %v3316_v17  ;;  %v1521_v20 = vsel %vm1509_vm9, %v1488_v59, %v3317_v11  ;;  %v3365_v10 = vpop.permute.xlu2 %3364 }
 0x1a0   : > { %v1506_v39 = vsel %vm1476_vm7, %v4715_v53, %v3337_v16 }
 0x1a1   : > { %v1512_v27 = vsel %vm1509_vm9, %v1479_v47, %v3311_v62  ;;  %v1513_v2 = vsel %vm1509_vm9, %v1480_v13, %v3312_v34 }
 0x1a2   : > { %v1545_v61 = vsel %vm1542_vm10, %v1512_v27, %v3321_v43  ;;  %v1546_v52 = vsel %vm1542_vm10, %v1513_v2, %v3322_v50 }
 0x1a3   : > { %v1576_v49 = vpack.c.bf16 %v1546_v52, %v1545_v61  ;;  %v3367_v61 = vunpack.i.h.bf16 %v3365_v10  ;;  %v3366_v52 = vunpack.i.l.bf16 %v3365_v10 }
 0x1a4   : > { %v3330_v36 = vpop.permute.xlu1 %3329 }
 0x1a5   : > { %2646 = vmatmul.msk.bf16.gmra.mxu0 %vm1606_vm11, %v1576_v49  ;;  %v3332_v55 = vunpack.i.h.bf16 %v3330_v36  ;;  %v3331_v15 = vunpack.i.l.bf16 %v3330_v36  ;;  %v1514_v17 = vsel %vm1509_vm9, %v4727_v29, %v3366_v52  ;;  %v1515_v36 = vsel %vm1509_vm9, %v4731_v3, %v3367_v61 }
 0x1a6   : > { %v3325_v45 = vpop.permute.xlu0 %3324 }
 0x1a7   : > { %v3327_v31 = vunpack.i.h.bf16 %v3325_v45  ;;  %v3326_v0 = vunpack.i.l.bf16 %v3325_v45  ;;  %v1497_v60 = vsel %vm1476_vm7, %v4577_v38, %v3331_v15  ;;  %v1498_v32 = vsel %vm1476_vm7, %v4580_v40, %v3332_v55  ;;  %v3380_v47 = vpop.permute.xlu2 %3379 }
 0x1a8   : > { %v1505_v40 = vsel %vm1476_vm7, %v4711_v35, %v3336_v41  ;;  %v3382_v45 = vunpack.i.h.bf16 %v3380_v47  ;;  %v3381_v1 = vunpack.i.l.bf16 %v3380_v47 }
 0x1a9   : > { %v1553_v51 = vsel %vm1542_vm10, %v1520_v4, %v3326_v0  ;;  %v1554_v33 = vsel %vm1542_vm10, %v1521_v20, %v3327_v31 }
 0x1aa   : > { %v1580_v44 = vpack.c.bf16 %v1554_v33, %v1553_v51 }
 0x1ac   : > { %2650 = vmatmul.msk.bf16.gmra.mxu1 %vm1606_vm11, %v1580_v44  ;;  %v3345_v48 = vpop.permute.xlu1 %3344 }
 0x1ad   : > { %v3347_v28 = vunpack.i.h.bf16 %v3345_v48  ;;  %v3346_v50 = vunpack.i.l.bf16 %v3345_v48 }
 0x1ae   : > { %v3340_v5 = vpop.permute.xlu0 %3339 }
 0x1af   : > { %v3342_v23 = vunpack.i.h.bf16 %v3340_v5  ;;  %v3341_v54 = vunpack.i.l.bf16 %v3340_v5  ;;  %v1538_v13 = vsel %vm1509_vm9, %v1505_v40, %v3346_v50  ;;  %v1539_v46 = vsel %vm1509_vm9, %v1506_v39, %v3347_v28  ;;  %v3395_v44 = vpop.permute.xlu2 %3394 }
 0x1b0   : > { %v3396_v10 = vunpack.i.l.bf16 %v3395_v44 }
 0x1b1   : > { %v1530_v24 = vsel %vm1509_vm9, %v1497_v60, %v3341_v54  ;;  %v1531_v9 = vsel %vm1509_vm9, %v1498_v32, %v3342_v23 }
 0x1b2   : > { %v1563_v8 = vsel %vm1542_vm10, %v1530_v24, %v3351_v18  ;;  %v1564_v57 = vsel %vm1542_vm10, %v1531_v9, %v3352_v58 }
 0x1b3   : > { %v1585_v6 = vpack.c.bf16 %v1564_v57, %v1563_v8 }
 0x1b4   : > { %v3360_v43 = vpop.permute.xlu1 %3359 }
 0x1b5   : > { %2655 = vmatmul.msk.bf16.gmra.mxu2 %vm1606_vm11, %v1585_v6  ;;  %v3362_v21 = vunpack.i.h.bf16 %v3360_v43  ;;  %v3361_v49 = vunpack.i.l.bf16 %v3360_v43 }
 0x1b6   : > { %v3355_v38 = vpop.permute.xlu0 %3354 }
 0x1b7   : > { %v3357_v34 = vunpack.i.h.bf16 %v3355_v38  ;;  %v3356_v62 = vunpack.i.l.bf16 %v3355_v38  ;;  %v1489_v20 = vsel %vm1476_vm7, %v4628_v25, %v3361_v49  ;;  %v1490_v51 = vsel %vm1476_vm7, %v4632_v7, %v3362_v21  ;;  %v3410_v60 = vpop.permute.xlu2 %3409 }
 0x1b8   : > { %v3397_v7 = vunpack.i.h.bf16 %v3395_v44  ;;  %v3412_v28 = vunpack.i.h.bf16 %v3410_v60  ;;  %v3411_v50 = vunpack.i.l.bf16 %v3410_v60 }
 0x1b9   : > { %v1571_v27 = vsel %vm1542_vm10, %v1538_v13, %v3356_v62  ;;  %v1572_v2 = vsel %vm1542_vm10, %v1539_v46, %v3357_v34 }
 0x1ba   : > { %v1589_v14 = vpack.c.bf16 %v1572_v2, %v1571_v27 }
 0x1bc   : > { %2659 = vmatmul.msk.bf16.gmra.mxu3 %vm1606_vm11, %v1589_v14  ;;  %v3375_v35 = vpop.permute.xlu1 %3374 }
 0x1bd   : > { %v3377_v53 = vunpack.i.h.bf16 %v3375_v35  ;;  %v3376_v11 = vunpack.i.l.bf16 %v3375_v35 }
 0x1be   : > { %v3370_v56 = vpop.permute.xlu0 %3369 }
 0x1bf   : > { %v3372_v59 = vunpack.i.h.bf16 %v3370_v56  ;;  %v3371_v31 = vunpack.i.l.bf16 %v3370_v56  ;;  %v1547_v0 = vsel %vm1542_vm10, %v1514_v17, %v3376_v11  ;;  %v1548_v4 = vsel %vm1542_vm10, %v1515_v36, %v3377_v53  ;;  %v3425_v14 = vpop.permute.xlu2 %3424 }
 0x1c0   : > { %v1577_v33 = vpack.c.bf16 %v1548_v4, %v1547_v0  ;;  %v3426_v21 = vunpack.i.l.bf16 %v3425_v14 }
 0x1c1   : > { %v1522_v29 = vsel %vm1509_vm9, %v1489_v20, %v3371_v31  ;;  %v1523_v3 = vsel %vm1509_vm9, %v1490_v51, %v3372_v59 }
 0x1c2   : > { %2647 = vmatmul.msk.bf16.gmra.mxu0 %vm1606_vm11, %v1577_v33  ;;  %v1555_v55 = vsel %vm1542_vm10, %v1522_v29, %v3381_v1  ;;  %v1556_v15 = vsel %vm1542_vm10, %v1523_v3, %v3382_v45 }
 0x1c3   : > { %v1581_v48 = vpack.c.bf16 %v1556_v15, %v1555_v55 }
 0x1c4   : > { %v3390_v58 = vpop.permute.xlu1 %3389 }
 0x1c5   : > { %2651 = vmatmul.msk.bf16.gmra.mxu1 %vm1606_vm11, %v1581_v48  ;;  %v3392_v32 = vunpack.i.h.bf16 %v3390_v58  ;;  %v3391_v24 = vunpack.i.l.bf16 %v3390_v58 }
 0x1c6   : > { %v3385_v25 = vpop.permute.xlu0 %3384 }
 0x1c7   : > { %v3387_v18 = vunpack.i.h.bf16 %v3385_v25  ;;  %v3386_v5 = vunpack.i.l.bf16 %v3385_v25  ;;  %v1508_v39 = vsel %vm1476_vm7, %v4704_v22, %v3392_v32  ;;  %v3427_v22 = vunpack.i.h.bf16 %v3425_v14 }
 0x1c9   : > { %v1499_v23 = vsel %vm1476_vm7, %v4687_v37, %v3386_v5  ;;  %v1500_v54 = vsel %vm1476_vm7, %v4691_v12, %v3387_v18  ;;  %v1507_v12 = vsel %vm1476_vm7, %v4700_v30, %v3391_v24  ;;  %v4932_v18 = vld [vmem:[%s5190_s3] ss:$0 sm:$0xff] }
 0x1ca   : > { %v1532_v16 = vsel %vm1509_vm9, %v1499_v23, %v3396_v10  ;;  %v1533_v41 = vsel %vm1509_vm9, %v1500_v54, %v3397_v7 }
 0x1cc   : > { %v3405_v9 = vpop.permute.xlu1 %3404 }
 0x1cd   : > { %v3407_v8 = vunpack.i.h.bf16 %v3405_v9  ;;  %v3406_v57 = vunpack.i.l.bf16 %v3405_v9 }
 0x1ce   : > { %v3400_v6 = vpop.permute.xlu0 %3399 }
 0x1cf   : > { %v3402_v43 = vunpack.i.h.bf16 %v3400_v6  ;;  %v3401_v38 = vunpack.i.l.bf16 %v3400_v6  ;;  %v1565_v37 = vsel %vm1542_vm10, %v1532_v16, %v3406_v57  ;;  %v1566_v40 = vsel %vm1542_vm10, %v1533_v41, %v3407_v8 }
 0x1d0   : > { %v1586_v34 = vpack.c.bf16 %v1566_v40, %v1565_v37 }
 0x1d1   : > { %v1540_v62 = vsel %vm1509_vm9, %v1507_v12, %v3401_v38  ;;  %v1541_v47 = vsel %vm1509_vm9, %v1508_v39, %v3402_v43 }
 0x1d2   : > { %2656 = vmatmul.msk.bf16.gmra.mxu2 %vm1606_vm11, %v1586_v34  ;;  %v1573_v13 = vsel %vm1542_vm10, %v1540_v62, %v3411_v50  ;;  %v1574_v46 = vsel %vm1542_vm10, %v1541_v47, %v3412_v28 }
 0x1d3   : > { %v1590_v27 = vpack.c.bf16 %v1574_v46, %v1573_v13 }
 0x1d4   : > { %v3420_v2 = vpop.permute.xlu1 %3419 }
 0x1d5   : > { %2660 = vmatmul.msk.bf16.gmra.mxu3 %vm1606_vm11, %v1590_v27  ;;  %v3422_v53 = vunpack.i.h.bf16 %v3420_v2  ;;  %v3421_v11 = vunpack.i.l.bf16 %v3420_v2 }
 0x1d6   : > { %v3415_v61 = vpop.permute.xlu0 %3414 }
 0x1d7   : > { %v3417_v30 = vunpack.i.h.bf16 %v3415_v61  ;;  %v3416_v52 = vunpack.i.l.bf16 %v3415_v61 }
 0x1d9   : > { %v1491_v49 = vsel %vm1476_vm7, %v4549_v63, %v3416_v52  ;;  %v1492_v35 = vsel %vm1476_vm7, %v4552_v19, %v3417_v30  ;;  %v1516_v63 = vsel %vm1509_vm9, %v4651_v42, %v3421_v11  ;;  %v1517_v19 = vsel %vm1509_vm9, %v4654_v26, %v3422_v53  ;;  %v4926_v42 = vld [vmem:[%s5189_s2] ss:$0 sm:$0xff] }
 0x1da   : > { %v1524_v45 = vsel %vm1509_vm9, %v1491_v49, %v3426_v21  ;;  %v1525_v1 = vsel %vm1509_vm9, %v1492_v35, %v3427_v22 }
 0x1dc   : > { %v3435_v17 = vpop.permute.xlu1 %3434 }
 0x1dd   : > { %v3437_v36 = vunpack.i.h.bf16 %v3435_v17  ;;  %v3436_v56 = vunpack.i.l.bf16 %v3435_v17 }
 0x1de   : > { %v3430_v59 = vpop.permute.xlu0 %3429 }
 0x1df   : > { %v3432_v31 = vunpack.i.h.bf16 %v3430_v59  ;;  %v3431_v0 = vunpack.i.l.bf16 %v3430_v59  ;;  %v1557_v4 = vsel %vm1542_vm10, %v1524_v45, %v3436_v56  ;;  %v1558_v20 = vsel %vm1542_vm10, %v1525_v1, %v3437_v36 }
 0x1e0   : > { %v1582_v51 = vpack.c.bf16 %v1558_v20, %v1557_v4 }
 0x1e1   : > { %v1549_v33 = vsel %vm1542_vm10, %v1516_v63, %v3431_v0  ;;  %v1550_v29 = vsel %vm1542_vm10, %v1517_v19, %v3432_v31 }
 0x1e2   : > { %v1578_v3 = vpack.c.bf16 %v1550_v29, %v1549_v33  ;;  %2652 = vmatmul.msk.bf16.gmra.mxu1 %vm1606_vm11, %v1582_v51 }
 0x1e4   : > { %2648 = vmatmul.msk.bf16.gmra.mxu0 %vm1606_vm11, %v1578_v3 }
 0x205   : > { %v1730_v55 = vpop.f32.mrf.mxu3 }
 0x206   : > { %v1778_v7 = vmul.f32 %v4926_v42, %v1730_v55 }
 0x207   : > { %v1710_v44 = vpop.f32.mrf.mxu2  ;;  %v1670_v15 = vpop.f32.mrf.mxu0 }
 0x208   : > { %v1770_v25 = vmul.f32 %v4926_v42, %v1710_v44  ;;  %v1754_v10 = vmul.f32 %v4926_v42, %v1670_v15  ;;  %v1814_v57 = vadd.f32 %v4932_v18, %v1778_v7 }
 0x20a   : > { %v1690_v26 = vpop.f32.mrf.mxu1  ;;  %v1806_v32 = vadd.f32 %v4932_v18, %v1770_v25  ;;  %v1790_v16 = vadd.f32 %v4932_v18, %v1754_v10  ;;  %v1846_v46 = vmax.f32 %v1814_v57, 0.0 }
 0x20b   : > { %v1762_v23 = vmul.f32 %v4926_v42, %v1690_v26 }
 0x20c   : > { %v1838_v37 = vmax.f32 %v1806_v32, 0.0  ;;  %v1822_v27 = vmax.f32 %v1790_v16, 0.0 }
 0x20d   : > { %v1732_v58 = vpop.f32.mrf.mxu3  ;;  %v4946_v50 = vadd.f32 %v4932_v18, %v1762_v23 }
 0x20e   : > { %v1779_v54 = vmul.f32 %v4926_v42, %v1732_v58 }
 0x20f   : > { %v1712_v48 = vpop.f32.mrf.mxu2  ;;  %v1672_v5 = vpop.f32.mrf.mxu0  ;;  %v1830_v61 = vmax.f32 %v4946_v50, 0.0 }
 0x210   : > { %v1771_v24 = vmul.f32 %v4926_v42, %v1712_v48  ;;  %v1755_v8 = vmul.f32 %v4926_v42, %v1672_v5  ;;  %v4949_v43 = vadd.f32 %v4932_v18, %v1779_v54 }
 0x212   : > { %v1692_v41 = vpop.f32.mrf.mxu1  ;;  %v4953_v40 = vadd.f32 %v4932_v18, %v1771_v24  ;;  %v4956_v34 = vadd.f32 %v4932_v18, %v1755_v8  ;;  %v1847_v30 = vmax.f32 %v4949_v43, 0.0 }
 0x213   : > { %v1763_v62 = vmul.f32 %v4926_v42, %v1692_v41 }
 0x214   : > { %v1839_v53 = vmax.f32 %v4953_v40, 0.0  ;;  %v1823_v11 = vmax.f32 %v4956_v34, 0.0 }
 0x215   : > { %v4967_v17 = vadd.f32 %v4932_v18, %v1763_v62 }
 0x217   : > { %v1831_v5 = vmax.f32 %v4967_v17, 0.0 }
 0x21d   : > { %v1715_v60 = vpop.f32.mrf.mxu2 }
 0x21e   : > { %v1772_v9 = vmul.f32 %v4926_v42, %v1715_v60 }
 0x220   : > { %v1808_v6 = vadd.f32 %v4932_v18, %v1772_v9  ;;  %v1735_v28 = vpop.f32.mrf.mxu3 }
 0x221   : > { %v1780_v38 = vmul.f32 %v4926_v42, %v1735_v28 }
 0x222   : > { %v1840_v12 = vmax.f32 %v1808_v6, 0.0  ;;  %v1675_v39 = vpop.f32.mrf.mxu0 }
 0x223   : > { %v1816_v47 = vadd.f32 %v4932_v18, %v1780_v38  ;;  %v1756_v13 = vmul.f32 %v4926_v42, %v1675_v39 }
 0x224   : > { %v1862_v2 = vmax.f32 %v1838_v37, %v1840_v12 }
 0x225   : > { %v1848_v52 = vmax.f32 %v1816_v47, 0.0  ;;  %v1792_v14 = vadd.f32 %v4932_v18, %v1756_v13  ;;  %v1717_v15 = vpop.f32.mrf.mxu2 }
 0x226   : > { %v1910_v22 = vrot.slane %v1862_v2, 2  ;;  %v1911_v21 = vrot.slane %v1862_v2, 4  ;;  %v1912_v49 = vrot.slane %v1862_v2, 6  ;;  %v2693_v35 = vrot.slane %v1862_v2, 9 }
 0x227   : > { %v1866_v36 = vmax.f32 %v1846_v46, %v1848_v52  ;;  %v1824_v33 = vmax.f32 %v1792_v14, 0.0  ;;  %v1773_v24 = vmul.f32 %v4926_v42, %v1717_v15 }
 0x228   : > { %v2694_v56 = vrot.slane %v1910_v22, 9  ;;  %v2695_v45 = vrot.slane %v1911_v21, 9  ;;  %v2696_v1 = vrot.slane %v1912_v49, 9  ;;  %v2206_v59 = vmax.f32 %v1862_v2, %v2693_v35 }
 0x229   : > { %v1922_v31 = vrot.slane %v1866_v36, 2  ;;  %v1923_v0 = vrot.slane %v1866_v36, 4  ;;  %v1924_v4 = vrot.slane %v1866_v36, 6  ;;  %v2709_v20 = vrot.slane %v1866_v36, 9  ;;  %v1695_v41 = vpop.f32.mrf.mxu1 }
 0x22a   : > { %v2207_v63 = vmax.f32 %v1910_v22, %v2694_v56  ;;  %v2208_v19 = vmax.f32 %v1911_v21, %v2695_v45  ;;  %v2209_v51 = vmax.f32 %v1912_v49, %v2696_v1  ;;  %v2270_v48 = vpack.c.bf16 %v2206_v59, %v2206_v59  ;;  %v1737_v45 = vpop.f32.mrf.mxu3 }
 0x22b   : > { %v2710_v29 = vrot.slane %v1922_v31, 9  ;;  %v2711_v3 = vrot.slane %v1923_v0, 9  ;;  %v2712_v44 = vrot.slane %v1924_v4, 9  ;;  %v2222_v55 = vmax.f32 %v1866_v36, %v2709_v20 }
 0x22c   : > { %v2271_v26 = vpack.c.bf16 %v2207_v63, %v2207_v63  ;;  %v2272_v58 = vpack.c.bf16 %v2208_v19, %v2208_v19  ;;  %v2273_v25 = vpack.c.bf16 %v2209_v51, %v2209_v51  ;;  %v1854_v32 = vmax.f32 %v1822_v27, %v1824_v33 }
 0x22d   : > { %v2223_v7 = vmax.f32 %v1922_v31, %v2710_v29  ;;  %v2224_v10 = vmax.f32 %v1923_v0, %v2711_v3  ;;  %v2225_v23 = vmax.f32 %v1924_v4, %v2712_v44  ;;  %v2286_v9 = vpack.c.bf16 %v2222_v55, %v2222_v55 }
 0x22e   : > { %v2399_v54 = vunpack.c.l.b16 %v2271_v26  ;;  %v2400_v60 = vunpack.c.l.b16 %v2272_v58  ;;  %v2398_v6 = vunpack.c.l.b16 %v2270_v48  ;;  %v2401_v28 = vunpack.c.l.b16 %v2273_v25 }
 0x22f   : > { %v2287_v8 = vpack.c.bf16 %v2223_v7, %v2223_v7  ;;  %v2288_v57 = vpack.c.bf16 %v2224_v10, %v2224_v10  ;;  %v2289_v16 = vpack.c.bf16 %v2225_v23, %v2225_v23  ;;  %v1886_v37 = vrot.slane %v1854_v32, 2  ;;  %v1677_v10 = vpop.f32.mrf.mxu0 }
 0x230   : > { %v2493_v38 = vrot.slane %v2399_v54, 7  ;;  %v2495_v12 = vrot.slane %v2400_v60, 6  ;;  %v1887_v47 = vrot.slane %v1854_v32, 4  ;;  %v1888_v46 = vrot.slane %v1854_v32, 6 }
 0x231   : > { %v2415_v39 = vunpack.c.l.b16 %v2287_v8  ;;  %v2416_v62 = vunpack.c.l.b16 %v2288_v57  ;;  %v2661_v2 = vrot.slane %v1854_v32, 9  ;;  %v2662_v27 = vrot.slane %v1886_v37, 9  ;;  %v1697_v23 = vpop.f32.mrf.mxu1 }
 0x232   : > { %v2494_v13 = vsel %vm2431_vm12, %v2493_v38, %v2398_v6  ;;  %v2414_v52 = vunpack.c.l.b16 %v2286_v9  ;;  %v2417_v14 = vunpack.c.l.b16 %v2289_v16  ;;  %v2497_v49 = vrot.slane %v2401_v28, 5 }
 0x233   : > { %v2521_v22 = vrot.slane %v2415_v39, 7  ;;  %v2523_v21 = vrot.slane %v2416_v62, 6  ;;  %v2663_v35 = vrot.slane %v1887_v47, 9  ;;  %v2664_v36 = vrot.slane %v1888_v46, 9 }
 0x234   : > { %v2174_v56 = vmax.f32 %v1854_v32, %v2661_v2  ;;  %v2496_v1 = vsel %vm2434_vm13, %v2495_v12, %v2494_v13  ;;  %v2175_v31 = vmax.f32 %v1886_v37, %v2662_v27  ;;  %v1809_v0 = vadd.f32 %v4932_v18, %v1773_v24 }
 0x235   : > { %v2522_v59 = vsel %vm2431_vm12, %v2521_v22, %v2414_v52  ;;  %v2176_v20 = vmax.f32 %v1887_v47, %v2663_v35  ;;  %v2177_v63 = vmax.f32 %v1888_v46, %v2664_v36  ;;  %v2525_v51 = vrot.slane %v2417_v14, 5 }
 0x236   : > { %v2524_v4 = vsel %vm2434_vm13, %v2523_v21, %v2522_v59  ;;  %v2238_v19 = vpack.c.bf16 %v2174_v56, %v2174_v56  ;;  %v2239_v33 = vpack.c.bf16 %v2175_v31, %v2175_v31  ;;  %v1841_v29 = vmax.f32 %v1809_v0, 0.0 }
 0x237   : > { %v1781_v3 = vmul.f32 %v4926_v42, %v1737_v45  ;;  %v4978_v44 = vsel %vm2437_vm14, %v2497_v49, %v2496_v1  ;;  %v2240_v55 = vpack.c.bf16 %v2176_v20, %v2176_v20  ;;  %v2241_v15 = vpack.c.bf16 %v2177_v63, %v2177_v63 }
 0x238   : > { %v1764_v48 = vmul.f32 %v4926_v42, %v1695_v41  ;;  %v4982_v26 = vsel %vm2437_vm14, %v2525_v51, %v2524_v4  ;;  %v2367_v58 = vunpack.c.l.b16 %v2239_v33  ;;  %v1863_v25 = vmax.f32 %v1839_v53, %v1841_v29 }
 0x239   : > { %v1817_v7 = vadd.f32 %v4932_v18, %v1781_v3  ;;  %v2366_v54 = vunpack.c.l.b16 %v2238_v19  ;;  %v4987_v60 = vunpack.c.l.b16 %v2240_v55  ;;  %v4989_v32 = vunpack.c.l.b16 %v2241_v15 }
 0x23a   : > { %v1800_v24 = vadd.f32 %v4932_v18, %v1764_v48  ;;  %v2430_v9 = vrot.slane %v2367_v58, 7  ;;  %v1913_v8 = vrot.slane %v1863_v25, 2  ;;  %v1914_v57 = vrot.slane %v1863_v25, 4 }
 0x23b   : > { %v1915_v16 = vrot.slane %v1863_v25, 6  ;;  %v2697_v41 = vrot.slane %v1863_v25, 9  ;;  %v1849_v40 = vmax.f32 %v1817_v7, 0.0  ;;  %v1757_v53 = vmul.f32 %v4926_v42, %v1677_v10 }
 0x23c   : > { %v4994_v6 = vmul.f32 %v4926_v42, %v1697_v23  ;;  %v2433_v28 = vrot.slane %v4987_v60, 6  ;;  %v2698_v38 = vrot.slane %v1913_v8, 9  ;;  %v2699_v37 = vrot.slane %v1914_v57, 9 }
 0x23d   : > { %v2700_v12 = vrot.slane %v1915_v16, 9  ;;  %v4998_v39 = vsel %vm2431_vm12, %v2430_v9, %v2366_v54  ;;  %v2436_v62 = vrot.slane %v4989_v32, 5  ;;  %v2210_v47 = vmax.f32 %v1863_v25, %v2697_v41  ;;  %v5011_v41 = vpop.f32.mrf.mxu2 }
 0x23e   : > { %v1867_v13 = vmax.f32 %v1847_v30, %v1849_v40  ;;  %v2211_v46 = vmax.f32 %v1913_v8, %v2698_v38  ;;  %v2212_v2 = vmax.f32 %v1914_v57, %v2699_v37  ;;  %v1832_v52 = vmax.f32 %v1800_v24, 0.0 }
 0x23f   : > { %v2213_v27 = vmax.f32 %v1915_v16, %v2700_v12  ;;  %v2274_v14 = vpack.c.bf16 %v2210_v47, %v2210_v47  ;;  %v1793_v24 = vadd.f32 %v4932_v18, %v1757_v53  ;;  %v5019_v38 = vpop.f32.mrf.mxu3 }
 0x240   : > { %v1925_v22 = vrot.slane %v1867_v13, 2  ;;  %v1926_v21 = vrot.slane %v1867_v13, 4  ;;  %v1927_v49 = vrot.slane %v1867_v13, 6  ;;  %v2275_v35 = vpack.c.bf16 %v2211_v46, %v2211_v46 }
 0x241   : > { %v2276_v36 = vpack.c.bf16 %v2212_v2, %v2212_v2  ;;  %v2277_v56 = vpack.c.bf16 %v2213_v27, %v2213_v27  ;;  %v2713_v45 = vrot.slane %v1867_v13, 9  ;;  %v2402_v1 = vunpack.c.l.b16 %v2274_v14 }
 0x242   : > { %v2714_v59 = vrot.slane %v1925_v22, 9  ;;  %v2715_v31 = vrot.slane %v1926_v21, 9  ;;  %v2716_v0 = vrot.slane %v1927_v49, 9  ;;  %v2403_v43 = vunpack.c.l.b16 %v2275_v35 }
 0x243   : > { %v2404_v30 = vunpack.c.l.b16 %v2276_v36  ;;  %v2405_v4 = vunpack.c.l.b16 %v2277_v56  ;;  %v2226_v20 = vmax.f32 %v1867_v13, %v2713_v45  ;;  %v2499_v63 = vrot.slane %v2402_v1, 4 }
 0x244   : > { %v2227_v19 = vmax.f32 %v1925_v22, %v2714_v59  ;;  %v2228_v51 = vmax.f32 %v1926_v21, %v2715_v31  ;;  %v2229_v33 = vmax.f32 %v1927_v49, %v2716_v0  ;;  %v2501_v29 = vrot.slane %v2403_v43, 3 }
 0x245   : > { %v2503_v3 = vrot.slane %v2404_v30, 2  ;;  %v2505_v55 = vrot.slane %v2405_v4, 1  ;;  %v2290_v15 = vpack.c.bf16 %v2226_v20, %v2226_v20  ;;  %v2500_v48 = vsel %vm2440_vm15, %v2499_v63, %v4978_v44 }
 0x246   : > { %v2291_v58 = vpack.c.bf16 %v2227_v19, %v2227_v19  ;;  %v2292_v25 = vpack.c.bf16 %v2228_v51, %v2228_v51  ;;  %v2293_v7 = vpack.c.bf16 %v2229_v33, %v2229_v33  ;;  %v2502_v10 = vsel %vm2443_vm0, %v2501_v29, %v2500_v48  ;;  %v5040_v48 = vpop.f32.mrf.mxu0 }
 0x247   : > { %v2418_v23 = vunpack.c.l.b16 %v2290_v15  ;;  %v1858_v54 = vmax.f32 %v1830_v61, %v1832_v52  ;;  %v2504_v9 = vsel %vm2446_vm1, %v2503_v3, %v2502_v10  ;;  %v1825_v22 = vmax.f32 %v1793_v24, 0.0  ;;  %v5038_v15 = vpop.f32.mrf.mxu2 }
 0x248   : > { %v2419_v8 = vunpack.c.l.b16 %v2291_v58  ;;  %v2420_v57 = vunpack.c.l.b16 %v2292_v25  ;;  %v2421_v16 = vunpack.c.l.b16 %v2293_v7  ;;  %v2506_v44 = vsel %vm2449_vm2, %v2505_v55, %v2504_v9 }
 0x249   : > { %v2527_v40 = vrot.slane %v2418_v23, 4  ;;  %v1898_v50 = vrot.slane %v1858_v54, 2  ;;  %v1899_v61 = vrot.slane %v1858_v54, 4  ;;  %v2553_v53 = vpack.c.b16 %v2506_v44, %v2506_v44 }
 0x24a   : > { %v2529_v37 = vrot.slane %v2419_v8, 3  ;;  %v2531_v12 = vrot.slane %v2420_v57, 2  ;;  %v2533_v47 = vrot.slane %v2421_v16, 1  ;;  %v1900_v46 = vrot.slane %v1858_v54, 6 }
 0x24b   : > { %v2528_v13 = vsel %vm2440_vm15, %v2527_v40, %v4982_v26  ;;  %v2677_v2 = vrot.slane %v1858_v54, 9  ;;  %v2678_v27 = vrot.slane %v1898_v50, 9  ;;  %2570 = vst.msk [vmem:[%s5016_s17 + $0x10] sm:$0xf] %vm2565_vm3, %v2553_v53  ;;  %v2679_v14 = vrot.slane %v1899_v61, 9 }
 0x24c   : > { %v2530_v52 = vsel %vm2443_vm0, %v2529_v37, %v2528_v13  ;;  %v1801_v21 = vadd.f32 %v4932_v18, %v4994_v6  ;;  %v2680_v35 = vrot.slane %v1900_v46, 9  ;;  %v1855_v1 = vmax.f32 %v1823_v11, %v1825_v22 }
 0x24d   : > { %v2532_v49 = vsel %vm2446_vm1, %v2531_v12, %v2530_v52  ;;  %v2190_v36 = vmax.f32 %v1858_v54, %v2677_v2  ;;  %v2191_v56 = vmax.f32 %v1898_v50, %v2678_v27  ;;  %v2192_v45 = vmax.f32 %v1899_v61, %v2679_v14 }
 0x24e   : > { %v2534_v26 = vsel %vm2449_vm2, %v2533_v47, %v2532_v49  ;;  %v1833_v59 = vmax.f32 %v1801_v21, 0.0  ;;  %v2193_v0 = vmax.f32 %v1900_v46, %v2680_v35  ;;  %v1889_v20 = vrot.slane %v1855_v1, 2 }
 0x24f   : > { %v2555_v31 = vpack.c.b16 %v2534_v26, %v2534_v26  ;;  %v2254_v43 = vpack.c.bf16 %v2190_v36, %v2190_v36  ;;  %v2255_v30 = vpack.c.bf16 %v2191_v56, %v2191_v56  ;;  %v2256_v4 = vpack.c.bf16 %v2192_v45, %v2192_v45 }
 0x250   : > { %v1890_v6 = vrot.slane %v1855_v1, 4  ;;  %v1891_v63 = vrot.slane %v1855_v1, 6  ;;  %v2435_v19 = vsel %vm2434_vm13, %v2433_v28, %v4998_v39  ;;  %v2257_v51 = vpack.c.bf16 %v2193_v0, %v2193_v0  ;;  %v5044_v28 = vpop.f32.mrf.mxu1  ;;  %v5046_v39 = vpop.f32.mrf.mxu3 }
 0x251   : > { %2572 = vst.msk [vmem:[%s5016_s17 + $0x18] sm:$0xf] %vm2565_vm3, %v2555_v31  ;;  %v2383_v33 = vunpack.c.l.b16 %v2255_v30  ;;  %v2665_v34 = vrot.slane %v1855_v1, 9  ;;  %v2384_v11 = vunpack.c.l.b16 %v2256_v4  ;;  %v2666_v29 = vrot.slane %v1889_v20, 9 }
 0x252   : > { %v2667_v3 = vrot.slane %v1890_v6, 9  ;;  %v2668_v55 = vrot.slane %v1891_v63, 9  ;;  %v2382_v58 = vunpack.c.l.b16 %v2254_v43  ;;  %v1859_v60 = vmax.f32 %v1831_v5, %v1833_v59  ;;  %v1682_v43 = vpop.f32.mrf.mxu0 }
 0x253   : > { %v2465_v25 = vrot.slane %v2383_v33, 7  ;;  %v2178_v7 = vmax.f32 %v1855_v1, %v2665_v34  ;;  %v2467_v10 = vrot.slane %v2384_v11, 6  ;;  %v2179_v23 = vmax.f32 %v1889_v20, %v2666_v29 }
 0x254   : > { %v2180_v54 = vmax.f32 %v1890_v6, %v2667_v3  ;;  %v2181_v24 = vmax.f32 %v1891_v63, %v2668_v55  ;;  %v2438_v9 = vsel %vm2437_vm14, %v2436_v62, %v2435_v19  ;;  %v1901_v16 = vrot.slane %v1859_v60, 2 }
 0x255   : > { %v2466_v8 = vsel %vm2431_vm12, %v2465_v25, %v2382_v58  ;;  %v2242_v57 = vpack.c.bf16 %v2178_v7, %v2178_v7  ;;  %v2385_v44 = vunpack.c.l.b16 %v2257_v51  ;;  %v2243_v40 = vpack.c.bf16 %v2179_v23, %v2179_v23  ;;  %v1725_v49 = vpop.f32.mrf.mxu2 }
 0x256   : > { %v2244_v17 = vpack.c.bf16 %v2180_v54, %v2180_v54  ;;  %v2245_v5 = vpack.c.bf16 %v2181_v24, %v2181_v24  ;;  %v2468_v50 = vsel %vm2434_vm13, %v2467_v10, %v2466_v8  ;;  %v1902_v53 = vrot.slane %v1859_v60, 4 }
 0x257   : > { %v2370_v61 = vunpack.c.l.b16 %v2242_v57  ;;  %v1903_v37 = vrot.slane %v1859_v60, 6  ;;  %v2371_v12 = vunpack.c.l.b16 %v2243_v40  ;;  %v2681_v46 = vrot.slane %v1859_v60, 9 }
 0x258   : > { %v2372_v47 = vunpack.c.l.b16 %v2244_v17  ;;  %v2373_v13 = vunpack.c.l.b16 %v2245_v5  ;;  %v2682_v2 = vrot.slane %v1901_v16, 9  ;;  %v2683_v62 = vrot.slane %v1902_v53, 9  ;;  %v1745_v45 = vpop.f32.mrf.mxu3  ;;  %v1702_v63 = vpop.f32.mrf.mxu1 }
 0x259   : > { %v2439_v32 = vrot.slane %v2370_v61, 4  ;;  %v2684_v27 = vrot.slane %v1903_v37, 9  ;;  %v2442_v52 = vrot.slane %v2371_v12, 3  ;;  %v2194_v21 = vmax.f32 %v1859_v60, %v2681_v46 }
 0x25a   : > { %v2445_v14 = vrot.slane %v2372_v47, 2  ;;  %v2448_v22 = vrot.slane %v2373_v13, 1  ;;  %v2195_v36 = vmax.f32 %v1901_v16, %v2682_v2  ;;  %v2196_v56 = vmax.f32 %v1902_v53, %v2683_v62 }
 0x25b   : > { %v2441_v35 = vsel %vm2440_vm15, %v2439_v32, %v2438_v9  ;;  %v2197_v26 = vmax.f32 %v1903_v37, %v2684_v27  ;;  %v2258_v59 = vpack.c.bf16 %v2194_v21, %v2194_v21  ;;  %v1774_v31 = vmul.f32 %v4926_v42, %v5011_v41 }
 0x25c   : > { %v2444_v1 = vsel %vm2443_vm0, %v2442_v52, %v2441_v35  ;;  %v1782_v0 = vmul.f32 %v4926_v42, %v5019_v38  ;;  %v2259_v4 = vpack.c.bf16 %v2195_v36, %v2195_v36  ;;  %v2260_v20 = vpack.c.bf16 %v2196_v56, %v2196_v56 }
 0x25d   : > { %v2447_v30 = vsel %vm2446_vm1, %v2445_v14, %v2444_v1  ;;  %v2261_v6 = vpack.c.bf16 %v2197_v26, %v2197_v26  ;;  %v2469_v19 = vrot.slane %v2385_v44, 5  ;;  %v2386_v33 = vunpack.c.l.b16 %v2258_v59  ;;  %v1727_v16 = vpop.f32.mrf.mxu2 }
 0x25e   : > { %v2450_v51 = vsel %vm2449_vm2, %v2448_v22, %v2447_v30  ;;  %v2387_v11 = vunpack.c.l.b16 %v2259_v4  ;;  %v2388_v29 = vunpack.c.l.b16 %v2260_v20  ;;  %v1810_v38 = vadd.f32 %v4932_v18, %v1774_v31 }
 0x25f   : > { %v2549_v34 = vpack.c.b16 %v2450_v51, %v2450_v51  ;;  %v2389_v3 = vunpack.c.l.b16 %v2261_v6  ;;  %v2470_v41 = vsel %vm2437_vm14, %v2469_v19, %v2468_v50  ;;  %v2471_v55 = vrot.slane %v2386_v33, 4 }
 0x260   : > { %v2473_v58 = vrot.slane %v2387_v11, 3  ;;  %v2475_v25 = vrot.slane %v2388_v29, 2  ;;  %v1818_v7 = vadd.f32 %v4932_v18, %v1782_v0  ;;  %v1775_v60 = vmul.f32 %v4926_v42, %v5038_v15  ;;  %v1747_v5 = vpop.f32.mrf.mxu3  ;;  %v1705_v50 = vpop.f32.mrf.mxu1 }
 0x261   : > { %2566 = vst.msk [vmem:[%s5016_s17] sm:$0xf] %vm2565_vm3, %v2549_v34  ;;  %v2472_v10 = vsel %vm2440_vm15, %v2471_v55, %v2470_v41  ;;  %v1758_v23 = vmul.f32 %v4926_v42, %v5040_v48  ;;  %v2477_v24 = vrot.slane %v2389_v3, 1  ;;  %v1766_v9 = vmul.f32 %v4926_v42, %v5044_v28  ;;  %v1685_v44 = vpop.f32.mrf.mxu0 }
 0x262   : > { %v2474_v54 = vsel %vm2443_vm0, %v2473_v58, %v2472_v10  ;;  %v1783_v8 = vmul.f32 %v4926_v42, %v5046_v39  ;;  %v1842_v40 = vmax.f32 %v1810_v38, 0.0  ;;  %v1850_v17 = vmax.f32 %v1818_v7, 0.0 }
 0x263   : > { %v2476_v57 = vsel %vm2446_vm1, %v2475_v25, %v2474_v54  ;;  %v1811_v48 = vadd.f32 %v4932_v18, %v1775_v60  ;;  %v5080_v53 = vadd.f32 %v4932_v18, %v1758_v23  ;;  %v5083_v28 = vmul.f32 %v4926_v42, %v1682_v43 }
 0x264   : > { %v2478_v15 = vsel %vm2449_vm2, %v2477_v24, %v2476_v57  ;;  %v1776_v39 = vmul.f32 %v4926_v42, %v1725_v49  ;;  %v5087_v37 = vadd.f32 %v4932_v18, %v1766_v9  ;;  %v5090_v12 = vadd.f32 %v4932_v18, %v1783_v8 }
 0x265   : > { %v2551_v61 = vpack.c.b16 %v2478_v15, %v2478_v15  ;;  %v1784_v47 = vmul.f32 %v4926_v42, %v1745_v45  ;;  %v1777_v13 = vmul.f32 %v4926_v42, %v1727_v16  ;;  %v1785_v32 = vmul.f32 %v4926_v42, %v1747_v5 }
 0x266   : > { %v1812_v46 = vadd.f32 %v4932_v18, %v1776_v39  ;;  %v1760_v2 = vmul.f32 %v4926_v42, %v1685_v44  ;;  %v1768_v62 = vmul.f32 %v4926_v42, %v1705_v50  ;;  %v1843_v27 = vmax.f32 %v1811_v48, 0.0 }
 0x267   : > { %2568 = vst.msk [vmem:[%s5016_s17 + $0x8] sm:$0xf] %vm2565_vm3, %v2551_v61  ;;  %v5101_v52 = vmul.f32 %v4926_v42, %v1702_v63  ;;  %v1820_v14 = vadd.f32 %v4932_v18, %v1784_v47  ;;  %v1813_v22 = vadd.f32 %v4932_v18, %v1777_v13  ;;  %v5106_v49 = vadd.f32 %v4932_v18, %v1785_v32 }
 0x268   : > { %v1844_v21 = vmax.f32 %v1812_v46, 0.0  ;;  %v5109_v35 = vadd.f32 %v4932_v18, %v1760_v2  ;;  %v5112_v36 = vadd.f32 %v4932_v18, %v1768_v62  ;;  %v1826_v56 = vmax.f32 %v5080_v53, 0.0 }
 0x269   : > { %v1834_v26 = vmax.f32 %v5087_v37, 0.0  ;;  %v1852_v45 = vmax.f32 %v1820_v14, 0.0  ;;  %v1845_v1 = vmax.f32 %v1813_v22, 0.0  ;;  %v1851_v59 = vmax.f32 %v5090_v12, 0.0  ;;  %v1687_v30 = vpop.f32.mrf.mxu0 }
 0x26a   : > { %v1864_v31 = vmax.f32 %v1842_v40, %v1844_v21  ;;  %v1853_v0 = vmax.f32 %v5106_v49, 0.0  ;;  %v1828_v43 = vmax.f32 %v5109_v35, 0.0  ;;  %v1836_v6 = vmax.f32 %v5112_v36, 0.0 }
 0x26b   : > { %v1868_v4 = vmax.f32 %v1850_v17, %v1852_v45  ;;  %v5119_v20 = vmax.f32 %v1843_v27, %v1845_v1  ;;  %v5123_v63 = vmul.f32 %v4926_v42, %v1687_v30 }
 0x26c   : > { %v1916_v19 = vrot.slane %v1864_v31, 2  ;;  %v1917_v51 = vrot.slane %v1864_v31, 4  ;;  %v1918_v33 = vrot.slane %v1864_v31, 6  ;;  %v2701_v34 = vrot.slane %v1864_v31, 9 }
 0x26d   : > { %v1928_v11 = vrot.slane %v1868_v4, 2  ;;  %v1929_v29 = vrot.slane %v1868_v4, 4  ;;  %v1930_v3 = vrot.slane %v1868_v4, 6  ;;  %v2717_v41 = vrot.slane %v1868_v4, 9 }
 0x26e   : > { %v2702_v55 = vrot.slane %v1916_v19, 9  ;;  %v2703_v38 = vrot.slane %v1917_v51, 9  ;;  %v2704_v58 = vrot.slane %v1918_v33, 9  ;;  %v2214_v25 = vmax.f32 %v1864_v31, %v2701_v34 }
 0x26f   : > { %v2718_v7 = vrot.slane %v1928_v11, 9  ;;  %v2719_v60 = vrot.slane %v1929_v29, 9  ;;  %v2720_v10 = vrot.slane %v1930_v3, 9  ;;  %v2230_v23 = vmax.f32 %v1868_v4, %v2717_v41 }
 0x270   : > { %v2215_v54 = vmax.f32 %v1916_v19, %v2702_v55  ;;  %v2216_v24 = vmax.f32 %v1917_v51, %v2703_v38  ;;  %v2217_v9 = vmax.f32 %v1918_v33, %v2704_v58  ;;  %v2278_v8 = vpack.c.bf16 %v2214_v25, %v2214_v25 }
 0x271   : > { %v2231_v57 = vmax.f32 %v1928_v11, %v2718_v7  ;;  %v2232_v16 = vmax.f32 %v1929_v29, %v2719_v60  ;;  %v2233_v44 = vmax.f32 %v1930_v3, %v2720_v10  ;;  %v2294_v15 = vpack.c.bf16 %v2230_v23, %v2230_v23 }
 0x272   : > { %v2279_v40 = vpack.c.bf16 %v2215_v54, %v2215_v54  ;;  %v2280_v17 = vpack.c.bf16 %v2216_v24, %v2216_v24  ;;  %v2281_v48 = vpack.c.bf16 %v2217_v9, %v2217_v9  ;;  %v2406_v5 = vunpack.c.l.b16 %v2278_v8 }
 0x273   : > { %v2295_v50 = vpack.c.bf16 %v2231_v57, %v2231_v57  ;;  %v2296_v61 = vpack.c.bf16 %v2232_v16, %v2232_v16  ;;  %v2297_v39 = vpack.c.bf16 %v2233_v44, %v2233_v44  ;;  %v2422_v47 = vunpack.c.l.b16 %v2294_v15 }
 0x274   : > { %v2407_v13 = vunpack.c.l.b16 %v2279_v40  ;;  %v2408_v46 = vunpack.c.l.b16 %v2280_v17  ;;  %v2409_v32 = vunpack.c.l.b16 %v2281_v48  ;;  %v1919_v2 = vrot.slane %v5119_v20, 2 }
 0x275   : > { %v2423_v62 = vunpack.c.l.b16 %v2295_v50  ;;  %v2424_v27 = vunpack.c.l.b16 %v2296_v61  ;;  %v2425_v14 = vunpack.c.l.b16 %v2297_v39  ;;  %v1920_v22 = vrot.slane %v5119_v20, 4 }
 0x276   : > { %v2507_v21 = vrot.slane %v2407_v13, 7  ;;  %v2509_v49 = vrot.slane %v2408_v46, 6  ;;  %v2511_v45 = vrot.slane %v2409_v32, 5  ;;  %v1921_v1 = vrot.slane %v5119_v20, 6 }
 0x277   : > { %v2535_v31 = vrot.slane %v2423_v62, 7  ;;  %v2537_v30 = vrot.slane %v2424_v27, 6  ;;  %v2539_v4 = vrot.slane %v2425_v14, 5  ;;  %v2705_v19 = vrot.slane %v5119_v20, 9 }
 0x278   : > { %v2508_v51 = vsel %vm2431_vm12, %v2507_v21, %v2406_v5  ;;  %v2706_v33 = vrot.slane %v1919_v2, 9  ;;  %v2707_v34 = vrot.slane %v1920_v22, 9  ;;  %v2708_v11 = vrot.slane %v1921_v1, 9 }
 0x279   : > { %v2510_v29 = vsel %vm2434_vm13, %v2509_v49, %v2508_v51  ;;  %v2536_v3 = vsel %vm2431_vm12, %v2535_v31, %v2422_v47  ;;  %v2218_v41 = vmax.f32 %v5119_v20, %v2705_v19  ;;  %v1869_v55 = vmax.f32 %v1851_v59, %v1853_v0 }
 0x27a   : > { %v2512_v38 = vsel %vm2437_vm14, %v2511_v45, %v2510_v29  ;;  %v2538_v58 = vsel %vm2434_vm13, %v2537_v30, %v2536_v3  ;;  %v2219_v25 = vmax.f32 %v1919_v2, %v2706_v33  ;;  %v2220_v7 = vmax.f32 %v1920_v22, %v2707_v34 }
 0x27b   : > { %v2540_v60 = vsel %vm2437_vm14, %v2539_v4, %v2538_v58  ;;  %v2221_v10 = vmax.f32 %v1921_v1, %v2708_v11  ;;  %v2282_v23 = vpack.c.bf16 %v2218_v41, %v2218_v41  ;;  %v1931_v54 = vrot.slane %v1869_v55, 2 }
 0x27c   : > { %v2283_v24 = vpack.c.bf16 %v2219_v25, %v2219_v25  ;;  %v2284_v9 = vpack.c.bf16 %v2220_v7, %v2220_v7  ;;  %v1932_v8 = vrot.slane %v1869_v55, 4  ;;  %v1933_v57 = vrot.slane %v1869_v55, 6 }
 0x27d   : > { %v2285_v16 = vpack.c.bf16 %v2221_v10, %v2221_v10  ;;  %v2410_v20 = vunpack.c.l.b16 %v2282_v23  ;;  %v2721_v44 = vrot.slane %v1869_v55, 9  ;;  %v2722_v12 = vrot.slane %v1931_v54, 9 }
 0x27e   : > { %v2411_v59 = vunpack.c.l.b16 %v2283_v24  ;;  %v2412_v0 = vunpack.c.l.b16 %v2284_v9  ;;  %v2723_v15 = vrot.slane %v1932_v8, 9  ;;  %v2724_v40 = vrot.slane %v1933_v57, 9 }
 0x27f   : > { %v2413_v17 = vunpack.c.l.b16 %v2285_v16  ;;  %v2513_v48 = vrot.slane %v2410_v20, 4  ;;  %v2234_v5 = vmax.f32 %v1869_v55, %v2721_v44  ;;  %v2235_v50 = vmax.f32 %v1931_v54, %v2722_v12 }
 0x280   : > { %v2515_v61 = vrot.slane %v2411_v59, 3  ;;  %v2517_v39 = vrot.slane %v2412_v0, 2  ;;  %v2236_v47 = vmax.f32 %v1932_v8, %v2723_v15  ;;  %v2237_v13 = vmax.f32 %v1933_v57, %v2724_v40 }
 0x281   : > { %v2514_v46 = vsel %vm2440_vm15, %v2513_v48, %v2512_v38  ;;  %v2519_v32 = vrot.slane %v2413_v17, 1  ;;  %v2298_v2 = vpack.c.bf16 %v2234_v5, %v2234_v5  ;;  %v2299_v62 = vpack.c.bf16 %v2235_v50, %v2235_v50 }
 0x282   : > { %v2516_v27 = vsel %vm2443_vm0, %v2515_v61, %v2514_v46  ;;  %v2300_v14 = vpack.c.bf16 %v2236_v47, %v2236_v47  ;;  %v2301_v22 = vpack.c.bf16 %v2237_v13, %v2237_v13  ;;  %v1856_v21 = vmax.f32 %v1826_v56, %v1828_v43 }
 0x283   : > { %v2518_v49 = vsel %vm2446_vm1, %v2517_v39, %v2516_v27  ;;  %v2426_v45 = vunpack.c.l.b16 %v2298_v2  ;;  %v2427_v1 = vunpack.c.l.b16 %v2299_v62  ;;  %v1860_v31 = vmax.f32 %v1834_v26, %v1836_v6  ;;  %v1707_v39 = vpop.f32.mrf.mxu1 }
 0x284   : > { %v2520_v30 = vsel %vm2449_vm2, %v2519_v32, %v2518_v49  ;;  %v2428_v4 = vunpack.c.l.b16 %v2300_v14  ;;  %v2429_v19 = vunpack.c.l.b16 %v2301_v22  ;;  %v1892_v51 = vrot.slane %v1856_v21, 2 }
 0x285   : > { %v2554_v33 = vpack.c.b16 %v2520_v30, %v2520_v30  ;;  %v2541_v35 = vrot.slane %v2426_v45, 4  ;;  %v2543_v34 = vrot.slane %v2427_v1, 3  ;;  %v1893_v53 = vrot.slane %v1856_v21, 4 }
 0x286   : > { %v2545_v56 = vrot.slane %v2428_v4, 2  ;;  %v2547_v43 = vrot.slane %v2429_v19, 1  ;;  %v1894_v11 = vrot.slane %v1856_v21, 6  ;;  %v2669_v29 = vrot.slane %v1856_v21, 9 }
 0x287   : > { %2571 = vst.msk [vmem:[%s5016_s17 + $0x14] sm:$0xf] %vm2565_vm3, %v2554_v33  ;;  %v2542_v36 = vsel %vm2440_vm15, %v2541_v35, %v2540_v60  ;;  %v2670_v3 = vrot.slane %v1892_v51, 9  ;;  %v2671_v37 = vrot.slane %v1893_v53, 9  ;;  %v1904_v26 = vrot.slane %v1860_v31, 2 }
 0x288   : > { %v2544_v6 = vsel %vm2443_vm0, %v2543_v34, %v2542_v36  ;;  %v2672_v41 = vrot.slane %v1894_v11, 9  ;;  %v2182_v55 = vmax.f32 %v1856_v21, %v2669_v29  ;;  %v1905_v38 = vrot.slane %v1860_v31, 4 }
 0x289   : > { %v2546_v58 = vsel %vm2446_vm1, %v2545_v56, %v2544_v6  ;;  %v2183_v25 = vmax.f32 %v1892_v51, %v2670_v3  ;;  %v2184_v7 = vmax.f32 %v1893_v53, %v2671_v37  ;;  %v1906_v10 = vrot.slane %v1860_v31, 6 }
 0x28a   : > { %v2548_v23 = vsel %vm2449_vm2, %v2547_v43, %v2546_v58  ;;  %v2185_v54 = vmax.f32 %v1894_v11, %v2672_v41  ;;  %v2246_v24 = vpack.c.bf16 %v2182_v55, %v2182_v55  ;;  %v2685_v9 = vrot.slane %v1860_v31, 9 }
 0x28b   : > { %v2556_v60 = vpack.c.b16 %v2548_v23, %v2548_v23  ;;  %v2247_v8 = vpack.c.bf16 %v2183_v25, %v2183_v25  ;;  %v2248_v57 = vpack.c.bf16 %v2184_v7, %v2184_v7  ;;  %v2686_v16 = vrot.slane %v1904_v26, 9 }
 0x28c   : > { %v1795_v20 = vadd.f32 %v4932_v18, %v5083_v28  ;;  %v1803_v44 = vadd.f32 %v4932_v18, %v5101_v52  ;;  %v2687_v12 = vrot.slane %v1905_v38, 9  ;;  %v2688_v59 = vrot.slane %v1906_v10, 9 }
 0x28d   : > { %2573 = vst.msk [vmem:[%s5016_s17 + $0x1c] sm:$0xf] %vm2565_vm3, %v2556_v60  ;;  %v2249_v0 = vpack.c.bf16 %v2185_v54, %v2185_v54  ;;  %v2375_v15 = vunpack.c.l.b16 %v2247_v8  ;;  %v2376_v40 = vunpack.c.l.b16 %v2248_v57  ;;  %v2199_v17 = vmax.f32 %v1904_v26, %v2686_v16 }
 0x28e   : > { %v2198_v48 = vmax.f32 %v1860_v31, %v2685_v9  ;;  %v2200_v5 = vmax.f32 %v1905_v38, %v2687_v12  ;;  %v2201_v50 = vmax.f32 %v1906_v10, %v2688_v59  ;;  %v1797_v61 = vadd.f32 %v4932_v18, %v5123_v63 }
 0x28f   : > { %v2374_v47 = vunpack.c.l.b16 %v2246_v24  ;;  %v2451_v28 = vrot.slane %v2375_v15, 7  ;;  %v2453_v13 = vrot.slane %v2376_v40, 6  ;;  %v2263_v46 = vpack.c.bf16 %v2199_v17, %v2199_v17 }
 0x290   : > { %v1827_v52 = vmax.f32 %v1795_v20, 0.0  ;;  %v2264_v32 = vpack.c.bf16 %v2200_v5, %v2200_v5  ;;  %v1829_v2 = vmax.f32 %v1797_v61, 0.0  ;;  %v2377_v62 = vunpack.c.l.b16 %v2249_v0 }
 0x291   : > { %v2452_v27 = vsel %vm2431_vm12, %v2451_v28, %v2374_v47  ;;  %v2391_v14 = vunpack.c.l.b16 %v2263_v46  ;;  %v1769_v22 = vmul.f32 %v4926_v42, %v1707_v39  ;;  %v2262_v21 = vpack.c.bf16 %v2198_v48, %v2198_v48 }
 0x292   : > { %v2265_v49 = vpack.c.bf16 %v2201_v50, %v2201_v50  ;;  %v1857_v45 = vmax.f32 %v1827_v52, %v1829_v2  ;;  %v1835_v1 = vmax.f32 %v1803_v44, 0.0  ;;  %v2454_v63 = vsel %vm2434_vm13, %v2453_v13, %v2452_v27 }
 0x293   : > { %v1805_v31 = vadd.f32 %v4932_v18, %v1769_v22  ;;  %v2392_v30 = vunpack.c.l.b16 %v2264_v32  ;;  %v2479_v4 = vrot.slane %v2391_v14, 7  ;;  %v2455_v33 = vrot.slane %v2377_v62, 5 }
 0x294   : > { %v1895_v19 = vrot.slane %v1857_v45, 2  ;;  %v1896_v51 = vrot.slane %v1857_v45, 4  ;;  %v1897_v35 = vrot.slane %v1857_v45, 6  ;;  %v2673_v34 = vrot.slane %v1857_v45, 9 }
 0x295   : > { %v1837_v53 = vmax.f32 %v1805_v31, 0.0  ;;  %v2390_v56 = vunpack.c.l.b16 %v2262_v21  ;;  %v2393_v43 = vunpack.c.l.b16 %v2265_v49  ;;  %v2456_v29 = vsel %vm2437_vm14, %v2455_v33, %v2454_v63 }
 0x296   : > { %v2674_v11 = vrot.slane %v1895_v19, 9  ;;  %v2675_v42 = vrot.slane %v1896_v51, 9  ;;  %v2676_v36 = vrot.slane %v1897_v35, 9  ;;  %v2186_v3 = vmax.f32 %v1857_v45, %v2673_v34 }
 0x297   : > { %v1861_v37 = vmax.f32 %v1835_v1, %v1837_v53  ;;  %v2480_v26 = vsel %vm2431_vm12, %v2479_v4, %v2390_v56  ;;  %v2481_v18 = vrot.slane %v2392_v30, 6  ;;  %v2483_v32 = vrot.slane %v2393_v43, 5 }
 0x298   : > { %v2187_v6 = vmax.f32 %v1895_v19, %v2674_v11  ;;  %v2188_v41 = vmax.f32 %v1896_v51, %v2675_v42  ;;  %v2189_v55 = vmax.f32 %v1897_v35, %v2676_v36  ;;  %v2250_v38 = vpack.c.bf16 %v2186_v3, %v2186_v3 }
 0x299   : > { %v1907_v58 = vrot.slane %v1861_v37, 2  ;;  %v1908_v25 = vrot.slane %v1861_v37, 4  ;;  %v1909_v23 = vrot.slane %v1861_v37, 6  ;;  %v2689_v54 = vrot.slane %v1861_v37, 9 }
 0x29a   : > { %v2251_v7 = vpack.c.bf16 %v2187_v6, %v2187_v6  ;;  %v2252_v10 = vpack.c.bf16 %v2188_v41, %v2188_v41  ;;  %v2253_v24 = vpack.c.bf16 %v2189_v55, %v2189_v55  ;;  %v2378_v9 = vunpack.c.l.b16 %v2250_v38 }
 0x29b   : > { %v2690_v60 = vrot.slane %v1907_v58, 9  ;;  %v2691_v8 = vrot.slane %v1908_v25, 9  ;;  %v2692_v20 = vrot.slane %v1909_v23, 9  ;;  %v2202_v44 = vmax.f32 %v1861_v37, %v2689_v54 }
 0x29c   : > { %v2379_v57 = vunpack.c.l.b16 %v2251_v7  ;;  %v2380_v16 = vunpack.c.l.b16 %v2252_v10  ;;  %v2381_v12 = vunpack.c.l.b16 %v2253_v24  ;;  %v2457_v59 = vrot.slane %v2378_v9, 4 }
 0x29d   : > { %v2203_v0 = vmax.f32 %v1907_v58, %v2690_v60  ;;  %v2204_v15 = vmax.f32 %v1908_v25, %v2691_v8  ;;  %v2205_v48 = vmax.f32 %v1909_v23, %v2692_v20  ;;  %v2266_v5 = vpack.c.bf16 %v2202_v44, %v2202_v44 }
 0x29e   : > { %v2459_v40 = vrot.slane %v2379_v57, 3  ;;  %v2461_v17 = vrot.slane %v2380_v16, 2  ;;  %v2482_v50 = vsel %vm2434_vm13, %v2481_v18, %v2480_v26  ;;  %v2458_v61 = vsel %vm2440_vm15, %v2457_v59, %v2456_v29 }
 0x29f   : > { %v2267_v39 = vpack.c.bf16 %v2203_v0, %v2203_v0  ;;  %v2268_v47 = vpack.c.bf16 %v2204_v15, %v2204_v15  ;;  %v2463_v13 = vrot.slane %v2381_v12, 1  ;;  %v2269_v46 = vpack.c.bf16 %v2205_v48, %v2205_v48 }
 0x2a0   : > { %v2460_v28 = vsel %vm2443_vm0, %v2459_v40, %v2458_v61  ;;  %v2394_v52 = vunpack.c.l.b16 %v2266_v5  ;;  %v2484_v49 = vsel %vm2437_vm14, %v2483_v32, %v2482_v50 }
 0x2a1   : > { %v2462_v2 = vsel %vm2446_vm1, %v2461_v17, %v2460_v28  ;;  %v2395_v62 = vunpack.c.l.b16 %v2267_v39  ;;  %v2396_v27 = vunpack.c.l.b16 %v2268_v47  ;;  %v2397_v22 = vunpack.c.l.b16 %v2269_v46 }
 0x2a2   : > { %v2464_v14 = vsel %vm2449_vm2, %v2463_v13, %v2462_v2  ;;  %v2485_v21 = vrot.slane %v2394_v52, 4 }
 0x2a3   : > { %v2550_v45 = vpack.c.b16 %v2464_v14, %v2464_v14  ;;  %v2487_v1 = vrot.slane %v2395_v62, 3  ;;  %v2489_v63 = vrot.slane %v2396_v27, 2  ;;  %v2491_v4 = vrot.slane %v2397_v22, 1 }
 0x2a4   : > { %v2486_v31 = vsel %vm2440_vm15, %v2485_v21, %v2484_v49 }
 0x2a5   : > { %2567 = vst.msk [vmem:[%s5016_s17 + $0x4] sm:$0xf] %vm2565_vm3, %v2550_v45  ;;  %v2488_v30 = vsel %vm2443_vm0, %v2487_v1, %v2486_v31 }
 0x2a6   : > { %v2490_v19 = vsel %vm2446_vm1, %v2489_v63, %v2488_v30 }
 0x2a7   : > { %v2492_v51 = vsel %vm2449_vm2, %v2491_v4, %v2490_v19 }
 0x2a8   : > { %v2552_v33 = vpack.c.b16 %v2492_v51, %v2492_v51 }
 0x2aa   : > { %2569 = vst.msk [vmem:[%s5016_s17 + $0xc] sm:$0xf] %vm2565_vm3, %v2552_v33 }
 0x2ab PF: > { %s14_s15 = sadd.s32 1, %s3446_s15  }
 0x2ac   : > { %p11_p4 = scmp.ge.s32.totalorder %s14_s15, 4  }
 0x2ae   :  { %13 = sbr.rel (!%p11_p4) target bundleno = 1 (0x1), region = 66 }

</bundles_post_ra>
